<compile_context>
chip_gen: v7x
topology: tpu7x:2x2x1
jax: 0.10.0
libtpu: 0.0.40
codegen_flags: <defaults>
</compile_context>

<pallas_src>
import jax
import jax.numpy as jnp
import numpy as np
from jax import lax
from jax.experimental import pallas as pl
from jax.experimental.pallas import tpu as pltpu

_UNROLL_MAX_T = 16


def _round_up(x, m):
    return ((x + m - 1) // m) * m


# ----------------------------------------------------------------------------
# Pallas kernel: one batch block (BB rows), full decode loop.
# ----------------------------------------------------------------------------
def _decoder_kernel(
    inp_ref,     # (T, BB, E)     input embeddings, time-major
    h0_ref,      # (1, BB, H)
    c0_ref,      # (1, BB, H)
    enc_ref,     # (BB, S_m, 2E)  [items | titles] lane-concatenated, row-padded
    bias_ref,    # (BB, S_m, 2E)  additive mask bias (-1e30 on masked / pad rows)
    wh_all_ref,  # (E, QW+GW+ZW)  [WQ*scale |0| WH_G |0| EYE3 |0]
    hb_all_ref,  # (1, QW+GW+ZW)  [BQ*scale |0|  0   |0|  BO  |0]
    wkv_ref,     # (2E, 4E)       [blockdiag(wk_i,wk_t) | blockdiag(wv_i,wv_t)]
    bkv_ref,     # (1, 4E)
    hsum_ref,    # (2E, 2E)       per-head lane-group sum indicator
    wa_g_ref,    # (2E, 4H)       folded attention -> LSTM-gate weight
    wo_ref,      # (2E, ZW)       attention -> output-z projection
    wx_ref,      # (E, 4H)        input-embedding -> LSTM-gate weight
    bg_ref,      # (1, 4H)        folded gate bias
    out_ref,     # (T, BB, ZW)
    hout_ref,    # (1, BB, H)
    cout_ref,    # (1, BB, H)
):
    f32 = jnp.float32
    T, BB, E = inp_ref.shape
    H = h0_ref.shape[2]
    S_m = enc_ref.shape[1]
    E2 = 2 * E
    G = wx_ref.shape[1]                      # 4H
    ZW = wo_ref.shape[1]
    GW = _round_up(G, 128)
    QW = wh_all_ref.shape[1] - GW - ZW

    # ---------------- hoisted, step-invariant work ----------------
    h0 = h0_ref[0]                           # (BB, H)
    c0 = c0_ref[0]
    bias = bias_ref[...]                     # (BB, S_m, 2E)
    wh_all = wh_all_ref[...]
    hb_all = hb_all_ref[...]
    hsum = hsum_ref[...]
    wa_g = wa_g_ref[...]
    wo = wo_ref[...]
    wx = wx_ref[...]
    bg = bg_ref[...]

    # Fused K/V projection for both encoders: one hoisted matmul, M = BB*S_m.
    kv = (jnp.dot(enc_ref[...].reshape(BB * S_m, E2), wkv_ref[...],
                  preferred_element_type=f32) + bkv_ref[...])
    k_cat = kv[:, :E2].reshape(BB, S_m, E2)  # (BB, S_m, 2E)
    v_cat = kv[:, E2:].reshape(BB, S_m, E2)

    def attend(h):
        # One wide h-consuming matmul: [q (both encoders) | h->gates | h->z].
        hy = jnp.dot(h, wh_all, preferred_element_type=f32) + hb_all
        q = hy[:, 0:E2]                      # (BB, 2E) pre-scaled, bias added
        gates_h = hy[:, QW:QW + G]           # (BB, 4H)
        z_h = hy[:, QW + GW:QW + GW + ZW]    # (BB, ZW), includes output bias
        # Per-head scores: (q (.) K) head-group-summed via one indicator matmul.
        w = q[:, None, :] * k_cat            # (BB, S_m, 2E)   VPU
        s = (jnp.dot(w.reshape(BB * S_m, E2), hsum, preferred_element_type=f32)
             .reshape(BB, S_m, E2) + bias)
        m = jnp.max(s, axis=1, keepdims=True)        # segmented per-(b, head) max
        e = jnp.exp(s - m)
        num = jnp.sum(e * v_cat, axis=1)     # (BB, 2E)  unnormalized context
        den = jnp.sum(e, axis=1)             # (BB, 2E)  per-head denominator (>= 1)
        attn = num * pl.reciprocal(den, approx=True)
        return attn, gates_h, z_h

    def step(t, h, c, attn, gates_h):
        # LSTM gates: folded (h -> gates) + (attn -> gates) + (emb_t -> gates).
        gx_t = jnp.dot(inp_ref[t], wx, preferred_element_type=f32) + bg
        gates = gates_h + jnp.dot(attn, wa_g, preferred_element_type=f32) + gx_t
        i_g = jax.nn.sigmoid(gates[:, 0:H])
        f_g = jax.nn.sigmoid(gates[:, H:2 * H])
        g_g = jnp.tanh(gates[:, 2 * H:3 * H])
        o_g = jax.nn.sigmoid(gates[:, 3 * H:4 * H])
        c_new = f_g * c + i_g * g_g
        h_new = o_g * jnp.tanh(c_new)
        # Attention for the new hidden state (feeds next step + this step's output).
        attn_new, gates_h_new, z_h = attend(h_new)
        # Output row: [h_new, h_new + ctx_items, h_new + ctx_titles] (lane-padded).
        out_ref[t] = z_h + jnp.dot(attn_new, wo, preferred_element_type=f32)
        return h_new, c_new, attn_new, gates_h_new

    attn0, gates_h0, _ = attend(h0)
    if T <= _UNROLL_MAX_T:
        h, c, attn, gates_h = h0, c0, attn0, gates_h0
        for t in range(T):
            h, c, attn, gates_h = step(t, h, c, attn, gates_h)
    else:
        def body(t, carry):
            return step(t, *carry)
        h, c, attn, gates_h = lax.fori_loop(
            0, T, body, (h0, c0, attn0, gates_h0), unroll=2)

    hout_ref[...] = h[None, :, :]
    cout_ref[...] = c[None, :, :]


# ----------------------------------------------------------------------------
# Wrapper: weight folding / packing + pallas_call
# ----------------------------------------------------------------------------
def _block_spec(shape, bb, batch_axis):
    blk = tuple(bb if i == batch_axis else s for i, s in enumerate(shape))
    nd = len(shape)
    return pl.BlockSpec(
        blk,
        lambda b, _ax=batch_axis, _nd=nd: tuple(b if i == _ax else 0
                                                for i in range(_nd)))


def _full_spec(arr):
    nd = arr.ndim
    return pl.BlockSpec(arr.shape, lambda b, _nd=nd: (0,) * _nd)


def _pad_cols(x, width):
    pad = width - x.shape[1]
    if pad == 0:
        return x
    return jnp.concatenate([x, jnp.zeros((x.shape[0], pad), x.dtype)], axis=1)


def _default_batch_block(B):
    # Generation-aware: only split the batch across grid steps on v7x (2 TCs per
    # chip), and only when every block keeps >= 8 sublane rows.  On v5e / v6e a
    # longer grid just serializes the decode loop and shrinks every matmul's M.
    try:
        kind = jax.devices()[0].device_kind.lower()
    except Exception:
        kind = ""
    if "v7" in kind and B % 2 == 0 and (B // 2) % 8 == 0:
        return B // 2
    return B


def context_attentional_decoder_pallas(input_embeddings, hidden_states,
                                       encoder_outputs_items, encoder_outputs_titles,
                                       encoder_item_masks, encoder_title_masks,
                                       params, num_heads, batch_block=None):
    f32 = jnp.float32
    h0, c0 = hidden_states                         # (1, B, H) each
    B, T, E = input_embeddings.shape
    H = h0.shape[-1]
    assert E == H, "forward only shape-consistent when hidden_size == embedding_size"
    assert E % num_heads == 0
    S_i = encoder_outputs_items.shape[1]
    S_t = encoder_outputs_titles.shape[1]
    d = E // num_heads
    scaling = float(d) ** -0.5
    E2 = 2 * E
    G = 4 * H
    QW = _round_up(E2, 128)
    GW = _round_up(G, 128)
    ZW = _round_up(H + E2, 128)
    S_m = _round_up(max(S_i, S_t), 8)              # multiple of 8 -> clean reshapes

    BB = batch_block if batch_block is not None else _default_batch_block(B)
    assert B % BB == 0

    pi, pt = params["item"], params["title"]
    w_ih, w_hh = params["w_ih"], params["w_hh"]
    Wih_ci, Wih_ct, Wih_x = w_ih[0:E], w_ih[E:2 * E], w_ih[2 * E:3 * E]
    zE = jnp.zeros((E, E), f32)

    # ---- fused / folded weights (built once by XLA) ----
    WK_blk = jnp.concatenate(
        [jnp.concatenate([pi["wk"], zE], axis=1),
         jnp.concatenate([zE, pt["wk"]], axis=1)], axis=0)            # (2E, 2E)
    WV_blk = jnp.concatenate(
        [jnp.concatenate([pi["wv"], zE], axis=1),
         jnp.concatenate([zE, pt["wv"]], axis=1)], axis=0)            # (2E, 2E)
    WKV = jnp.concatenate([WK_blk, WV_blk], axis=1)                   # (2E, 4E)
    BKV = jnp.concatenate([pi["bk"], pt["bk"], pi["bv"], pt["bv"]], axis=1)

    WQ_cat = jnp.concatenate([pi["wq"], pt["wq"]], axis=1) * scaling  # (E, 2E)
    BQ_cat = jnp.concatenate([pi["bq"], pt["bq"]], axis=1) * scaling  # (1, 2E)
    WH_G = w_hh + Wih_ci + Wih_ct                                     # (H, 4H)
    eye = jnp.eye(H, dtype=f32)
    EYE3 = _pad_cols(jnp.concatenate([eye, eye, eye], axis=1), ZW)    # (H, ZW)
    WH_ALL = jnp.concatenate(
        [_pad_cols(WQ_cat, QW), _pad_cols(WH_G, GW), EYE3], axis=1)   # (E, QW+GW+ZW)
    BO_pad = _pad_cols(jnp.concatenate(
        [jnp.zeros((1, H), f32), pi["bo"], pt["bo"]], axis=1), ZW)    # (1, ZW)
    HB_ALL = jnp.concatenate(
        [_pad_cols(BQ_cat, QW), jnp.zeros((1, GW), f32), BO_pad], axis=1)

    WA_G = jnp.concatenate([pi["wo"] @ Wih_ci, pt["wo"] @ Wih_ct], axis=0)   # (2E, 4H)
    BG = params["b_ih"] + params["b_hh"] + pi["bo"] @ Wih_ci + pt["bo"] @ Wih_ct
    WO_top = _pad_cols(jnp.concatenate([jnp.zeros((E, H), f32), pi["wo"]], axis=1), ZW)
    WO_bot = _pad_cols(jnp.concatenate([jnp.zeros((E, H + E), f32), pt["wo"]], axis=1), ZW)
    WO_pad = jnp.concatenate([WO_top, WO_bot], axis=0)                # (2E, ZW)

    lane = jnp.arange(E2)
    HSUM = (lane[:, None] // d == lane[None, :] // d).astype(f32)     # (2E, 2E)

    # ---- data layout prep (cheap, outside the kernel) ----
    inp_t = jnp.transpose(input_embeddings, (1, 0, 2))                # (T, B, E)

    def pad_rows(x, S):
        if S == S_m:
            return x
        return jnp.concatenate(
            [x, jnp.zeros((B, S_m - S) + x.shape[2:], f32)], axis=1)

    enc_cat = jnp.concatenate(
        [pad_rows(encoder_outputs_items, S_i),
         pad_rows(encoder_outputs_titles, S_t)], axis=-1)             # (B, S_m, 2E)

    neg = jnp.float32(-1e30)

    def mask_bias(mask, S):
        bv = jnp.where(mask > 0, neg, jnp.float32(0.0))               # (B, S)
        if S < S_m:
            bv = jnp.concatenate([bv, jnp.full((B, S_m - S), neg, f32)], axis=1)
        return bv

    bias_cat = jnp.concatenate(
        [jnp.broadcast_to(mask_bias(encoder_item_masks, S_i)[:, :, None], (B, S_m, E)),
         jnp.broadcast_to(mask_bias(encoder_title_masks, S_t)[:, :, None], (B, S_m, E))],
        axis=-1)                                                       # (B, S_m, 2E)

    args = [inp_t, h0, c0, enc_cat, bias_cat,
            WH_ALL, HB_ALL, WKV, BKV, HSUM, WA_G, WO_pad, Wih_x, BG]

    in_specs = [
        _block_spec(inp_t.shape, BB, 1),
        _block_spec(h0.shape, BB, 1),
        _block_spec(c0.shape, BB, 1),
        _block_spec(enc_cat.shape, BB, 0),
        _block_spec(bias_cat.shape, BB, 0),
    ] + [_full_spec(a) for a in args[5:]]

    out_shape = (jax.ShapeDtypeStruct((T, B, ZW), f32),
                 jax.ShapeDtypeStruct((1, B, H), f32),
                 jax.ShapeDtypeStruct((1, B, H), f32))
    out_specs = (_block_spec((T, B, ZW), BB, 1),
                 _block_spec((1, B, H), BB, 1),
                 _block_spec((1, B, H), BB, 1))

    out_t, h_n, c_n = pl.pallas_call(
        _decoder_kernel,
        grid=(B // BB,),
        in_specs=in_specs,
        out_specs=out_specs,
        out_shape=out_shape,
        compiler_params=pltpu.CompilerParams(dimension_semantics=("parallel",)),
    )(*args)

    outputs = jnp.transpose(out_t, (1, 0, 2))[..., :H + E2]           # (B, T, H+2E)
    return outputs, (h_n, c_n)


# ----------------------------------------------------------------------------
# Pure-JAX reference (mirrors the PyTorch forward, eval mode)
# ----------------------------------------------------------------------------
def _reference(inp, h0, c0, enc_i, enc_t, mask_i, mask_t, params, num_heads):
    B, T, E = inp.shape
    H = h0.shape[-1]
    d = E // num_heads
    scaling = float(d) ** -0.5

    def mha(q_in, kv, mask, p):
        S = kv.shape[1]
        q = (q_in @ p["wq"] + p["bq"]) * scaling
        k = kv @ p["wk"] + p["bk"]
        v = kv @ p["wv"] + p["bv"]
        q = q.reshape(B, 1, num_heads, d).transpose(0, 2, 1, 3)
        k = k.reshape(B, S, num_heads, d).transpose(0, 2, 1, 3)
        v = v.reshape(B, S, num_heads, d).transpose(0, 2, 1, 3)
        sc = jnp.einsum("bhqd,bhkd->bhqk", q, k)
        sc = jnp.where(mask[:, None, None, :] > 0, -jnp.inf, sc)
        w = jax.nn.softmax(sc, axis=-1)
        o = jnp.einsum("bhqk,bhkd->bhqd", w, v).transpose(0, 2, 1, 3).reshape(B, 1, E)
        return o @ p["wo"] + p["bo"]

    def make_ctx(h):   # h: (B, 1, H)
        ci = h + mha(h, enc_i, mask_i, params["item"])
        ct = h + mha(h, enc_t, mask_t, params["title"])
        return jnp.concatenate([ci, ct], axis=-1)

    def lstm(x, h, c):
        gates = x @ params["w_ih"] + h @ params["w_hh"] + params["b_ih"] + params["b_hh"]
        i_g = jax.nn.sigmoid(gates[..., :H])
        f_g = jax.nn.sigmoid(gates[..., H:2 * H])
        g_g = jnp.tanh(gates[..., 2 * H:3 * H])
        o_g = jax.nn.sigmoid(gates[..., 3 * H:])
        c = f_g * c + i_g * g_g
        h = o_g * jnp.tanh(c)
        return h, c

    h, c = h0, c0                 # (B, 1, H)
    ctx = make_ctx(h)
    outs = []
    for t in range(T):
        x = jnp.concatenate([ctx, inp[:, t:t + 1, :]], axis=-1)
        h, c = lstm(x, h, c)
        ctx = make_ctx(h)
        outs.append(jnp.concatenate([h[:, 0], ctx[:, 0]], axis=-1))
    return jnp.stack(outs, axis=1), h, c


# ----------------------------------------------------------------------------
# Deterministic parameter init + main
# ----------------------------------------------------------------------------
def _linear(key, din, dout, scale):
    kw, kb = jax.random.split(key)
    w = jax.random.normal(kw, (din, dout), jnp.float32) * scale
    b = jax.random.normal(kb, (1, dout), jnp.float32) * scale
    return w, b


def build_params(key, E, H, num_heads):
    ks = jax.random.split(key, 12)
    params = {}
    for name, koff in (("item", 0), ("title", 4)):
        wq, bq = _linear(ks[koff + 0], E, E, 0.08)
        wk, bk = _linear(ks[koff + 1], E, E, 0.08)
        wv, bv = _linear(ks[koff + 2], E, E, 0.08)
        wo, bo = _linear(ks[koff + 3], E, E, 0.08)
        params[name] = dict(wq=wq, bq=bq, wk=wk, bk=bk, wv=wv, bv=bv, wo=wo, bo=bo)
    # LSTM: input size 3E, hidden size H, 1 layer (gate order i, f, g, o)
    w_ih, b_ih = _linear(ks[8], 3 * E, 4 * H, 0.1)
    w_hh, b_hh = _linear(ks[9], H, 4 * H, 0.1)
    params.update(w_ih=w_ih, b_ih=b_ih, w_hh=w_hh, b_hh=b_hh)
    return params


if __name__ == "__main__":
    B, T = 4, 8
    E = H = 32           # hidden_size == embedding_size (required by the forward)
    S_I, S_T = 16, 12
    NUM_HEADS = 4

    key = jax.random.PRNGKey(0)
    k = jax.random.split(key, 8)

    inp = jax.random.normal(k[0], (B, T, E), jnp.float32)
    enc_items = jax.random.normal(k[1], (B, S_I, E), jnp.float32)
    enc_titles = jax.random.normal(k[2], (B, S_T, E), jnp.float32)
    h0 = jax.random.normal(k[3], (1, B, H), jnp.float32) * 0.1
    c0 = jax.random.normal(k[4], (1, B, H), jnp.float32) * 0.1

    item_lens = jnp.array([S_I, 10, 13, 6])
    title_lens = jnp.array([S_T, 7, 9, 4])
    item_mask = (jnp.arange(S_I)[None, :] >= item_lens[:, None]).astype(jnp.float32)
    title_mask = (jnp.arange(S_T)[None, :] >= title_lens[:, None]).astype(jnp.float32)

    params = build_params(k[5], E, H, NUM_HEADS)

    outputs, (h_n, c_n) = context_attentional_decoder_pallas(
        inp, (h0, c0), enc_items, enc_titles, item_mask, title_mask,
        params, NUM_HEADS)
    outputs = jax.block_until_ready(outputs)
    h_n = jax.block_until_ready(h_n)
    c_n = jax.block_until_ready(c_n)

    # Correctness check against a pure-JAX reference of the PyTorch forward.
    ref_out, ref_h, ref_c = _reference(
        inp, jnp.transpose(h0, (1, 0, 2)), jnp.transpose(c0, (1, 0, 2)),
        enc_items, enc_titles, item_mask, title_mask, params, NUM_HEADS)
    ref_h = jnp.transpose(ref_h, (1, 0, 2))
    ref_c = jnp.transpose(ref_c, (1, 0, 2))

    assert np.all(np.isfinite(np.asarray(outputs)))
    np.testing.assert_allclose(np.asarray(outputs), np.asarray(ref_out), rtol=5e-3, atol=5e-3)
    np.testing.assert_allclose(np.asarray(h_n), np.asarray(ref_h), rtol=5e-3, atol=5e-3)
    np.testing.assert_allclose(np.asarray(c_n), np.asarray(ref_c), rtol=5e-3, atol=5e-3)

    print("KERNEL_OK")
</pallas_src>

<mosaic_0001>
module attributes {stable_mosaic.version = 11 : i64} {
  func.func @_decoder_kernel(%arg0: i32, %arg1: memref<8x4x32xf32, #tpu.memory_space<vmem>>, %arg2: memref<1x4x32xf32, #tpu.memory_space<vmem>>, %arg3: memref<1x4x32xf32, #tpu.memory_space<vmem>>, %arg4: memref<4x16x64xf32, #tpu.memory_space<vmem>>, %arg5: memref<4x16x64xf32, #tpu.memory_space<vmem>>, %arg6: memref<32x384xf32, #tpu.memory_space<vmem>>, %arg7: memref<1x384xf32, #tpu.memory_space<vmem>>, %arg8: memref<64x128xf32, #tpu.memory_space<vmem>>, %arg9: memref<1x128xf32, #tpu.memory_space<vmem>>, %arg10: memref<64x64xf32, #tpu.memory_space<vmem>>, %arg11: memref<64x128xf32, #tpu.memory_space<vmem>>, %arg12: memref<64x128xf32, #tpu.memory_space<vmem>>, %arg13: memref<32x128xf32, #tpu.memory_space<vmem>>, %arg14: memref<1x128xf32, #tpu.memory_space<vmem>>, %arg15: memref<8x4x128xf32, #tpu.memory_space<vmem>>, %arg16: memref<1x4x32xf32, #tpu.memory_space<vmem>>, %arg17: memref<1x4x32xf32, #tpu.memory_space<vmem>>) attributes {dimension_semantics = [#tpu.dimension_semantics<parallel>], iteration_bounds = array<i64: 1>, scalar_prefetch = 0 : i64, scratch_operands = 0 : i64, tpu.core_type = #tpu.core_type<tc>, window_params = [{transform_indices = @transform_0, window_bounds = array<i64: 8, 4, 32>}, {transform_indices = @transform_1, window_bounds = array<i64: 1, 4, 32>}, {transform_indices = @transform_2, window_bounds = array<i64: 1, 4, 32>}, {transform_indices = @transform_3, window_bounds = array<i64: 4, 16, 64>}, {transform_indices = @transform_4, window_bounds = array<i64: 4, 16, 64>}, {pipeline_mode = #tpu.pipeline_mode<synchronous>, transform_indices = @transform_5, window_bounds = array<i64: 32, 384>}, {pipeline_mode = #tpu.pipeline_mode<synchronous>, transform_indices = @transform_6, window_bounds = array<i64: 1, 384>}, {pipeline_mode = #tpu.pipeline_mode<synchronous>, transform_indices = @transform_7, window_bounds = array<i64: 64, 128>}, {pipeline_mode = #tpu.pipeline_mode<synchronous>, transform_indices = @transform_8, window_bounds = array<i64: 1, 128>}, {pipeline_mode = #tpu.pipeline_mode<synchronous>, transform_indices = @transform_9, window_bounds = array<i64: 64, 64>}, {pipeline_mode = #tpu.pipeline_mode<synchronous>, transform_indices = @transform_10, window_bounds = array<i64: 64, 128>}, {pipeline_mode = #tpu.pipeline_mode<synchronous>, transform_indices = @transform_11, window_bounds = array<i64: 64, 128>}, {pipeline_mode = #tpu.pipeline_mode<synchronous>, transform_indices = @transform_12, window_bounds = array<i64: 32, 128>}, {pipeline_mode = #tpu.pipeline_mode<synchronous>, transform_indices = @transform_13, window_bounds = array<i64: 1, 128>}, {transform_indices = @transform_14, window_bounds = array<i64: 8, 4, 128>}, {transform_indices = @transform_15, window_bounds = array<i64: 1, 4, 32>}, {transform_indices = @transform_16, window_bounds = array<i64: 1, 4, 32>}]} {
    %c0 = arith.constant 0 : index
    %c0_0 = arith.constant 0 : index
    %c0_1 = arith.constant 0 : index
    %0 = vector.load %arg2[%c0, %c0_0, %c0_1] : memref<1x4x32xf32, #tpu.memory_space<vmem>>, vector<1x4x32xf32>
    %1 = vector.shape_cast %0 : vector<1x4x32xf32> to vector<4x32xf32>
    %c0_2 = arith.constant 0 : index
    %c0_3 = arith.constant 0 : index
    %c0_4 = arith.constant 0 : index
    %2 = vector.load %arg3[%c0_2, %c0_3, %c0_4] : memref<1x4x32xf32, #tpu.memory_space<vmem>>, vector<1x4x32xf32>
    %3 = vector.shape_cast %2 : vector<1x4x32xf32> to vector<4x32xf32>
    %c0_5 = arith.constant 0 : index
    %c0_6 = arith.constant 0 : index
    %c0_7 = arith.constant 0 : index
    %4 = vector.load %arg5[%c0_5, %c0_6, %c0_7] : memref<4x16x64xf32, #tpu.memory_space<vmem>>, vector<4x16x64xf32>
    %c0_8 = arith.constant 0 : index
    %c0_9 = arith.constant 0 : index
    %5 = vector.load %arg6[%c0_8, %c0_9] : memref<32x384xf32, #tpu.memory_space<vmem>>, vector<32x384xf32>
    %c0_10 = arith.constant 0 : index
    %c0_11 = arith.constant 0 : index
    %6 = vector.load %arg7[%c0_10, %c0_11] : memref<1x384xf32, #tpu.memory_space<vmem>>, vector<1x384xf32>
    %c0_12 = arith.constant 0 : index
    %c0_13 = arith.constant 0 : index
    %7 = vector.load %arg10[%c0_12, %c0_13] : memref<64x64xf32, #tpu.memory_space<vmem>>, vector<64x64xf32>
    %c0_14 = arith.constant 0 : index
    %c0_15 = arith.constant 0 : index
    %8 = vector.load %arg11[%c0_14, %c0_15] : memref<64x128xf32, #tpu.memory_space<vmem>>, vector<64x128xf32>
    %c0_16 = arith.constant 0 : index
    %c0_17 = arith.constant 0 : index
    %9 = vector.load %arg12[%c0_16, %c0_17] : memref<64x128xf32, #tpu.memory_space<vmem>>, vector<64x128xf32>
    %c0_18 = arith.constant 0 : index
    %c0_19 = arith.constant 0 : index
    %10 = vector.load %arg13[%c0_18, %c0_19] : memref<32x128xf32, #tpu.memory_space<vmem>>, vector<32x128xf32>
    %c0_20 = arith.constant 0 : index
    %c0_21 = arith.constant 0 : index
    %11 = vector.load %arg14[%c0_20, %c0_21] : memref<1x128xf32, #tpu.memory_space<vmem>>, vector<1x128xf32>
    %c0_22 = arith.constant 0 : index
    %c0_23 = arith.constant 0 : index
    %c0_24 = arith.constant 0 : index
    %12 = vector.load %arg4[%c0_22, %c0_23, %c0_24] : memref<4x16x64xf32, #tpu.memory_space<vmem>>, vector<4x16x64xf32>
    %13 = vector.shape_cast %12 : vector<4x16x64xf32> to vector<64x64xf32>
    %c0_25 = arith.constant 0 : index
    %c0_26 = arith.constant 0 : index
    %14 = vector.load %arg8[%c0_25, %c0_26] : memref<64x128xf32, #tpu.memory_space<vmem>>, vector<64x128xf32>
    %cst = arith.constant dense<0.000000e+00> : vector<64x128xf32>
    %15 = tpu.matmul %13, %14, %cst {dimension_numbers = #tpu.dot_dimension_numbers<[1], [0], [0], [1], [0, 0, 1, 1], [], []>} : vector<64x64xf32>, vector<64x128xf32>, vector<64x128xf32> -> vector<64x128xf32>
    %c0_27 = arith.constant 0 : index
    %c0_28 = arith.constant 0 : index
    %16 = vector.load %arg9[%c0_27, %c0_28] : memref<1x128xf32, #tpu.memory_space<vmem>>, vector<1x128xf32>
    %17 = vector.broadcast %16 : vector<1x128xf32> to vector<64x128xf32>
    %18 = arith.addf %15, %17 : vector<64x128xf32>
    %19 = vector.extract_strided_slice %18 {offsets = [0, 0], sizes = [64, 64], strides = [1, 1]} : vector<64x128xf32> to vector<64x64xf32>
    %20 = vector.shape_cast %19 : vector<64x64xf32> to vector<4x16x64xf32>
    %21 = vector.extract_strided_slice %18 {offsets = [0, 64], sizes = [64, 64], strides = [1, 1]} : vector<64x128xf32> to vector<64x64xf32>
    %22 = vector.shape_cast %21 : vector<64x64xf32> to vector<4x16x64xf32>
    %cst_29 = arith.constant dense<0.000000e+00> : vector<4x384xf32>
    %23 = tpu.matmul %1, %5, %cst_29 {dimension_numbers = #tpu.dot_dimension_numbers<[1], [0], [0], [1], [0, 0, 1, 1], [], []>} : vector<4x32xf32>, vector<32x384xf32>, vector<4x384xf32> -> vector<4x384xf32>
    %24 = vector.broadcast %6 : vector<1x384xf32> to vector<4x384xf32>
    %25 = arith.addf %23, %24 : vector<4x384xf32>
    %26 = vector.extract_strided_slice %25 {offsets = [0, 0], sizes = [4, 64], strides = [1, 1]} : vector<4x384xf32> to vector<4x64xf32>
    %27 = vector.extract_strided_slice %25 {offsets = [0, 128], sizes = [4, 128], strides = [1, 1]} : vector<4x384xf32> to vector<4x128xf32>
    %28 = vector.shape_cast %26 : vector<4x64xf32> to vector<4x1x64xf32>
    %29 = vector.broadcast %28 : vector<4x1x64xf32> to vector<4x16x64xf32>
    %30 = arith.mulf %29, %20 : vector<4x16x64xf32>
    %31 = vector.shape_cast %30 : vector<4x16x64xf32> to vector<64x64xf32>
    %cst_30 = arith.constant dense<0.000000e+00> : vector<64x64xf32>
    %32 = tpu.matmul %31, %7, %cst_30 {dimension_numbers = #tpu.dot_dimension_numbers<[1], [0], [0], [1], [0, 0, 1, 1], [], []>} : vector<64x64xf32>, vector<64x64xf32>, vector<64x64xf32> -> vector<64x64xf32>
    %33 = vector.shape_cast %32 : vector<64x64xf32> to vector<4x16x64xf32>
    %34 = arith.addf %33, %4 : vector<4x16x64xf32>
    %cst_31 = arith.constant dense<0xFF800000> : vector<4x64xf32>
    %35 = vector.multi_reduction <maximumf>, %34, %cst_31 [1] : vector<4x16x64xf32> to vector<4x64xf32>
    %36 = vector.shape_cast %35 : vector<4x64xf32> to vector<4x1x64xf32>
    %37 = vector.broadcast %36 : vector<4x1x64xf32> to vector<4x16x64xf32>
    %38 = arith.subf %34, %37 : vector<4x16x64xf32>
    %39 = math.exp %38 : vector<4x16x64xf32>
    %40 = arith.mulf %39, %22 : vector<4x16x64xf32>
    %cst_32 = arith.constant dense<0.000000e+00> : vector<4x64xf32>
    %41 = vector.multi_reduction <add>, %40, %cst_32 [1] : vector<4x16x64xf32> to vector<4x64xf32>
    %cst_33 = arith.constant dense<0.000000e+00> : vector<4x64xf32>
    %42 = vector.multi_reduction <add>, %39, %cst_33 [1] : vector<4x16x64xf32> to vector<4x64xf32>
    %43 = tpu.reciprocal %42 {approx = true} : vector<4x64xf32> -> vector<4x64xf32>
    %44 = arith.mulf %41, %43 : vector<4x64xf32>
    %c0_34 = arith.constant 0 : index
    %c0_35 = arith.constant 0 : index
    %c0_36 = arith.constant 0 : index
    %45 = vector.load %arg1[%c0_34, %c0_35, %c0_36] : memref<8x4x32xf32, #tpu.memory_space<vmem>>, vector<1x4x32xf32>
    %46 = vector.shape_cast %45 : vector<1x4x32xf32> to vector<4x32xf32>
    %cst_37 = arith.constant dense<0.000000e+00> : vector<4x128xf32>
    %47 = tpu.matmul %46, %10, %cst_37 {dimension_numbers = #tpu.dot_dimension_numbers<[1], [0], [0], [1], [0, 0, 1, 1], [], []>} : vector<4x32xf32>, vector<32x128xf32>, vector<4x128xf32> -> vector<4x128xf32>
    %48 = vector.broadcast %11 : vector<1x128xf32> to vector<4x128xf32>
    %49 = arith.addf %47, %48 : vector<4x128xf32>
    %cst_38 = arith.constant dense<0.000000e+00> : vector<4x128xf32>
    %50 = tpu.matmul %44, %8, %cst_38 {dimension_numbers = #tpu.dot_dimension_numbers<[1], [0], [0], [1], [0, 0, 1, 1], [], []>} : vector<4x64xf32>, vector<64x128xf32>, vector<4x128xf32> -> vector<4x128xf32>
    %51 = arith.addf %27, %50 : vector<4x128xf32>
    %52 = arith.addf %51, %49 : vector<4x128xf32>
    %53 = vector.extract_strided_slice %52 {offsets = [0, 0], sizes = [4, 32], strides = [1, 1]} : vector<4x128xf32> to vector<4x32xf32>
    %54 = arith.negf %53 : vector<4x32xf32>
    %55 = math.exp %54 : vector<4x32xf32>
    %cst_39 = arith.constant 1.000000e+00 : f32
    %56 = vector.broadcast %cst_39 : f32 to vector<4x32xf32>
    %57 = arith.addf %56, %55 : vector<4x32xf32>
    %58 = arith.divf %56, %57 : vector<4x32xf32>
    %59 = vector.extract_strided_slice %52 {offsets = [0, 32], sizes = [4, 32], strides = [1, 1]} : vector<4x128xf32> to vector<4x32xf32>
    %60 = arith.negf %59 : vector<4x32xf32>
    %61 = math.exp %60 : vector<4x32xf32>
    %cst_40 = arith.constant 1.000000e+00 : f32
    %62 = vector.broadcast %cst_40 : f32 to vector<4x32xf32>
    %63 = arith.addf %62, %61 : vector<4x32xf32>
    %64 = arith.divf %62, %63 : vector<4x32xf32>
    %65 = vector.extract_strided_slice %52 {offsets = [0, 64], sizes = [4, 32], strides = [1, 1]} : vector<4x128xf32> to vector<4x32xf32>
    %66 = math.tanh %65 : vector<4x32xf32>
    %67 = vector.extract_strided_slice %52 {offsets = [0, 96], sizes = [4, 32], strides = [1, 1]} : vector<4x128xf32> to vector<4x32xf32>
    %68 = arith.negf %67 : vector<4x32xf32>
    %69 = math.exp %68 : vector<4x32xf32>
    %cst_41 = arith.constant 1.000000e+00 : f32
    %70 = vector.broadcast %cst_41 : f32 to vector<4x32xf32>
    %71 = arith.addf %70, %69 : vector<4x32xf32>
    %72 = arith.divf %70, %71 : vector<4x32xf32>
    %73 = arith.mulf %64, %3 : vector<4x32xf32>
    %74 = arith.mulf %58, %66 : vector<4x32xf32>
    %75 = arith.addf %73, %74 : vector<4x32xf32>
    %76 = math.tanh %75 : vector<4x32xf32>
    %77 = arith.mulf %72, %76 : vector<4x32xf32>
    %cst_42 = arith.constant dense<0.000000e+00> : vector<4x384xf32>
    %78 = tpu.matmul %77, %5, %cst_42 {dimension_numbers = #tpu.dot_dimension_numbers<[1], [0], [0], [1], [0, 0, 1, 1], [], []>} : vector<4x32xf32>, vector<32x384xf32>, vector<4x384xf32> -> vector<4x384xf32>
    %79 = vector.broadcast %6 : vector<1x384xf32> to vector<4x384xf32>
    %80 = arith.addf %78, %79 : vector<4x384xf32>
    %81 = vector.extract_strided_slice %80 {offsets = [0, 0], sizes = [4, 64], strides = [1, 1]} : vector<4x384xf32> to vector<4x64xf32>
    %82 = vector.extract_strided_slice %80 {offsets = [0, 128], sizes = [4, 128], strides = [1, 1]} : vector<4x384xf32> to vector<4x128xf32>
    %83 = vector.extract_strided_slice %80 {offsets = [0, 256], sizes = [4, 128], strides = [1, 1]} : vector<4x384xf32> to vector<4x128xf32>
    %84 = vector.shape_cast %81 : vector<4x64xf32> to vector<4x1x64xf32>
    %85 = vector.broadcast %84 : vector<4x1x64xf32> to vector<4x16x64xf32>
    %86 = arith.mulf %85, %20 : vector<4x16x64xf32>
    %87 = vector.shape_cast %86 : vector<4x16x64xf32> to vector<64x64xf32>
    %cst_43 = arith.constant dense<0.000000e+00> : vector<64x64xf32>
    %88 = tpu.matmul %87, %7, %cst_43 {dimension_numbers = #tpu.dot_dimension_numbers<[1], [0], [0], [1], [0, 0, 1, 1], [], []>} : vector<64x64xf32>, vector<64x64xf32>, vector<64x64xf32> -> vector<64x64xf32>
    %89 = vector.shape_cast %88 : vector<64x64xf32> to vector<4x16x64xf32>
    %90 = arith.addf %89, %4 : vector<4x16x64xf32>
    %cst_44 = arith.constant dense<0xFF800000> : vector<4x64xf32>
    %91 = vector.multi_reduction <maximumf>, %90, %cst_44 [1] : vector<4x16x64xf32> to vector<4x64xf32>
    %92 = vector.shape_cast %91 : vector<4x64xf32> to vector<4x1x64xf32>
    %93 = vector.broadcast %92 : vector<4x1x64xf32> to vector<4x16x64xf32>
    %94 = arith.subf %90, %93 : vector<4x16x64xf32>
    %95 = math.exp %94 : vector<4x16x64xf32>
    %96 = arith.mulf %95, %22 : vector<4x16x64xf32>
    %cst_45 = arith.constant dense<0.000000e+00> : vector<4x64xf32>
    %97 = vector.multi_reduction <add>, %96, %cst_45 [1] : vector<4x16x64xf32> to vector<4x64xf32>
    %cst_46 = arith.constant dense<0.000000e+00> : vector<4x64xf32>
    %98 = vector.multi_reduction <add>, %95, %cst_46 [1] : vector<4x16x64xf32> to vector<4x64xf32>
    %99 = tpu.reciprocal %98 {approx = true} : vector<4x64xf32> -> vector<4x64xf32>
    %100 = arith.mulf %97, %99 : vector<4x64xf32>
    %cst_47 = arith.constant dense<0.000000e+00> : vector<4x128xf32>
    %101 = tpu.matmul %100, %9, %cst_47 {dimension_numbers = #tpu.dot_dimension_numbers<[1], [0], [0], [1], [0, 0, 1, 1], [], []>} : vector<4x64xf32>, vector<64x128xf32>, vector<4x128xf32> -> vector<4x128xf32>
    %102 = arith.addf %83, %101 : vector<4x128xf32>
    %c0_48 = arith.constant 0 : index
    %c0_49 = arith.constant 0 : index
    %c0_50 = arith.constant 0 : index
    %103 = vector.load %arg15[%c0_48, %c0_49, %c0_50] : memref<8x4x128xf32, #tpu.memory_space<vmem>>, vector<1x4x128xf32>
    %104 = vector.shape_cast %103 : vector<1x4x128xf32> to vector<4x128xf32>
    %105 = vector.shape_cast %102 : vector<4x128xf32> to vector<1x4x128xf32>
    tpu.vector_store %arg15[%c0_48, %c0_49, %c0_50], %105 {strides = array<i32>} : memref<8x4x128xf32, #tpu.memory_space<vmem>>, vector<1x4x128xf32>,
    %c1 = arith.constant 1 : index
    %c0_51 = arith.constant 0 : index
    %c0_52 = arith.constant 0 : index
    %106 = vector.load %arg1[%c1, %c0_51, %c0_52] : memref<8x4x32xf32, #tpu.memory_space<vmem>>, vector<1x4x32xf32>
    %107 = vector.shape_cast %106 : vector<1x4x32xf32> to vector<4x32xf32>
    %cst_53 = arith.constant dense<0.000000e+00> : vector<4x128xf32>
    %108 = tpu.matmul %107, %10, %cst_53 {dimension_numbers = #tpu.dot_dimension_numbers<[1], [0], [0], [1], [0, 0, 1, 1], [], []>} : vector<4x32xf32>, vector<32x128xf32>, vector<4x128xf32> -> vector<4x128xf32>
    %109 = vector.broadcast %11 : vector<1x128xf32> to vector<4x128xf32>
    %110 = arith.addf %108, %109 : vector<4x128xf32>
    %cst_54 = arith.constant dense<0.000000e+00> : vector<4x128xf32>
    %111 = tpu.matmul %100, %8, %cst_54 {dimension_numbers = #tpu.dot_dimension_numbers<[1], [0], [0], [1], [0, 0, 1, 1], [], []>} : vector<4x64xf32>, vector<64x128xf32>, vector<4x128xf32> -> vector<4x128xf32>
    %112 = arith.addf %82, %111 : vector<4x128xf32>
    %113 = arith.addf %112, %110 : vector<4x128xf32>
    %114 = vector.extract_strided_slice %113 {offsets = [0, 0], sizes = [4, 32], strides = [1, 1]} : vector<4x128xf32> to vector<4x32xf32>
    %115 = arith.negf %114 : vector<4x32xf32>
    %116 = math.exp %115 : vector<4x32xf32>
    %cst_55 = arith.constant 1.000000e+00 : f32
    %117 = vector.broadcast %cst_55 : f32 to vector<4x32xf32>
    %118 = arith.addf %117, %116 : vector<4x32xf32>
    %119 = arith.divf %117, %118 : vector<4x32xf32>
    %120 = vector.extract_strided_slice %113 {offsets = [0, 32], sizes = [4, 32], strides = [1, 1]} : vector<4x128xf32> to vector<4x32xf32>
    %121 = arith.negf %120 : vector<4x32xf32>
    %122 = math.exp %121 : vector<4x32xf32>
    %cst_56 = arith.constant 1.000000e+00 : f32
    %123 = vector.broadcast %cst_56 : f32 to vector<4x32xf32>
    %124 = arith.addf %123, %122 : vector<4x32xf32>
    %125 = arith.divf %123, %124 : vector<4x32xf32>
    %126 = vector.extract_strided_slice %113 {offsets = [0, 64], sizes = [4, 32], strides = [1, 1]} : vector<4x128xf32> to vector<4x32xf32>
    %127 = math.tanh %126 : vector<4x32xf32>
    %128 = vector.extract_strided_slice %113 {offsets = [0, 96], sizes = [4, 32], strides = [1, 1]} : vector<4x128xf32> to vector<4x32xf32>
    %129 = arith.negf %128 : vector<4x32xf32>
    %130 = math.exp %129 : vector<4x32xf32>
    %cst_57 = arith.constant 1.000000e+00 : f32
    %131 = vector.broadcast %cst_57 : f32 to vector<4x32xf32>
    %132 = arith.addf %131, %130 : vector<4x32xf32>
    %133 = arith.divf %131, %132 : vector<4x32xf32>
    %134 = arith.mulf %125, %75 : vector<4x32xf32>
    %135 = arith.mulf %119, %127 : vector<4x32xf32>
    %136 = arith.addf %134, %135 : vector<4x32xf32>
    %137 = math.tanh %136 : vector<4x32xf32>
    %138 = arith.mulf %133, %137 : vector<4x32xf32>
    %cst_58 = arith.constant dense<0.000000e+00> : vector<4x384xf32>
    %139 = tpu.matmul %138, %5, %cst_58 {dimension_numbers = #tpu.dot_dimension_numbers<[1], [0], [0], [1], [0, 0, 1, 1], [], []>} : vector<4x32xf32>, vector<32x384xf32>, vector<4x384xf32> -> vector<4x384xf32>
    %140 = vector.broadcast %6 : vector<1x384xf32> to vector<4x384xf32>
    %141 = arith.addf %139, %140 : vector<4x384xf32>
    %142 = vector.extract_strided_slice %141 {offsets = [0, 0], sizes = [4, 64], strides = [1, 1]} : vector<4x384xf32> to vector<4x64xf32>
    %143 = vector.extract_strided_slice %141 {offsets = [0, 128], sizes = [4, 128], strides = [1, 1]} : vector<4x384xf32> to vector<4x128xf32>
    %144 = vector.extract_strided_slice %141 {offsets = [0, 256], sizes = [4, 128], strides = [1, 1]} : vector<4x384xf32> to vector<4x128xf32>
    %145 = vector.shape_cast %142 : vector<4x64xf32> to vector<4x1x64xf32>
    %146 = vector.broadcast %145 : vector<4x1x64xf32> to vector<4x16x64xf32>
    %147 = arith.mulf %146, %20 : vector<4x16x64xf32>
    %148 = vector.shape_cast %147 : vector<4x16x64xf32> to vector<64x64xf32>
    %cst_59 = arith.constant dense<0.000000e+00> : vector<64x64xf32>
    %149 = tpu.matmul %148, %7, %cst_59 {dimension_numbers = #tpu.dot_dimension_numbers<[1], [0], [0], [1], [0, 0, 1, 1], [], []>} : vector<64x64xf32>, vector<64x64xf32>, vector<64x64xf32> -> vector<64x64xf32>
    %150 = vector.shape_cast %149 : vector<64x64xf32> to vector<4x16x64xf32>
    %151 = arith.addf %150, %4 : vector<4x16x64xf32>
    %cst_60 = arith.constant dense<0xFF800000> : vector<4x64xf32>
    %152 = vector.multi_reduction <maximumf>, %151, %cst_60 [1] : vector<4x16x64xf32> to vector<4x64xf32>
    %153 = vector.shape_cast %152 : vector<4x64xf32> to vector<4x1x64xf32>
    %154 = vector.broadcast %153 : vector<4x1x64xf32> to vector<4x16x64xf32>
    %155 = arith.subf %151, %154 : vector<4x16x64xf32>
    %156 = math.exp %155 : vector<4x16x64xf32>
    %157 = arith.mulf %156, %22 : vector<4x16x64xf32>
    %cst_61 = arith.constant dense<0.000000e+00> : vector<4x64xf32>
    %158 = vector.multi_reduction <add>, %157, %cst_61 [1] : vector<4x16x64xf32> to vector<4x64xf32>
    %cst_62 = arith.constant dense<0.000000e+00> : vector<4x64xf32>
    %159 = vector.multi_reduction <add>, %156, %cst_62 [1] : vector<4x16x64xf32> to vector<4x64xf32>
    %160 = tpu.reciprocal %159 {approx = true} : vector<4x64xf32> -> vector<4x64xf32>
    %161 = arith.mulf %158, %160 : vector<4x64xf32>
    %cst_63 = arith.constant dense<0.000000e+00> : vector<4x128xf32>
    %162 = tpu.matmul %161, %9, %cst_63 {dimension_numbers = #tpu.dot_dimension_numbers<[1], [0], [0], [1], [0, 0, 1, 1], [], []>} : vector<4x64xf32>, vector<64x128xf32>, vector<4x128xf32> -> vector<4x128xf32>
    %163 = arith.addf %144, %162 : vector<4x128xf32>
    %c1_64 = arith.constant 1 : index
    %c0_65 = arith.constant 0 : index
    %c0_66 = arith.constant 0 : index
    %164 = vector.load %arg15[%c1_64, %c0_65, %c0_66] : memref<8x4x128xf32, #tpu.memory_space<vmem>>, vector<1x4x128xf32>
    %165 = vector.shape_cast %164 : vector<1x4x128xf32> to vector<4x128xf32>
    %166 = vector.shape_cast %163 : vector<4x128xf32> to vector<1x4x128xf32>
    tpu.vector_store %arg15[%c1_64, %c0_65, %c0_66], %166 {strides = array<i32>} : memref<8x4x128xf32, #tpu.memory_space<vmem>>, vector<1x4x128xf32>,
    %c2 = arith.constant 2 : index
    %c0_67 = arith.constant 0 : index
    %c0_68 = arith.constant 0 : index
    %167 = vector.load %arg1[%c2, %c0_67, %c0_68] : memref<8x4x32xf32, #tpu.memory_space<vmem>>, vector<1x4x32xf32>
    %168 = vector.shape_cast %167 : vector<1x4x32xf32> to vector<4x32xf32>
    %cst_69 = arith.constant dense<0.000000e+00> : vector<4x128xf32>
    %169 = tpu.matmul %168, %10, %cst_69 {dimension_numbers = #tpu.dot_dimension_numbers<[1], [0], [0], [1], [0, 0, 1, 1], [], []>} : vector<4x32xf32>, vector<32x128xf32>, vector<4x128xf32> -> vector<4x128xf32>
    %170 = vector.broadcast %11 : vector<1x128xf32> to vector<4x128xf32>
    %171 = arith.addf %169, %170 : vector<4x128xf32>
    %cst_70 = arith.constant dense<0.000000e+00> : vector<4x128xf32>
    %172 = tpu.matmul %161, %8, %cst_70 {dimension_numbers = #tpu.dot_dimension_numbers<[1], [0], [0], [1], [0, 0, 1, 1], [], []>} : vector<4x64xf32>, vector<64x128xf32>, vector<4x128xf32> -> vector<4x128xf32>
    %173 = arith.addf %143, %172 : vector<4x128xf32>
    %174 = arith.addf %173, %171 : vector<4x128xf32>
    %175 = vector.extract_strided_slice %174 {offsets = [0, 0], sizes = [4, 32], strides = [1, 1]} : vector<4x128xf32> to vector<4x32xf32>
    %176 = arith.negf %175 : vector<4x32xf32>
    %177 = math.exp %176 : vector<4x32xf32>
    %cst_71 = arith.constant 1.000000e+00 : f32
    %178 = vector.broadcast %cst_71 : f32 to vector<4x32xf32>
    %179 = arith.addf %178, %177 : vector<4x32xf32>
    %180 = arith.divf %178, %179 : vector<4x32xf32>
    %181 = vector.extract_strided_slice %174 {offsets = [0, 32], sizes = [4, 32], strides = [1, 1]} : vector<4x128xf32> to vector<4x32xf32>
    %182 = arith.negf %181 : vector<4x32xf32>
    %183 = math.exp %182 : vector<4x32xf32>
    %cst_72 = arith.constant 1.000000e+00 : f32
    %184 = vector.broadcast %cst_72 : f32 to vector<4x32xf32>
    %185 = arith.addf %184, %183 : vector<4x32xf32>
    %186 = arith.divf %184, %185 : vector<4x32xf32>
    %187 = vector.extract_strided_slice %174 {offsets = [0, 64], sizes = [4, 32], strides = [1, 1]} : vector<4x128xf32> to vector<4x32xf32>
    %188 = math.tanh %187 : vector<4x32xf32>
    %189 = vector.extract_strided_slice %174 {offsets = [0, 96], sizes = [4, 32], strides = [1, 1]} : vector<4x128xf32> to vector<4x32xf32>
    %190 = arith.negf %189 : vector<4x32xf32>
    %191 = math.exp %190 : vector<4x32xf32>
    %cst_73 = arith.constant 1.000000e+00 : f32
    %192 = vector.broadcast %cst_73 : f32 to vector<4x32xf32>
    %193 = arith.addf %192, %191 : vector<4x32xf32>
    %194 = arith.divf %192, %193 : vector<4x32xf32>
    %195 = arith.mulf %186, %136 : vector<4x32xf32>
    %196 = arith.mulf %180, %188 : vector<4x32xf32>
    %197 = arith.addf %195, %196 : vector<4x32xf32>
    %198 = math.tanh %197 : vector<4x32xf32>
    %199 = arith.mulf %194, %198 : vector<4x32xf32>
    %cst_74 = arith.constant dense<0.000000e+00> : vector<4x384xf32>
    %200 = tpu.matmul %199, %5, %cst_74 {dimension_numbers = #tpu.dot_dimension_numbers<[1], [0], [0], [1], [0, 0, 1, 1], [], []>} : vector<4x32xf32>, vector<32x384xf32>, vector<4x384xf32> -> vector<4x384xf32>
    %201 = vector.broadcast %6 : vector<1x384xf32> to vector<4x384xf32>
    %202 = arith.addf %200, %201 : vector<4x384xf32>
    %203 = vector.extract_strided_slice %202 {offsets = [0, 0], sizes = [4, 64], strides = [1, 1]} : vector<4x384xf32> to vector<4x64xf32>
    %204 = vector.extract_strided_slice %202 {offsets = [0, 128], sizes = [4, 128], strides = [1, 1]} : vector<4x384xf32> to vector<4x128xf32>
    %205 = vector.extract_strided_slice %202 {offsets = [0, 256], sizes = [4, 128], strides = [1, 1]} : vector<4x384xf32> to vector<4x128xf32>
    %206 = vector.shape_cast %203 : vector<4x64xf32> to vector<4x1x64xf32>
    %207 = vector.broadcast %206 : vector<4x1x64xf32> to vector<4x16x64xf32>
    %208 = arith.mulf %207, %20 : vector<4x16x64xf32>
    %209 = vector.shape_cast %208 : vector<4x16x64xf32> to vector<64x64xf32>
    %cst_75 = arith.constant dense<0.000000e+00> : vector<64x64xf32>
    %210 = tpu.matmul %209, %7, %cst_75 {dimension_numbers = #tpu.dot_dimension_numbers<[1], [0], [0], [1], [0, 0, 1, 1], [], []>} : vector<64x64xf32>, vector<64x64xf32>, vector<64x64xf32> -> vector<64x64xf32>
    %211 = vector.shape_cast %210 : vector<64x64xf32> to vector<4x16x64xf32>
    %212 = arith.addf %211, %4 : vector<4x16x64xf32>
    %cst_76 = arith.constant dense<0xFF800000> : vector<4x64xf32>
    %213 = vector.multi_reduction <maximumf>, %212, %cst_76 [1] : vector<4x16x64xf32> to vector<4x64xf32>
    %214 = vector.shape_cast %213 : vector<4x64xf32> to vector<4x1x64xf32>
    %215 = vector.broadcast %214 : vector<4x1x64xf32> to vector<4x16x64xf32>
    %216 = arith.subf %212, %215 : vector<4x16x64xf32>
    %217 = math.exp %216 : vector<4x16x64xf32>
    %218 = arith.mulf %217, %22 : vector<4x16x64xf32>
    %cst_77 = arith.constant dense<0.000000e+00> : vector<4x64xf32>
    %219 = vector.multi_reduction <add>, %218, %cst_77 [1] : vector<4x16x64xf32> to vector<4x64xf32>
    %cst_78 = arith.constant dense<0.000000e+00> : vector<4x64xf32>
    %220 = vector.multi_reduction <add>, %217, %cst_78 [1] : vector<4x16x64xf32> to vector<4x64xf32>
    %221 = tpu.reciprocal %220 {approx = true} : vector<4x64xf32> -> vector<4x64xf32>
    %222 = arith.mulf %219, %221 : vector<4x64xf32>
    %cst_79 = arith.constant dense<0.000000e+00> : vector<4x128xf32>
    %223 = tpu.matmul %222, %9, %cst_79 {dimension_numbers = #tpu.dot_dimension_numbers<[1], [0], [0], [1], [0, 0, 1, 1], [], []>} : vector<4x64xf32>, vector<64x128xf32>, vector<4x128xf32> -> vector<4x128xf32>
    %224 = arith.addf %205, %223 : vector<4x128xf32>
    %c2_80 = arith.constant 2 : index
    %c0_81 = arith.constant 0 : index
    %c0_82 = arith.constant 0 : index
    %225 = vector.load %arg15[%c2_80, %c0_81, %c0_82] : memref<8x4x128xf32, #tpu.memory_space<vmem>>, vector<1x4x128xf32>
    %226 = vector.shape_cast %225 : vector<1x4x128xf32> to vector<4x128xf32>
    %227 = vector.shape_cast %224 : vector<4x128xf32> to vector<1x4x128xf32>
    tpu.vector_store %arg15[%c2_80, %c0_81, %c0_82], %227 {strides = array<i32>} : memref<8x4x128xf32, #tpu.memory_space<vmem>>, vector<1x4x128xf32>,
    %c3 = arith.constant 3 : index
    %c0_83 = arith.constant 0 : index
    %c0_84 = arith.constant 0 : index
    %228 = vector.load %arg1[%c3, %c0_83, %c0_84] : memref<8x4x32xf32, #tpu.memory_space<vmem>>, vector<1x4x32xf32>
    %229 = vector.shape_cast %228 : vector<1x4x32xf32> to vector<4x32xf32>
    %cst_85 = arith.constant dense<0.000000e+00> : vector<4x128xf32>
    %230 = tpu.matmul %229, %10, %cst_85 {dimension_numbers = #tpu.dot_dimension_numbers<[1], [0], [0], [1], [0, 0, 1, 1], [], []>} : vector<4x32xf32>, vector<32x128xf32>, vector<4x128xf32> -> vector<4x128xf32>
    %231 = vector.broadcast %11 : vector<1x128xf32> to vector<4x128xf32>
    %232 = arith.addf %230, %231 : vector<4x128xf32>
    %cst_86 = arith.constant dense<0.000000e+00> : vector<4x128xf32>
    %233 = tpu.matmul %222, %8, %cst_86 {dimension_numbers = #tpu.dot_dimension_numbers<[1], [0], [0], [1], [0, 0, 1, 1], [], []>} : vector<4x64xf32>, vector<64x128xf32>, vector<4x128xf32> -> vector<4x128xf32>
    %234 = arith.addf %204, %233 : vector<4x128xf32>
    %235 = arith.addf %234, %232 : vector<4x128xf32>
    %236 = vector.extract_strided_slice %235 {offsets = [0, 0], sizes = [4, 32], strides = [1, 1]} : vector<4x128xf32> to vector<4x32xf32>
    %237 = arith.negf %236 : vector<4x32xf32>
    %238 = math.exp %237 : vector<4x32xf32>
    %cst_87 = arith.constant 1.000000e+00 : f32
    %239 = vector.broadcast %cst_87 : f32 to vector<4x32xf32>
    %240 = arith.addf %239, %238 : vector<4x32xf32>
    %241 = arith.divf %239, %240 : vector<4x32xf32>
    %242 = vector.extract_strided_slice %235 {offsets = [0, 32], sizes = [4, 32], strides = [1, 1]} : vector<4x128xf32> to vector<4x32xf32>
    %243 = arith.negf %242 : vector<4x32xf32>
    %244 = math.exp %243 : vector<4x32xf32>
    %cst_88 = arith.constant 1.000000e+00 : f32
    %245 = vector.broadcast %cst_88 : f32 to vector<4x32xf32>
    %246 = arith.addf %245, %244 : vector<4x32xf32>
    %247 = arith.divf %245, %246 : vector<4x32xf32>
    %248 = vector.extract_strided_slice %235 {offsets = [0, 64], sizes = [4, 32], strides = [1, 1]} : vector<4x128xf32> to vector<4x32xf32>
    %249 = math.tanh %248 : vector<4x32xf32>
    %250 = vector.extract_strided_slice %235 {offsets = [0, 96], sizes = [4, 32], strides = [1, 1]} : vector<4x128xf32> to vector<4x32xf32>
    %251 = arith.negf %250 : vector<4x32xf32>
    %252 = math.exp %251 : vector<4x32xf32>
    %cst_89 = arith.constant 1.000000e+00 : f32
    %253 = vector.broadcast %cst_89 : f32 to vector<4x32xf32>
    %254 = arith.addf %253, %252 : vector<4x32xf32>
    %255 = arith.divf %253, %254 : vector<4x32xf32>
    %256 = arith.mulf %247, %197 : vector<4x32xf32>
    %257 = arith.mulf %241, %249 : vector<4x32xf32>
    %258 = arith.addf %256, %257 : vector<4x32xf32>
    %259 = math.tanh %258 : vector<4x32xf32>
    %260 = arith.mulf %255, %259 : vector<4x32xf32>
    %cst_90 = arith.constant dense<0.000000e+00> : vector<4x384xf32>
    %261 = tpu.matmul %260, %5, %cst_90 {dimension_numbers = #tpu.dot_dimension_numbers<[1], [0], [0], [1], [0, 0, 1, 1], [], []>} : vector<4x32xf32>, vector<32x384xf32>, vector<4x384xf32> -> vector<4x384xf32>
    %262 = vector.broadcast %6 : vector<1x384xf32> to vector<4x384xf32>
    %263 = arith.addf %261, %262 : vector<4x384xf32>
    %264 = vector.extract_strided_slice %263 {offsets = [0, 0], sizes = [4, 64], strides = [1, 1]} : vector<4x384xf32> to vector<4x64xf32>
    %265 = vector.extract_strided_slice %263 {offsets = [0, 128], sizes = [4, 128], strides = [1, 1]} : vector<4x384xf32> to vector<4x128xf32>
    %266 = vector.extract_strided_slice %263 {offsets = [0, 256], sizes = [4, 128], strides = [1, 1]} : vector<4x384xf32> to vector<4x128xf32>
    %267 = vector.shape_cast %264 : vector<4x64xf32> to vector<4x1x64xf32>
    %268 = vector.broadcast %267 : vector<4x1x64xf32> to vector<4x16x64xf32>
    %269 = arith.mulf %268, %20 : vector<4x16x64xf32>
    %270 = vector.shape_cast %269 : vector<4x16x64xf32> to vector<64x64xf32>
    %cst_91 = arith.constant dense<0.000000e+00> : vector<64x64xf32>
    %271 = tpu.matmul %270, %7, %cst_91 {dimension_numbers = #tpu.dot_dimension_numbers<[1], [0], [0], [1], [0, 0, 1, 1], [], []>} : vector<64x64xf32>, vector<64x64xf32>, vector<64x64xf32> -> vector<64x64xf32>
    %272 = vector.shape_cast %271 : vector<64x64xf32> to vector<4x16x64xf32>
    %273 = arith.addf %272, %4 : vector<4x16x64xf32>
    %cst_92 = arith.constant dense<0xFF800000> : vector<4x64xf32>
    %274 = vector.multi_reduction <maximumf>, %273, %cst_92 [1] : vector<4x16x64xf32> to vector<4x64xf32>
    %275 = vector.shape_cast %274 : vector<4x64xf32> to vector<4x1x64xf32>
    %276 = vector.broadcast %275 : vector<4x1x64xf32> to vector<4x16x64xf32>
    %277 = arith.subf %273, %276 : vector<4x16x64xf32>
    %278 = math.exp %277 : vector<4x16x64xf32>
    %279 = arith.mulf %278, %22 : vector<4x16x64xf32>
    %cst_93 = arith.constant dense<0.000000e+00> : vector<4x64xf32>
    %280 = vector.multi_reduction <add>, %279, %cst_93 [1] : vector<4x16x64xf32> to vector<4x64xf32>
    %cst_94 = arith.constant dense<0.000000e+00> : vector<4x64xf32>
    %281 = vector.multi_reduction <add>, %278, %cst_94 [1] : vector<4x16x64xf32> to vector<4x64xf32>
    %282 = tpu.reciprocal %281 {approx = true} : vector<4x64xf32> -> vector<4x64xf32>
    %283 = arith.mulf %280, %282 : vector<4x64xf32>
    %cst_95 = arith.constant dense<0.000000e+00> : vector<4x128xf32>
    %284 = tpu.matmul %283, %9, %cst_95 {dimension_numbers = #tpu.dot_dimension_numbers<[1], [0], [0], [1], [0, 0, 1, 1], [], []>} : vector<4x64xf32>, vector<64x128xf32>, vector<4x128xf32> -> vector<4x128xf32>
    %285 = arith.addf %266, %284 : vector<4x128xf32>
    %c3_96 = arith.constant 3 : index
    %c0_97 = arith.constant 0 : index
    %c0_98 = arith.constant 0 : index
    %286 = vector.load %arg15[%c3_96, %c0_97, %c0_98] : memref<8x4x128xf32, #tpu.memory_space<vmem>>, vector<1x4x128xf32>
    %287 = vector.shape_cast %286 : vector<1x4x128xf32> to vector<4x128xf32>
    %288 = vector.shape_cast %285 : vector<4x128xf32> to vector<1x4x128xf32>
    tpu.vector_store %arg15[%c3_96, %c0_97, %c0_98], %288 {strides = array<i32>} : memref<8x4x128xf32, #tpu.memory_space<vmem>>, vector<1x4x128xf32>,
    %c4 = arith.constant 4 : index
    %c0_99 = arith.constant 0 : index
    %c0_100 = arith.constant 0 : index
    %289 = vector.load %arg1[%c4, %c0_99, %c0_100] : memref<8x4x32xf32, #tpu.memory_space<vmem>>, vector<1x4x32xf32>
    %290 = vector.shape_cast %289 : vector<1x4x32xf32> to vector<4x32xf32>
    %cst_101 = arith.constant dense<0.000000e+00> : vector<4x128xf32>
    %291 = tpu.matmul %290, %10, %cst_101 {dimension_numbers = #tpu.dot_dimension_numbers<[1], [0], [0], [1], [0, 0, 1, 1], [], []>} : vector<4x32xf32>, vector<32x128xf32>, vector<4x128xf32> -> vector<4x128xf32>
    %292 = vector.broadcast %11 : vector<1x128xf32> to vector<4x128xf32>
    %293 = arith.addf %291, %292 : vector<4x128xf32>
    %cst_102 = arith.constant dense<0.000000e+00> : vector<4x128xf32>
    %294 = tpu.matmul %283, %8, %cst_102 {dimension_numbers = #tpu.dot_dimension_numbers<[1], [0], [0], [1], [0, 0, 1, 1], [], []>} : vector<4x64xf32>, vector<64x128xf32>, vector<4x128xf32> -> vector<4x128xf32>
    %295 = arith.addf %265, %294 : vector<4x128xf32>
    %296 = arith.addf %295, %293 : vector<4x128xf32>
    %297 = vector.extract_strided_slice %296 {offsets = [0, 0], sizes = [4, 32], strides = [1, 1]} : vector<4x128xf32> to vector<4x32xf32>
    %298 = arith.negf %297 : vector<4x32xf32>
    %299 = math.exp %298 : vector<4x32xf32>
    %cst_103 = arith.constant 1.000000e+00 : f32
    %300 = vector.broadcast %cst_103 : f32 to vector<4x32xf32>
    %301 = arith.addf %300, %299 : vector<4x32xf32>
    %302 = arith.divf %300, %301 : vector<4x32xf32>
    %303 = vector.extract_strided_slice %296 {offsets = [0, 32], sizes = [4, 32], strides = [1, 1]} : vector<4x128xf32> to vector<4x32xf32>
    %304 = arith.negf %303 : vector<4x32xf32>
    %305 = math.exp %304 : vector<4x32xf32>
    %cst_104 = arith.constant 1.000000e+00 : f32
    %306 = vector.broadcast %cst_104 : f32 to vector<4x32xf32>
    %307 = arith.addf %306, %305 : vector<4x32xf32>
    %308 = arith.divf %306, %307 : vector<4x32xf32>
    %309 = vector.extract_strided_slice %296 {offsets = [0, 64], sizes = [4, 32], strides = [1, 1]} : vector<4x128xf32> to vector<4x32xf32>
    %310 = math.tanh %309 : vector<4x32xf32>
    %311 = vector.extract_strided_slice %296 {offsets = [0, 96], sizes = [4, 32], strides = [1, 1]} : vector<4x128xf32> to vector<4x32xf32>
    %312 = arith.negf %311 : vector<4x32xf32>
    %313 = math.exp %312 : vector<4x32xf32>
    %cst_105 = arith.constant 1.000000e+00 : f32
    %314 = vector.broadcast %cst_105 : f32 to vector<4x32xf32>
    %315 = arith.addf %314, %313 : vector<4x32xf32>
    %316 = arith.divf %314, %315 : vector<4x32xf32>
    %317 = arith.mulf %308, %258 : vector<4x32xf32>
    %318 = arith.mulf %302, %310 : vector<4x32xf32>
    %319 = arith.addf %317, %318 : vector<4x32xf32>
    %320 = math.tanh %319 : vector<4x32xf32>
    %321 = arith.mulf %316, %320 : vector<4x32xf32>
    %cst_106 = arith.constant dense<0.000000e+00> : vector<4x384xf32>
    %322 = tpu.matmul %321, %5, %cst_106 {dimension_numbers = #tpu.dot_dimension_numbers<[1], [0], [0], [1], [0, 0, 1, 1], [], []>} : vector<4x32xf32>, vector<32x384xf32>, vector<4x384xf32> -> vector<4x384xf32>
    %323 = vector.broadcast %6 : vector<1x384xf32> to vector<4x384xf32>
    %324 = arith.addf %322, %323 : vector<4x384xf32>
    %325 = vector.extract_strided_slice %324 {offsets = [0, 0], sizes = [4, 64], strides = [1, 1]} : vector<4x384xf32> to vector<4x64xf32>
    %326 = vector.extract_strided_slice %324 {offsets = [0, 128], sizes = [4, 128], strides = [1, 1]} : vector<4x384xf32> to vector<4x128xf32>
    %327 = vector.extract_strided_slice %324 {offsets = [0, 256], sizes = [4, 128], strides = [1, 1]} : vector<4x384xf32> to vector<4x128xf32>
    %328 = vector.shape_cast %325 : vector<4x64xf32> to vector<4x1x64xf32>
    %329 = vector.broadcast %328 : vector<4x1x64xf32> to vector<4x16x64xf32>
    %330 = arith.mulf %329, %20 : vector<4x16x64xf32>
    %331 = vector.shape_cast %330 : vector<4x16x64xf32> to vector<64x64xf32>
    %cst_107 = arith.constant dense<0.000000e+00> : vector<64x64xf32>
    %332 = tpu.matmul %331, %7, %cst_107 {dimension_numbers = #tpu.dot_dimension_numbers<[1], [0], [0], [1], [0, 0, 1, 1], [], []>} : vector<64x64xf32>, vector<64x64xf32>, vector<64x64xf32> -> vector<64x64xf32>
    %333 = vector.shape_cast %332 : vector<64x64xf32> to vector<4x16x64xf32>
    %334 = arith.addf %333, %4 : vector<4x16x64xf32>
    %cst_108 = arith.constant dense<0xFF800000> : vector<4x64xf32>
    %335 = vector.multi_reduction <maximumf>, %334, %cst_108 [1] : vector<4x16x64xf32> to vector<4x64xf32>
    %336 = vector.shape_cast %335 : vector<4x64xf32> to vector<4x1x64xf32>
    %337 = vector.broadcast %336 : vector<4x1x64xf32> to vector<4x16x64xf32>
    %338 = arith.subf %334, %337 : vector<4x16x64xf32>
    %339 = math.exp %338 : vector<4x16x64xf32>
    %340 = arith.mulf %339, %22 : vector<4x16x64xf32>
    %cst_109 = arith.constant dense<0.000000e+00> : vector<4x64xf32>
    %341 = vector.multi_reduction <add>, %340, %cst_109 [1] : vector<4x16x64xf32> to vector<4x64xf32>
    %cst_110 = arith.constant dense<0.000000e+00> : vector<4x64xf32>
    %342 = vector.multi_reduction <add>, %339, %cst_110 [1] : vector<4x16x64xf32> to vector<4x64xf32>
    %343 = tpu.reciprocal %342 {approx = true} : vector<4x64xf32> -> vector<4x64xf32>
    %344 = arith.mulf %341, %343 : vector<4x64xf32>
    %cst_111 = arith.constant dense<0.000000e+00> : vector<4x128xf32>
    %345 = tpu.matmul %344, %9, %cst_111 {dimension_numbers = #tpu.dot_dimension_numbers<[1], [0], [0], [1], [0, 0, 1, 1], [], []>} : vector<4x64xf32>, vector<64x128xf32>, vector<4x128xf32> -> vector<4x128xf32>
    %346 = arith.addf %327, %345 : vector<4x128xf32>
    %c4_112 = arith.constant 4 : index
    %c0_113 = arith.constant 0 : index
    %c0_114 = arith.constant 0 : index
    %347 = vector.load %arg15[%c4_112, %c0_113, %c0_114] : memref<8x4x128xf32, #tpu.memory_space<vmem>>, vector<1x4x128xf32>
    %348 = vector.shape_cast %347 : vector<1x4x128xf32> to vector<4x128xf32>
    %349 = vector.shape_cast %346 : vector<4x128xf32> to vector<1x4x128xf32>
    tpu.vector_store %arg15[%c4_112, %c0_113, %c0_114], %349 {strides = array<i32>} : memref<8x4x128xf32, #tpu.memory_space<vmem>>, vector<1x4x128xf32>,
    %c5 = arith.constant 5 : index
    %c0_115 = arith.constant 0 : index
    %c0_116 = arith.constant 0 : index
    %350 = vector.load %arg1[%c5, %c0_115, %c0_116] : memref<8x4x32xf32, #tpu.memory_space<vmem>>, vector<1x4x32xf32>
    %351 = vector.shape_cast %350 : vector<1x4x32xf32> to vector<4x32xf32>
    %cst_117 = arith.constant dense<0.000000e+00> : vector<4x128xf32>
    %352 = tpu.matmul %351, %10, %cst_117 {dimension_numbers = #tpu.dot_dimension_numbers<[1], [0], [0], [1], [0, 0, 1, 1], [], []>} : vector<4x32xf32>, vector<32x128xf32>, vector<4x128xf32> -> vector<4x128xf32>
    %353 = vector.broadcast %11 : vector<1x128xf32> to vector<4x128xf32>
    %354 = arith.addf %352, %353 : vector<4x128xf32>
    %cst_118 = arith.constant dense<0.000000e+00> : vector<4x128xf32>
    %355 = tpu.matmul %344, %8, %cst_118 {dimension_numbers = #tpu.dot_dimension_numbers<[1], [0], [0], [1], [0, 0, 1, 1], [], []>} : vector<4x64xf32>, vector<64x128xf32>, vector<4x128xf32> -> vector<4x128xf32>
    %356 = arith.addf %326, %355 : vector<4x128xf32>
    %357 = arith.addf %356, %354 : vector<4x128xf32>
    %358 = vector.extract_strided_slice %357 {offsets = [0, 0], sizes = [4, 32], strides = [1, 1]} : vector<4x128xf32> to vector<4x32xf32>
    %359 = arith.negf %358 : vector<4x32xf32>
    %360 = math.exp %359 : vector<4x32xf32>
    %cst_119 = arith.constant 1.000000e+00 : f32
    %361 = vector.broadcast %cst_119 : f32 to vector<4x32xf32>
    %362 = arith.addf %361, %360 : vector<4x32xf32>
    %363 = arith.divf %361, %362 : vector<4x32xf32>
    %364 = vector.extract_strided_slice %357 {offsets = [0, 32], sizes = [4, 32], strides = [1, 1]} : vector<4x128xf32> to vector<4x32xf32>
    %365 = arith.negf %364 : vector<4x32xf32>
    %366 = math.exp %365 : vector<4x32xf32>
    %cst_120 = arith.constant 1.000000e+00 : f32
    %367 = vector.broadcast %cst_120 : f32 to vector<4x32xf32>
    %368 = arith.addf %367, %366 : vector<4x32xf32>
    %369 = arith.divf %367, %368 : vector<4x32xf32>
    %370 = vector.extract_strided_slice %357 {offsets = [0, 64], sizes = [4, 32], strides = [1, 1]} : vector<4x128xf32> to vector<4x32xf32>
    %371 = math.tanh %370 : vector<4x32xf32>
    %372 = vector.extract_strided_slice %357 {offsets = [0, 96], sizes = [4, 32], strides = [1, 1]} : vector<4x128xf32> to vector<4x32xf32>
    %373 = arith.negf %372 : vector<4x32xf32>
    %374 = math.exp %373 : vector<4x32xf32>
    %cst_121 = arith.constant 1.000000e+00 : f32
    %375 = vector.broadcast %cst_121 : f32 to vector<4x32xf32>
    %376 = arith.addf %375, %374 : vector<4x32xf32>
    %377 = arith.divf %375, %376 : vector<4x32xf32>
    %378 = arith.mulf %369, %319 : vector<4x32xf32>
    %379 = arith.mulf %363, %371 : vector<4x32xf32>
    %380 = arith.addf %378, %379 : vector<4x32xf32>
    %381 = math.tanh %380 : vector<4x32xf32>
    %382 = arith.mulf %377, %381 : vector<4x32xf32>
    %cst_122 = arith.constant dense<0.000000e+00> : vector<4x384xf32>
    %383 = tpu.matmul %382, %5, %cst_122 {dimension_numbers = #tpu.dot_dimension_numbers<[1], [0], [0], [1], [0, 0, 1, 1], [], []>} : vector<4x32xf32>, vector<32x384xf32>, vector<4x384xf32> -> vector<4x384xf32>
    %384 = vector.broadcast %6 : vector<1x384xf32> to vector<4x384xf32>
    %385 = arith.addf %383, %384 : vector<4x384xf32>
    %386 = vector.extract_strided_slice %385 {offsets = [0, 0], sizes = [4, 64], strides = [1, 1]} : vector<4x384xf32> to vector<4x64xf32>
    %387 = vector.extract_strided_slice %385 {offsets = [0, 128], sizes = [4, 128], strides = [1, 1]} : vector<4x384xf32> to vector<4x128xf32>
    %388 = vector.extract_strided_slice %385 {offsets = [0, 256], sizes = [4, 128], strides = [1, 1]} : vector<4x384xf32> to vector<4x128xf32>
    %389 = vector.shape_cast %386 : vector<4x64xf32> to vector<4x1x64xf32>
    %390 = vector.broadcast %389 : vector<4x1x64xf32> to vector<4x16x64xf32>
    %391 = arith.mulf %390, %20 : vector<4x16x64xf32>
    %392 = vector.shape_cast %391 : vector<4x16x64xf32> to vector<64x64xf32>
    %cst_123 = arith.constant dense<0.000000e+00> : vector<64x64xf32>
    %393 = tpu.matmul %392, %7, %cst_123 {dimension_numbers = #tpu.dot_dimension_numbers<[1], [0], [0], [1], [0, 0, 1, 1], [], []>} : vector<64x64xf32>, vector<64x64xf32>, vector<64x64xf32> -> vector<64x64xf32>
    %394 = vector.shape_cast %393 : vector<64x64xf32> to vector<4x16x64xf32>
    %395 = arith.addf %394, %4 : vector<4x16x64xf32>
    %cst_124 = arith.constant dense<0xFF800000> : vector<4x64xf32>
    %396 = vector.multi_reduction <maximumf>, %395, %cst_124 [1] : vector<4x16x64xf32> to vector<4x64xf32>
    %397 = vector.shape_cast %396 : vector<4x64xf32> to vector<4x1x64xf32>
    %398 = vector.broadcast %397 : vector<4x1x64xf32> to vector<4x16x64xf32>
    %399 = arith.subf %395, %398 : vector<4x16x64xf32>
    %400 = math.exp %399 : vector<4x16x64xf32>
    %401 = arith.mulf %400, %22 : vector<4x16x64xf32>
    %cst_125 = arith.constant dense<0.000000e+00> : vector<4x64xf32>
    %402 = vector.multi_reduction <add>, %401, %cst_125 [1] : vector<4x16x64xf32> to vector<4x64xf32>
    %cst_126 = arith.constant dense<0.000000e+00> : vector<4x64xf32>
    %403 = vector.multi_reduction <add>, %400, %cst_126 [1] : vector<4x16x64xf32> to vector<4x64xf32>
    %404 = tpu.reciprocal %403 {approx = true} : vector<4x64xf32> -> vector<4x64xf32>
    %405 = arith.mulf %402, %404 : vector<4x64xf32>
    %cst_127 = arith.constant dense<0.000000e+00> : vector<4x128xf32>
    %406 = tpu.matmul %405, %9, %cst_127 {dimension_numbers = #tpu.dot_dimension_numbers<[1], [0], [0], [1], [0, 0, 1, 1], [], []>} : vector<4x64xf32>, vector<64x128xf32>, vector<4x128xf32> -> vector<4x128xf32>
    %407 = arith.addf %388, %406 : vector<4x128xf32>
    %c5_128 = arith.constant 5 : index
    %c0_129 = arith.constant 0 : index
    %c0_130 = arith.constant 0 : index
    %408 = vector.load %arg15[%c5_128, %c0_129, %c0_130] : memref<8x4x128xf32, #tpu.memory_space<vmem>>, vector<1x4x128xf32>
    %409 = vector.shape_cast %408 : vector<1x4x128xf32> to vector<4x128xf32>
    %410 = vector.shape_cast %407 : vector<4x128xf32> to vector<1x4x128xf32>
    tpu.vector_store %arg15[%c5_128, %c0_129, %c0_130], %410 {strides = array<i32>} : memref<8x4x128xf32, #tpu.memory_space<vmem>>, vector<1x4x128xf32>,
    %c6 = arith.constant 6 : index
    %c0_131 = arith.constant 0 : index
    %c0_132 = arith.constant 0 : index
    %411 = vector.load %arg1[%c6, %c0_131, %c0_132] : memref<8x4x32xf32, #tpu.memory_space<vmem>>, vector<1x4x32xf32>
    %412 = vector.shape_cast %411 : vector<1x4x32xf32> to vector<4x32xf32>
    %cst_133 = arith.constant dense<0.000000e+00> : vector<4x128xf32>
    %413 = tpu.matmul %412, %10, %cst_133 {dimension_numbers = #tpu.dot_dimension_numbers<[1], [0], [0], [1], [0, 0, 1, 1], [], []>} : vector<4x32xf32>, vector<32x128xf32>, vector<4x128xf32> -> vector<4x128xf32>
    %414 = vector.broadcast %11 : vector<1x128xf32> to vector<4x128xf32>
    %415 = arith.addf %413, %414 : vector<4x128xf32>
    %cst_134 = arith.constant dense<0.000000e+00> : vector<4x128xf32>
    %416 = tpu.matmul %405, %8, %cst_134 {dimension_numbers = #tpu.dot_dimension_numbers<[1], [0], [0], [1], [0, 0, 1, 1], [], []>} : vector<4x64xf32>, vector<64x128xf32>, vector<4x128xf32> -> vector<4x128xf32>
    %417 = arith.addf %387, %416 : vector<4x128xf32>
    %418 = arith.addf %417, %415 : vector<4x128xf32>
    %419 = vector.extract_strided_slice %418 {offsets = [0, 0], sizes = [4, 32], strides = [1, 1]} : vector<4x128xf32> to vector<4x32xf32>
    %420 = arith.negf %419 : vector<4x32xf32>
    %421 = math.exp %420 : vector<4x32xf32>
    %cst_135 = arith.constant 1.000000e+00 : f32
    %422 = vector.broadcast %cst_135 : f32 to vector<4x32xf32>
    %423 = arith.addf %422, %421 : vector<4x32xf32>
    %424 = arith.divf %422, %423 : vector<4x32xf32>
    %425 = vector.extract_strided_slice %418 {offsets = [0, 32], sizes = [4, 32], strides = [1, 1]} : vector<4x128xf32> to vector<4x32xf32>
    %426 = arith.negf %425 : vector<4x32xf32>
    %427 = math.exp %426 : vector<4x32xf32>
    %cst_136 = arith.constant 1.000000e+00 : f32
    %428 = vector.broadcast %cst_136 : f32 to vector<4x32xf32>
    %429 = arith.addf %428, %427 : vector<4x32xf32>
    %430 = arith.divf %428, %429 : vector<4x32xf32>
    %431 = vector.extract_strided_slice %418 {offsets = [0, 64], sizes = [4, 32], strides = [1, 1]} : vector<4x128xf32> to vector<4x32xf32>
    %432 = math.tanh %431 : vector<4x32xf32>
    %433 = vector.extract_strided_slice %418 {offsets = [0, 96], sizes = [4, 32], strides = [1, 1]} : vector<4x128xf32> to vector<4x32xf32>
    %434 = arith.negf %433 : vector<4x32xf32>
    %435 = math.exp %434 : vector<4x32xf32>
    %cst_137 = arith.constant 1.000000e+00 : f32
    %436 = vector.broadcast %cst_137 : f32 to vector<4x32xf32>
    %437 = arith.addf %436, %435 : vector<4x32xf32>
    %438 = arith.divf %436, %437 : vector<4x32xf32>
    %439 = arith.mulf %430, %380 : vector<4x32xf32>
    %440 = arith.mulf %424, %432 : vector<4x32xf32>
    %441 = arith.addf %439, %440 : vector<4x32xf32>
    %442 = math.tanh %441 : vector<4x32xf32>
    %443 = arith.mulf %438, %442 : vector<4x32xf32>
    %cst_138 = arith.constant dense<0.000000e+00> : vector<4x384xf32>
    %444 = tpu.matmul %443, %5, %cst_138 {dimension_numbers = #tpu.dot_dimension_numbers<[1], [0], [0], [1], [0, 0, 1, 1], [], []>} : vector<4x32xf32>, vector<32x384xf32>, vector<4x384xf32> -> vector<4x384xf32>
    %445 = vector.broadcast %6 : vector<1x384xf32> to vector<4x384xf32>
    %446 = arith.addf %444, %445 : vector<4x384xf32>
    %447 = vector.extract_strided_slice %446 {offsets = [0, 0], sizes = [4, 64], strides = [1, 1]} : vector<4x384xf32> to vector<4x64xf32>
    %448 = vector.extract_strided_slice %446 {offsets = [0, 128], sizes = [4, 128], strides = [1, 1]} : vector<4x384xf32> to vector<4x128xf32>
    %449 = vector.extract_strided_slice %446 {offsets = [0, 256], sizes = [4, 128], strides = [1, 1]} : vector<4x384xf32> to vector<4x128xf32>
    %450 = vector.shape_cast %447 : vector<4x64xf32> to vector<4x1x64xf32>
    %451 = vector.broadcast %450 : vector<4x1x64xf32> to vector<4x16x64xf32>
    %452 = arith.mulf %451, %20 : vector<4x16x64xf32>
    %453 = vector.shape_cast %452 : vector<4x16x64xf32> to vector<64x64xf32>
    %cst_139 = arith.constant dense<0.000000e+00> : vector<64x64xf32>
    %454 = tpu.matmul %453, %7, %cst_139 {dimension_numbers = #tpu.dot_dimension_numbers<[1], [0], [0], [1], [0, 0, 1, 1], [], []>} : vector<64x64xf32>, vector<64x64xf32>, vector<64x64xf32> -> vector<64x64xf32>
    %455 = vector.shape_cast %454 : vector<64x64xf32> to vector<4x16x64xf32>
    %456 = arith.addf %455, %4 : vector<4x16x64xf32>
    %cst_140 = arith.constant dense<0xFF800000> : vector<4x64xf32>
    %457 = vector.multi_reduction <maximumf>, %456, %cst_140 [1] : vector<4x16x64xf32> to vector<4x64xf32>
    %458 = vector.shape_cast %457 : vector<4x64xf32> to vector<4x1x64xf32>
    %459 = vector.broadcast %458 : vector<4x1x64xf32> to vector<4x16x64xf32>
    %460 = arith.subf %456, %459 : vector<4x16x64xf32>
    %461 = math.exp %460 : vector<4x16x64xf32>
    %462 = arith.mulf %461, %22 : vector<4x16x64xf32>
    %cst_141 = arith.constant dense<0.000000e+00> : vector<4x64xf32>
    %463 = vector.multi_reduction <add>, %462, %cst_141 [1] : vector<4x16x64xf32> to vector<4x64xf32>
    %cst_142 = arith.constant dense<0.000000e+00> : vector<4x64xf32>
    %464 = vector.multi_reduction <add>, %461, %cst_142 [1] : vector<4x16x64xf32> to vector<4x64xf32>
    %465 = tpu.reciprocal %464 {approx = true} : vector<4x64xf32> -> vector<4x64xf32>
    %466 = arith.mulf %463, %465 : vector<4x64xf32>
    %cst_143 = arith.constant dense<0.000000e+00> : vector<4x128xf32>
    %467 = tpu.matmul %466, %9, %cst_143 {dimension_numbers = #tpu.dot_dimension_numbers<[1], [0], [0], [1], [0, 0, 1, 1], [], []>} : vector<4x64xf32>, vector<64x128xf32>, vector<4x128xf32> -> vector<4x128xf32>
    %468 = arith.addf %449, %467 : vector<4x128xf32>
    %c6_144 = arith.constant 6 : index
    %c0_145 = arith.constant 0 : index
    %c0_146 = arith.constant 0 : index
    %469 = vector.load %arg15[%c6_144, %c0_145, %c0_146] : memref<8x4x128xf32, #tpu.memory_space<vmem>>, vector<1x4x128xf32>
    %470 = vector.shape_cast %469 : vector<1x4x128xf32> to vector<4x128xf32>
    %471 = vector.shape_cast %468 : vector<4x128xf32> to vector<1x4x128xf32>
    tpu.vector_store %arg15[%c6_144, %c0_145, %c0_146], %471 {strides = array<i32>} : memref<8x4x128xf32, #tpu.memory_space<vmem>>, vector<1x4x128xf32>,
    %c7 = arith.constant 7 : index
    %c0_147 = arith.constant 0 : index
    %c0_148 = arith.constant 0 : index
    %472 = vector.load %arg1[%c7, %c0_147, %c0_148] : memref<8x4x32xf32, #tpu.memory_space<vmem>>, vector<1x4x32xf32>
    %473 = vector.shape_cast %472 : vector<1x4x32xf32> to vector<4x32xf32>
    %cst_149 = arith.constant dense<0.000000e+00> : vector<4x128xf32>
    %474 = tpu.matmul %473, %10, %cst_149 {dimension_numbers = #tpu.dot_dimension_numbers<[1], [0], [0], [1], [0, 0, 1, 1], [], []>} : vector<4x32xf32>, vector<32x128xf32>, vector<4x128xf32> -> vector<4x128xf32>
    %475 = vector.broadcast %11 : vector<1x128xf32> to vector<4x128xf32>
    %476 = arith.addf %474, %475 : vector<4x128xf32>
    %cst_150 = arith.constant dense<0.000000e+00> : vector<4x128xf32>
    %477 = tpu.matmul %466, %8, %cst_150 {dimension_numbers = #tpu.dot_dimension_numbers<[1], [0], [0], [1], [0, 0, 1, 1], [], []>} : vector<4x64xf32>, vector<64x128xf32>, vector<4x128xf32> -> vector<4x128xf32>
    %478 = arith.addf %448, %477 : vector<4x128xf32>
    %479 = arith.addf %478, %476 : vector<4x128xf32>
    %480 = vector.extract_strided_slice %479 {offsets = [0, 0], sizes = [4, 32], strides = [1, 1]} : vector<4x128xf32> to vector<4x32xf32>
    %481 = arith.negf %480 : vector<4x32xf32>
    %482 = math.exp %481 : vector<4x32xf32>
    %cst_151 = arith.constant 1.000000e+00 : f32
    %483 = vector.broadcast %cst_151 : f32 to vector<4x32xf32>
    %484 = arith.addf %483, %482 : vector<4x32xf32>
    %485 = arith.divf %483, %484 : vector<4x32xf32>
    %486 = vector.extract_strided_slice %479 {offsets = [0, 32], sizes = [4, 32], strides = [1, 1]} : vector<4x128xf32> to vector<4x32xf32>
    %487 = arith.negf %486 : vector<4x32xf32>
    %488 = math.exp %487 : vector<4x32xf32>
    %cst_152 = arith.constant 1.000000e+00 : f32
    %489 = vector.broadcast %cst_152 : f32 to vector<4x32xf32>
    %490 = arith.addf %489, %488 : vector<4x32xf32>
    %491 = arith.divf %489, %490 : vector<4x32xf32>
    %492 = vector.extract_strided_slice %479 {offsets = [0, 64], sizes = [4, 32], strides = [1, 1]} : vector<4x128xf32> to vector<4x32xf32>
    %493 = math.tanh %492 : vector<4x32xf32>
    %494 = vector.extract_strided_slice %479 {offsets = [0, 96], sizes = [4, 32], strides = [1, 1]} : vector<4x128xf32> to vector<4x32xf32>
    %495 = arith.negf %494 : vector<4x32xf32>
    %496 = math.exp %495 : vector<4x32xf32>
    %cst_153 = arith.constant 1.000000e+00 : f32
    %497 = vector.broadcast %cst_153 : f32 to vector<4x32xf32>
    %498 = arith.addf %497, %496 : vector<4x32xf32>
    %499 = arith.divf %497, %498 : vector<4x32xf32>
    %500 = arith.mulf %491, %441 : vector<4x32xf32>
    %501 = arith.mulf %485, %493 : vector<4x32xf32>
    %502 = arith.addf %500, %501 : vector<4x32xf32>
    %503 = math.tanh %502 : vector<4x32xf32>
    %504 = arith.mulf %499, %503 : vector<4x32xf32>
    %cst_154 = arith.constant dense<0.000000e+00> : vector<4x384xf32>
    %505 = tpu.matmul %504, %5, %cst_154 {dimension_numbers = #tpu.dot_dimension_numbers<[1], [0], [0], [1], [0, 0, 1, 1], [], []>} : vector<4x32xf32>, vector<32x384xf32>, vector<4x384xf32> -> vector<4x384xf32>
    %506 = vector.broadcast %6 : vector<1x384xf32> to vector<4x384xf32>
    %507 = arith.addf %505, %506 : vector<4x384xf32>
    %508 = vector.extract_strided_slice %507 {offsets = [0, 0], sizes = [4, 64], strides = [1, 1]} : vector<4x384xf32> to vector<4x64xf32>
    %509 = vector.extract_strided_slice %507 {offsets = [0, 256], sizes = [4, 128], strides = [1, 1]} : vector<4x384xf32> to vector<4x128xf32>
    %510 = vector.shape_cast %508 : vector<4x64xf32> to vector<4x1x64xf32>
    %511 = vector.broadcast %510 : vector<4x1x64xf32> to vector<4x16x64xf32>
    %512 = arith.mulf %511, %20 : vector<4x16x64xf32>
    %513 = vector.shape_cast %512 : vector<4x16x64xf32> to vector<64x64xf32>
    %cst_155 = arith.constant dense<0.000000e+00> : vector<64x64xf32>
    %514 = tpu.matmul %513, %7, %cst_155 {dimension_numbers = #tpu.dot_dimension_numbers<[1], [0], [0], [1], [0, 0, 1, 1], [], []>} : vector<64x64xf32>, vector<64x64xf32>, vector<64x64xf32> -> vector<64x64xf32>
    %515 = vector.shape_cast %514 : vector<64x64xf32> to vector<4x16x64xf32>
    %516 = arith.addf %515, %4 : vector<4x16x64xf32>
    %cst_156 = arith.constant dense<0xFF800000> : vector<4x64xf32>
    %517 = vector.multi_reduction <maximumf>, %516, %cst_156 [1] : vector<4x16x64xf32> to vector<4x64xf32>
    %518 = vector.shape_cast %517 : vector<4x64xf32> to vector<4x1x64xf32>
    %519 = vector.broadcast %518 : vector<4x1x64xf32> to vector<4x16x64xf32>
    %520 = arith.subf %516, %519 : vector<4x16x64xf32>
    %521 = math.exp %520 : vector<4x16x64xf32>
    %522 = arith.mulf %521, %22 : vector<4x16x64xf32>
    %cst_157 = arith.constant dense<0.000000e+00> : vector<4x64xf32>
    %523 = vector.multi_reduction <add>, %522, %cst_157 [1] : vector<4x16x64xf32> to vector<4x64xf32>
    %cst_158 = arith.constant dense<0.000000e+00> : vector<4x64xf32>
    %524 = vector.multi_reduction <add>, %521, %cst_158 [1] : vector<4x16x64xf32> to vector<4x64xf32>
    %525 = tpu.reciprocal %524 {approx = true} : vector<4x64xf32> -> vector<4x64xf32>
    %526 = arith.mulf %523, %525 : vector<4x64xf32>
    %cst_159 = arith.constant dense<0.000000e+00> : vector<4x128xf32>
    %527 = tpu.matmul %526, %9, %cst_159 {dimension_numbers = #tpu.dot_dimension_numbers<[1], [0], [0], [1], [0, 0, 1, 1], [], []>} : vector<4x64xf32>, vector<64x128xf32>, vector<4x128xf32> -> vector<4x128xf32>
    %528 = arith.addf %509, %527 : vector<4x128xf32>
    %c7_160 = arith.constant 7 : index
    %c0_161 = arith.constant 0 : index
    %c0_162 = arith.constant 0 : index
    %529 = vector.load %arg15[%c7_160, %c0_161, %c0_162] : memref<8x4x128xf32, #tpu.memory_space<vmem>>, vector<1x4x128xf32>
    %530 = vector.shape_cast %529 : vector<1x4x128xf32> to vector<4x128xf32>
    %531 = vector.shape_cast %528 : vector<4x128xf32> to vector<1x4x128xf32>
    tpu.vector_store %arg15[%c7_160, %c0_161, %c0_162], %531 {strides = array<i32>} : memref<8x4x128xf32, #tpu.memory_space<vmem>>, vector<1x4x128xf32>,
    %532 = vector.shape_cast %504 : vector<4x32xf32> to vector<1x4x32xf32>
    %c0_163 = arith.constant 0 : index
    %c0_164 = arith.constant 0 : index
    %c0_165 = arith.constant 0 : index
    %533 = vector.load %arg16[%c0_163, %c0_164, %c0_165] : memref<1x4x32xf32, #tpu.memory_space<vmem>>, vector<1x4x32xf32>
    tpu.vector_store %arg16[%c0_163, %c0_164, %c0_165], %532 {strides = array<i32>} : memref<1x4x32xf32, #tpu.memory_space<vmem>>, vector<1x4x32xf32>,
    %534 = vector.shape_cast %502 : vector<4x32xf32> to vector<1x4x32xf32>
    %c0_166 = arith.constant 0 : index
    %c0_167 = arith.constant 0 : index
    %c0_168 = arith.constant 0 : index
    %535 = vector.load %arg17[%c0_166, %c0_167, %c0_168] : memref<1x4x32xf32, #tpu.memory_space<vmem>>, vector<1x4x32xf32>
    tpu.vector_store %arg17[%c0_166, %c0_167, %c0_168], %534 {strides = array<i32>} : memref<1x4x32xf32, #tpu.memory_space<vmem>>, vector<1x4x32xf32>,
    return
  }
  func.func @transform_0(%arg0: i32) -> (i32, i32, i32) {
    %c0_i32 = arith.constant 0 : i32
    %c0_i32_0 = arith.constant 0 : i32
    %c0_i32_1 = arith.constant 0 : i32
    return %c0_i32, %arg0, %c0_i32_0 : i32, i32, i32
  }
  func.func @transform_1(%arg0: i32) -> (i32, i32, i32) {
    %c0_i32 = arith.constant 0 : i32
    %c0_i32_0 = arith.constant 0 : i32
    %c0_i32_1 = arith.constant 0 : i32
    return %c0_i32, %arg0, %c0_i32_0 : i32, i32, i32
  }
  func.func @transform_2(%arg0: i32) -> (i32, i32, i32) {
    %c0_i32 = arith.constant 0 : i32
    %c0_i32_0 = arith.constant 0 : i32
    %c0_i32_1 = arith.constant 0 : i32
    return %c0_i32, %arg0, %c0_i32_0 : i32, i32, i32
  }
  func.func @transform_3(%arg0: i32) -> (i32, i32, i32) {
    %c0_i32 = arith.constant 0 : i32
    %c0_i32_0 = arith.constant 0 : i32
    %c0_i32_1 = arith.constant 0 : i32
    return %arg0, %c0_i32, %c0_i32_0 : i32, i32, i32
  }
  func.func @transform_4(%arg0: i32) -> (i32, i32, i32) {
    %c0_i32 = arith.constant 0 : i32
    %c0_i32_0 = arith.constant 0 : i32
    %c0_i32_1 = arith.constant 0 : i32
    return %arg0, %c0_i32, %c0_i32_0 : i32, i32, i32
  }
  func.func @transform_5(%arg0: i32) -> (i32, i32) {
    %c0_i32 = arith.constant 0 : i32
    %c0_i32_0 = arith.constant 0 : i32
    %c0_i32_1 = arith.constant 0 : i32
    return %c0_i32, %c0_i32_0 : i32, i32
  }
  func.func @transform_6(%arg0: i32) -> (i32, i32) {
    %c0_i32 = arith.constant 0 : i32
    %c0_i32_0 = arith.constant 0 : i32
    %c0_i32_1 = arith.constant 0 : i32
    return %c0_i32, %c0_i32_0 : i32, i32
  }
  func.func @transform_7(%arg0: i32) -> (i32, i32) {
    %c0_i32 = arith.constant 0 : i32
    %c0_i32_0 = arith.constant 0 : i32
    %c0_i32_1 = arith.constant 0 : i32
    return %c0_i32, %c0_i32_0 : i32, i32
  }
  func.func @transform_8(%arg0: i32) -> (i32, i32) {
    %c0_i32 = arith.constant 0 : i32
    %c0_i32_0 = arith.constant 0 : i32
    %c0_i32_1 = arith.constant 0 : i32
    return %c0_i32, %c0_i32_0 : i32, i32
  }
  func.func @transform_9(%arg0: i32) -> (i32, i32) {
    %c0_i32 = arith.constant 0 : i32
    %c0_i32_0 = arith.constant 0 : i32
    %c0_i32_1 = arith.constant 0 : i32
    return %c0_i32, %c0_i32_0 : i32, i32
  }
  func.func @transform_10(%arg0: i32) -> (i32, i32) {
    %c0_i32 = arith.constant 0 : i32
    %c0_i32_0 = arith.constant 0 : i32
    %c0_i32_1 = arith.constant 0 : i32
    return %c0_i32, %c0_i32_0 : i32, i32
  }
  func.func @transform_11(%arg0: i32) -> (i32, i32) {
    %c0_i32 = arith.constant 0 : i32
    %c0_i32_0 = arith.constant 0 : i32
    %c0_i32_1 = arith.constant 0 : i32
    return %c0_i32, %c0_i32_0 : i32, i32
  }
  func.func @transform_12(%arg0: i32) -> (i32, i32) {
    %c0_i32 = arith.constant 0 : i32
    %c0_i32_0 = arith.constant 0 : i32
    %c0_i32_1 = arith.constant 0 : i32
    return %c0_i32, %c0_i32_0 : i32, i32
  }
  func.func @transform_13(%arg0: i32) -> (i32, i32) {
    %c0_i32 = arith.constant 0 : i32
    %c0_i32_0 = arith.constant 0 : i32
    %c0_i32_1 = arith.constant 0 : i32
    return %c0_i32, %c0_i32_0 : i32, i32
  }
  func.func @transform_14(%arg0: i32) -> (i32, i32, i32) {
    %c0_i32 = arith.constant 0 : i32
    %c0_i32_0 = arith.constant 0 : i32
    %c0_i32_1 = arith.constant 0 : i32
    return %c0_i32, %arg0, %c0_i32_0 : i32, i32, i32
  }
  func.func @transform_15(%arg0: i32) -> (i32, i32, i32) {
    %c0_i32 = arith.constant 0 : i32
    %c0_i32_0 = arith.constant 0 : i32
    %c0_i32_1 = arith.constant 0 : i32
    return %c0_i32, %arg0, %c0_i32_0 : i32, i32, i32
  }
  func.func @transform_16(%arg0: i32) -> (i32, i32, i32) {
    %c0_i32 = arith.constant 0 : i32
    %c0_i32_0 = arith.constant 0 : i32
    %c0_i32_1 = arith.constant 0 : i32
    return %c0_i32, %arg0, %c0_i32_0 : i32, i32, i32
  }
}

</mosaic_0001>

<bundles_post_ra>
// kernel: tpu_custom_call.1
= control target key start
LH: loop header
LB: loop body
LE: loop exit
PB: predicated region body
PF: predicated region fallthrough
CT: control target
= control target key end

     0   :  { %s10866_s0 = inlined_call_operand.hbm [shape: f32[8,4,32], index: 0, kind: input, shape index: {}]   ;;  %s10867_s1 = inlined_call_operand.hbm [shape: f32[1,4,32], index: 1, kind: input, shape index: {}]   ;;  %s10868_s2 = inlined_call_operand.vmem [shape: f32[1,4,32], index: 2, kind: input, shape index: {}]   ;;  %s10869_s3 = inlined_call_operand.hbm [shape: f32[4,16,64], index: 3, kind: input, shape index: {}]   ;;  %s10870_s4 = inlined_call_operand.hbm [shape: f32[4,16,64], index: 4, kind: input, shape index: {}]   ;;  %s10871_s5 = inlined_call_operand.hbm [shape: f32[32,384], index: 5, kind: input, shape index: {}]   ;;  %s10872_s6 = inlined_call_operand.vmem [shape: f32[1,384], index: 6, kind: input, shape index: {}]   ;;  %s10873_s7 = inlined_call_operand.hbm [shape: f32[64,128], index: 7, kind: input, shape index: {}]   ;;  %s10874_s8 = inlined_call_operand.vmem [shape: f32[1,128], index: 8, kind: input, shape index: {}]   ;;  %s10875_s9 = inlined_call_operand.hbm [shape: f32[64,64], index: 9, kind: input, shape index: {}]   ;;  %s10876_s10 = inlined_call_operand.hbm [shape: f32[64,128], index: 10, kind: input, shape index: {}]   ;;  %s10877_s11 = inlined_call_operand.hbm [shape: f32[64,128], index: 11, kind: input, shape index: {}]   ;;  %s10878_s12 = inlined_call_operand.vmem [shape: f32[32,128], index: 12, kind: input, shape index: {}]   ;;  %s10879_s13 = inlined_call_operand.vmem [shape: f32[1,128], index: 13, kind: input, shape index: {}]   ;;  %s10880_s14 = inlined_call_operand.hbm [shape: f32[8,4,128], index: 14, kind: output, shape index: {0}]   ;;  %s10881_s15 = inlined_call_operand.hbm [shape: f32[1,4,32], index: 15, kind: output, shape index: {1}]   ;;  %s10882_s16 = inlined_call_operand.hbm [shape: f32[1,4,32], index: 16, kind: output, shape index: {2}]  }
   0x1   :  { %10974 = sst [smem:[#allocation55_spill]] %s10866_s0 }
   0x2   :  { %22 = vsyncpa [#allocation3], 0 }
   0x3   :  { %23 = vsyncpa [#allocation6], 0 }
   0x4   :  { %24 = vsyncpa [#allocation9], 0 }
   0x5   :  { %25 = vsyncpa [#allocation12], 0 }
   0x6   :  { %26 = vsyncpa [#allocation15], 0 }
   0x7   :  { %27 = vsyncpa [#allocation4], 0 }
   0x8   :  { %28 = vsyncpa [#allocation19], 0  ;;  %s9246_s21 = smov [#allocation5]   ;;  %s8968_s25 = scalar_lea.hbm %s10867_s1, 64 }
   0x9   :  { %s47_s22 = sshll.u32 %s9246_s21, 4  ;;  %p8969_p0 = scmp.ne.s32.totalorder %s10867_s1, %s8968_s25  ;;  %s48_s22 = int_to_ptr.vmem [resolvable:$true] %s47_s22 }
   0xa   :  { %p8972_p1 = scmp.lt.u32.totalorder %s8968_s25, %s10867_s1 }
   0xc   :  { %p8974_p2 = pnand %p8972_p1, %p8969_p0 }
   0xe   :  { %8977 = shalt.err (!%p8974_p2)
}
   0xf   :  { %s8978_s30 = scalar_lea.vmem %s48_s22, 64  ;;  %p8983_p4 = scmp.lt.s32.totalorder %s48_s22, %s48_s22 }
  0x10   :  { %p8979_p3 = scmp.ne.s32.totalorder %s48_s22, %s8978_s30  ;;  %p8984_p5 = scmp.lt.s32.totalorder %s8978_s30, %s8978_s30 }
  0x12   :  { %p8985_p6 = por %p8984_p5, %p8983_p4 }
  0x14   :  { %p8986_p7 = pnand %p8985_p6, %p8979_p3 }
  0x16   :  { %8989 = shalt.err (!%p8986_p7)
}
  0x17   :  { %50 = dma.hbm_to_vmem [thread:$0]  %s10867_s1, 64, %s48_s22, [#allocation6]  }
  0x18   :  { %s9247_s18 = smov [#allocation8]   ;;  %s9248_s20 = smov [#allocation11]  }
  0x19   :  { %s70_s19 = sshll.u32 %s9247_s18, 4  ;;  %s96_s21 = sshll.u32 %s9248_s20, 4  ;;  %s71_s19 = int_to_ptr.vmem [resolvable:$true] %s70_s19  ;;  %s97_s21 = int_to_ptr.vmem [resolvable:$true] %s96_s21 }
  0x1a   :  { %s8990_s25 = scalar_lea.hbm %s10870_s4, 1024 }
  0x1b   :  { %p8991_p8 = scmp.ne.s32.totalorder %s10870_s4, %s8990_s25  ;;  %p8994_p9 = scmp.lt.u32.totalorder %s8990_s25, %s10870_s4 }
  0x1d   :  { %p8996_p10 = pnand %p8994_p9, %p8991_p8 }
  0x1f   :  { %8999 = shalt.err (!%p8996_p10)
}
  0x20   :  { %s9000_s1 = scalar_lea.vmem %s71_s19, 1024  ;;  %p9005_p12 = scmp.lt.s32.totalorder %s71_s19, %s71_s19 }
  0x21   :  { %p9001_p11 = scmp.ne.s32.totalorder %s71_s19, %s9000_s1  ;;  %p9006_p13 = scmp.lt.s32.totalorder %s9000_s1, %s9000_s1 }
  0x23   :  { %p9007_p0 = por %p9006_p13, %p9005_p12 }
  0x25   :  { %p9008_p1 = pnand %p9007_p0, %p9001_p11 }
  0x27   :  { %9011 = shalt.err (!%p9008_p1)
}
  0x28   :  { %s9249_s22 = smov 128   ;;  %s9250_s30 = smov 8  }
  0x29   :  { %76 = dma.hbm_to_vmem [thread:$0]  %s10870_s4, 1024, %s71_s19, [#allocation9], %s9249_s22, %s9249_s22, %s9250_s30  }
  0x2a   :  { %s9012_s23 = scalar_lea.hbm %s10873_s7, 1024 }
  0x2b   :  { %p9013_p2 = scmp.ne.s32.totalorder %s10873_s7, %s9012_s23  ;;  %p9016_p3 = scmp.lt.u32.totalorder %s9012_s23, %s10873_s7 }
  0x2d   :  { %p9018_p4 = pnand %p9016_p3, %p9013_p2 }
  0x2f   :  { %9021 = shalt.err (!%p9018_p4)
}
  0x30   :  { %s9022_s28 = scalar_lea.vmem %s97_s21, 1024  ;;  %p9027_p6 = scmp.lt.s32.totalorder %s97_s21, %s97_s21 }
  0x31   :  { %p9023_p5 = scmp.ne.s32.totalorder %s97_s21, %s9022_s28  ;;  %p9028_p7 = scmp.lt.s32.totalorder %s9022_s28, %s9022_s28 }
  0x33   :  { %p9029_p8 = por %p9028_p7, %p9027_p6 }
  0x35   :  { %p9030_p9 = pnand %p9029_p8, %p9023_p5 }
  0x37   :  { %9033 = shalt.err (!%p9030_p9)
}
  0x38   :  { %102 = dma.hbm_to_vmem [thread:$0]  %s10873_s7, 1024, %s97_s21, [#allocation12], %s9249_s22, %s9249_s22, %s9250_s30  }
  0x39   :  { %s9251_s29 = smov [#allocation14]   ;;  %s9252_s0 = smov [#allocation2]  }
  0x3a   :  { %s122_s1 = sshll.u32 %s9251_s29, 4  ;;  %s34_s17 = sshll.u32 %s9252_s0, 4  ;;  %s123_s1 = int_to_ptr.vmem [resolvable:$true] %s122_s1  ;;  %s35_s17 = int_to_ptr.vmem [resolvable:$true] %s34_s17 }
  0x3b   :  { %s9034_s23 = scalar_lea.hbm %s10876_s10, 1024 }
  0x3c   :  { %p9035_p10 = scmp.ne.s32.totalorder %s10876_s10, %s9034_s23  ;;  %p9038_p11 = scmp.lt.u32.totalorder %s9034_s23, %s10876_s10 }
  0x3e   :  { %p9040_p12 = pnand %p9038_p11, %p9035_p10 }
  0x40   :  { %9043 = shalt.err (!%p9040_p12)
}
  0x41   :  { %s9044_s7 = scalar_lea.vmem %s123_s1, 1024  ;;  %p9049_p0 = scmp.lt.s32.totalorder %s123_s1, %s123_s1 }
  0x42   :  { %p9045_p13 = scmp.ne.s32.totalorder %s123_s1, %s9044_s7  ;;  %p9050_p1 = scmp.lt.s32.totalorder %s9044_s7, %s9044_s7 }
  0x44   :  { %p9051_p2 = por %p9050_p1, %p9049_p0 }
  0x46   :  { %p9052_p3 = pnand %p9051_p2, %p9045_p13 }
  0x48   :  { %9055 = shalt.err (!%p9052_p3)
}
  0x49   :  { %128 = dma.hbm_to_vmem [thread:$0]  %s10876_s10, 1024, %s123_s1, [#allocation15], %s9249_s22, %s9249_s22, %s9250_s30  }
  0x4a   :  { %s10975_s29 = sld [smem:[#allocation55_spill]] }
  0x50   :  { %s9056_s0 = scalar_lea.hbm %s10975_s29, 512 }
  0x51   :  { %p9057_p4 = scmp.ne.s32.totalorder %s10975_s29, %s9056_s0  ;;  %p9060_p5 = scmp.lt.u32.totalorder %s9056_s0, %s10975_s29 }
  0x53   :  { %p9062_p6 = pnand %p9060_p5, %p9057_p4 }
  0x55   :  { %9065 = shalt.err (!%p9062_p6)
}
  0x56   :  { %s9066_s25 = scalar_lea.vmem %s35_s17, 512  ;;  %p9071_p8 = scmp.lt.s32.totalorder %s35_s17, %s35_s17 }
  0x57   :  { %p9067_p7 = scmp.ne.s32.totalorder %s35_s17, %s9066_s25  ;;  %p9072_p9 = scmp.lt.s32.totalorder %s9066_s25, %s9066_s25 }
  0x59   :  { %p9073_p10 = por %p9072_p9, %p9071_p8 }
  0x5b   :  { %p9074_p11 = pnand %p9073_p10, %p9067_p7 }
  0x5d   :  { %9077 = shalt.err (!%p9074_p11)
}
  0x5e   :  { %s9253_s10 = smov 64   ;;  %s9254_s1 = smov 4  }
  0x5f   :  { %40 = dma.hbm_to_vmem [thread:$0]  %s10975_s29, 512, %s35_s17, [#allocation3], %s9253_s10, %s9253_s10, %s9254_s1  }
  0x60   :  { %s9255_s7 = smov [#allocation7]   ;;  %s9256_s28 = smov [#allocation10]  }
  0x61   :  { %s58_s21 = sshll.u32 %s9255_s7, 4  ;;  %s82_s4 = sshll.u32 %s9256_s28, 4  ;;  %s59_s21 = int_to_ptr.vmem [resolvable:$true] %s58_s21  ;;  %s83_s4 = int_to_ptr.vmem [resolvable:$true] %s82_s4 }
  0x62   :  { %s9078_s18 = scalar_lea.hbm %s10869_s3, 1024 }
  0x63   :  { %p9079_p12 = scmp.ne.s32.totalorder %s10869_s3, %s9078_s18  ;;  %p9082_p13 = scmp.lt.u32.totalorder %s9078_s18, %s10869_s3 }
  0x65   :  { %p9084_p0 = pnand %p9082_p13, %p9079_p12 }
  0x67   :  { %9087 = shalt.err (!%p9084_p0)
}
  0x68   :  { %s9088_s17 = scalar_lea.vmem %s59_s21, 1024  ;;  %p9093_p2 = scmp.lt.s32.totalorder %s59_s21, %s59_s21 }
  0x69   :  { %p9089_p1 = scmp.ne.s32.totalorder %s59_s21, %s9088_s17  ;;  %p9094_p3 = scmp.lt.s32.totalorder %s9088_s17, %s9088_s17 }
  0x6b   :  { %p9095_p4 = por %p9094_p3, %p9093_p2 }
  0x6d   :  { %p9096_p5 = pnand %p9095_p4, %p9089_p1 }
  0x6f   :  { %9099 = shalt.err (!%p9096_p5)
}
  0x70   :  { %64 = dma.hbm_to_vmem [thread:$0]  %s10869_s3, 1024, %s59_s21, [#allocation6], %s9249_s22, %s9249_s22, %s9250_s30  }
  0x71   :  { %s9100_s28 = scalar_lea.hbm %s10871_s5, 1536 }
  0x72   :  { %p9101_p6 = scmp.ne.s32.totalorder %s10871_s5, %s9100_s28  ;;  %p9104_p7 = scmp.lt.u32.totalorder %s9100_s28, %s10871_s5 }
  0x74   :  { %p9106_p8 = pnand %p9104_p7, %p9101_p6 }
  0x76   :  { %9109 = shalt.err (!%p9106_p8)
}
  0x77   :  { %s9110_s23 = scalar_lea.vmem %s83_s4, 1536  ;;  %p9115_p10 = scmp.lt.s32.totalorder %s83_s4, %s83_s4 }
  0x78   :  { %p9111_p9 = scmp.ne.s32.totalorder %s83_s4, %s9110_s23  ;;  %p9116_p11 = scmp.lt.s32.totalorder %s9110_s23, %s9110_s23 }
  0x7a   :  { %p9117_p12 = por %p9116_p11, %p9115_p10 }
  0x7c   :  { %p9118_p13 = pnand %p9117_p12, %p9111_p9 }
  0x7e   :  { %9121 = shalt.err (!%p9118_p13)
}
  0x7f   :  { %s9257_s3 = smov 384   ;;  %s9258_s21 = smov 24  }
  0x80   :  { %88 = dma.hbm_to_vmem [thread:$0]  %s10871_s5, 1536, %s83_s4, [#allocation9], %s9257_s3, %s9257_s3, %s9258_s21  }
  0x81   :  { %s9259_s17 = smov [#allocation13]   ;;  %s9260_s26 = smov [#allocation16]  }
  0x82   :  { %s110_s29 = sshll.u32 %s9259_s17, 4  ;;  %s134_s27 = sshll.u32 %s9260_s26, 4  ;;  %s111_s29 = int_to_ptr.vmem [resolvable:$true] %s110_s29  ;;  %s135_s27 = int_to_ptr.vmem [resolvable:$true] %s134_s27 }
  0x83   :  { %s9122_s19 = scalar_lea.hbm %s10875_s9, 1024 }
  0x84   :  { %p9123_p0 = scmp.ne.s32.totalorder %s10875_s9, %s9122_s19  ;;  %p9126_p1 = scmp.lt.u32.totalorder %s9122_s19, %s10875_s9 }
  0x86   :  { %p9128_p2 = pnand %p9126_p1, %p9123_p0 }
  0x88   :  { %9131 = shalt.err (!%p9128_p2)
}
  0x89   :  { %s9132_s5 = scalar_lea.vmem %s111_s29, 1024  ;;  %p9137_p4 = scmp.lt.s32.totalorder %s111_s29, %s111_s29 }
  0x8a   :  { %p9133_p3 = scmp.ne.s32.totalorder %s111_s29, %s9132_s5  ;;  %p9138_p5 = scmp.lt.s32.totalorder %s9132_s5, %s9132_s5 }
  0x8c   :  { %p9139_p6 = por %p9138_p5, %p9137_p4 }
  0x8e   :  { %p9140_p7 = pnand %p9139_p6, %p9133_p3 }
  0x90   :  { %9143 = shalt.err (!%p9140_p7)
}
  0x91   :  { %116 = dma.hbm_to_vmem [thread:$0]  %s10875_s9, 1024, %s111_s29, [#allocation12], %s9249_s22, %s9249_s22, %s9250_s30  }
  0x92   :  { %s9144_s25 = scalar_lea.hbm %s10877_s11, 1024 }
  0x93   :  { %p9145_p8 = scmp.ne.s32.totalorder %s10877_s11, %s9144_s25  ;;  %p9148_p9 = scmp.lt.u32.totalorder %s9144_s25, %s10877_s11 }
  0x95   :  { %p9150_p10 = pnand %p9148_p9, %p9145_p8 }
  0x97   :  { %9153 = shalt.err (!%p9150_p10)
}
  0x98   :  { %s9154_s19 = scalar_lea.vmem %s135_s27, 1024  ;;  %p9159_p12 = scmp.lt.s32.totalorder %s135_s27, %s135_s27 }
  0x99   :  { %p9155_p11 = scmp.ne.s32.totalorder %s135_s27, %s9154_s19  ;;  %p9160_p13 = scmp.lt.s32.totalorder %s9154_s19, %s9154_s19 }
  0x9b   :  { %p9161_p0 = por %p9160_p13, %p9159_p12 }
  0x9d   :  { %p9162_p1 = pnand %p9161_p0, %p9155_p11 }
  0x9f   :  { %9165 = shalt.err (!%p9162_p1)
}
  0xa0   :  { %140 = dma.hbm_to_vmem [thread:$0]  %s10877_s11, 1024, %s135_s27, [#allocation15], %s9249_s22, %s9249_s22, %s9250_s30  }
  0xa1   :  { %9232 = dma.done.wait [#allocation3], 512  }
  0xa2   :  { %9233 = vsyncadd [#allocation3], 4294966784 }
  0xa3   :  { %9234 = dma.done.wait [#allocation6], 1088  }
  0xa4   :  { %9235 = vsyncadd [#allocation6], 4294966208 }
  0xa5   :  { %9236 = dma.done.wait [#allocation9], 2560  }
  0xa6   :  { %9237 = vsyncadd [#allocation9], 4294964736 }
  0xa7   :  { %9238 = dma.done.wait [#allocation12], 2048  }
  0xa8   :  { %9239 = vsyncadd [#allocation12], 4294965248 }
  0xa9   :  { %9240 = dma.done.wait [#allocation15], 2048  }
  0xaa   :  { %9241 = vsyncadd [#allocation15], 4294965248  ;;  %v10886_v0 = vmov 0.0   ;;  %v232_v1 = vld [vmem:[#allocation11] sm:$0xff]  ;;  %v233_v2 = vld [vmem:[#allocation11 + $0x8] sm:$0xff]  ;;  %vm247_vm0 = vcmask 523264   ;;  %v378_v46 = vlaneseq }
  0xab   :  { %461 = vmatprep.mubr.f32.mxu1 %v10886_v0  ;;  %v183_v3 = vld [vmem:[#allocation10 + $0x8] sm:$0xff]  ;;  %v8084_v4 = vpack.c.bf16 %v233_v2, %v232_v1  ;;  %v186_v5 = vld [vmem:[#allocation10 + $0x20] sm:$0xff]  ;;  %v185_v7 = vld [vmem:[#allocation10 + $0x18] sm:$0xff]  ;;  %vm393_vm1 = vcmask 261120   ;;  %v9262_v48 = vmov 1966171168  }
  0xac   :  { %v182_v6 = vld [vmem:[#allocation10] sm:$0xff]  ;;  %v9485_v8 = vpack.c.bf16 %v186_v5, %v183_v3  ;;  %v234_v10 = vld [vmem:[#allocation11 + $0x10] sm:$0xff]  ;;  %v235_v11 = vld [vmem:[#allocation11 + $0x18] sm:$0xff]  ;;  %v9522_v47 = vshrl.u32 %v378_v46, 7  ;;  %v470_v49 = vunpack.c.l.s4 %v9262_v48  ;;  %vm9264_vm2 = vmmov 0   ;;  %s9265_s24 = smov 32  }
  0xad   :  { %v9487_v9 = vpack.c.bf16 %v185_v7, %v182_v6  ;;  %v189_v12 = vld [vmem:[#allocation10 + $0x38] sm:$0xff]  ;;  %8085 = vmatprep.subr.bf16.mxu0 %v8084_v4  ;;  %v8088_v13 = vpack.c.bf16 %v235_v11, %v234_v10  ;;  %v192_v14 = vld [vmem:[#allocation10 + $0x50] sm:$0xff]  ;;  %v191_v16 = vld [vmem:[#allocation10 + $0x48] sm:$0xff]  ;;  %vm922_vm3 = vcmask 1041409   ;;  %vm924_vm4 = vcmask 1042434   ;;  %s9267_s11 = smov [#allocation18]  }
  0xae   :  { %10976 = vst [vmem:[#allocation28_spill] sm:$0xff] %v9485_v8  ;;  %v188_v15 = vld [vmem:[#allocation10 + $0x30] sm:$0xff]  ;;  %8087 = vmatpush3.bf16.msra.mxu0 %v8084_v4  ;;  %8101 = vmatprep.subr.bf16.mxu1 %v9485_v8  ;;  %v9490_v17 = vpack.c.bf16 %v192_v14, %v189_v12  ;;  %v236_v18 = vld [vmem:[#allocation11 + $0x20] sm:$0xff]  ;;  %v237_v19 = vld [vmem:[#allocation11 + $0x28] sm:$0xff]  ;;  %v9525_v50 = vsub.s32 0, %v9522_v47  ;;  %v471_v52 = vunpack.c.0.s8 %v470_v49  ;;  %vm926_vm5 = vcmask 1043459  }
  0xaf   :  { %8103 = vmatpush1.bf16.msra.mxu1 %v9487_v9  ;;  %8089 = vmatprep.subr.bf16.mxu0 %v8088_v13  ;;  %v9493_v20 = vpack.c.bf16 %v191_v16, %v188_v15  ;;  %v8092_v21 = vpack.c.bf16 %v237_v19, %v236_v18  ;;  %v224_v22 = vld [vmem:[#allocation7] sm:$0xff]  ;;  %v238_v23 = vld [vmem:[#allocation11 + $0x30] sm:$0xff]  ;;  %v239_v24 = vld [vmem:[#allocation11 + $0x38] sm:$0xff]  ;;  %vm6754_vm6 = vcmask 257024   ;;  %s6779_s22 = sshll.u32 %s9267_s11, 4  ;;  %s6780_s22 = int_to_ptr.vmem [resolvable:$true] %s6779_s22 }
  0xb0   :  { %8105 = vmatprep.subr.bf16.mxu1 %v9490_v17  ;;  %7340 = vmatprep.mubr.msk.f32.mxu0 %vm247_vm0, %v224_v22  ;;  %v195_v25 = vld [vmem:[#allocation13] sm:$0xff]  ;;  %v196_v26 = vld [vmem:[#allocation13 + $0x8] sm:$0xff]  ;;  %v172_v27 = vld [vmem:[#allocation5] sm:$0xf]  ;;  %v8096_v28 = vpack.c.bf16 %v239_v24, %v238_v23  ;;  %10977 = vst [vmem:[#allocation29_spill] sm:$0xff] %v9525_v50  ;;  %v9537_v54 = vsub.s32 %v471_v52, %v9522_v47  ;;  %s9166_s30 = scalar_lea.vmem %s6780_s22, 64  ;;  %p9171_p3 = scmp.lt.s32.totalorder %s6780_s22, %s6780_s22 }
  0xb1   :  { %v9498_v29 = vpack.c.bf16 %v196_v26, %v195_v25  ;;  %v225_v30 = vld [vmem:[#allocation7 + $0x8] sm:$0xff]  ;;  %v226_v31 = vld [vmem:[#allocation7 + $0x10] sm:$0xff]  ;;  %v227_v32 = vld [vmem:[#allocation7 + $0x18] sm:$0xff]  ;;  %p9167_p2 = scmp.ne.s32.totalorder %s6780_s22, %s9166_s30  ;;  %p9172_p4 = scmp.lt.s32.totalorder %s9166_s30, %s9166_s30 }
  0xb2   :  { %8091 = vmatpush3.bf16.msra.mxu0 %v8088_v13  ;;  %v228_v33 = vld [vmem:[#allocation7 + $0x20] sm:$0xff]  ;;  %v229_v34 = vld [vmem:[#allocation7 + $0x28] sm:$0xff]  ;;  %v230_v35 = vld [vmem:[#allocation7 + $0x30] sm:$0xff]  ;;  %10979 = vst [vmem:[#allocation31_spill] sm:$0xff] %v9537_v54 }
  0xb3   :  { %8107 = vmatpush1.bf16.msra.mxu1 %v9493_v20  ;;  %8093 = vmatprep.subr.bf16.mxu0 %v8092_v21  ;;  %v231_v36 = vld [vmem:[#allocation7 + $0x38] sm:$0xff]  ;;  %v197_v37 = vld [vmem:[#allocation13 + $0x10] sm:$0xff]  ;;  %v199_v40 = vld [vmem:[#allocation13 + $0x20] sm:$0xff]  ;;  %p9173_p5 = por %p9172_p4, %p9171_p3 }
  0xb4   :  { %8109 = vmatprep.subr.bf16.mxu1 %v9498_v29  ;;  %v198_v38 = vld [vmem:[#allocation13 + $0x18] sm:$0xff]  ;;  %v200_v41 = vld [vmem:[#allocation13 + $0x28] sm:$0xff]  ;;  %v201_v43 = vld [vmem:[#allocation13 + $0x30] sm:$0xff] }
  0xb5   :  { %v9510_v39 = vpack.c.bf16 %v198_v38, %v197_v37  ;;  %v9514_v42 = vpack.c.bf16 %v200_v41, %v199_v40  ;;  %v202_v44 = vld [vmem:[#allocation13 + $0x38] sm:$0xff]  ;;  %v10884_v38 = vmov 0.0|0.0   ;;  %v220_v41 = vld [vmem:[%s10878_s12 + $0x8] sm:$0xff]  ;;  %v221_v48 = vld [vmem:[%s10878_s12 + $0x10] sm:$0xff]  ;;  %p9174_p6 = pnand %p9173_p5, %p9167_p2 }
  0xb6   :  { %8095 = vmatpush3.bf16.msra.mxu0 %v8092_v21  ;;  %6818 = vmatmul.mubr.msk.f32.vlgmr.msra.gmra.mrb[0].mxu1 %vm393_vm1, %v172_v27  ;;  %v9518_v45 = vpack.c.bf16 %v202_v44, %v201_v43  ;;  %v9530_v51 = vld [vmem:[%s10872_s6] sm:$0x7]  ;;  %v205_v43 = vld [vmem:[#allocation14 + $0x10] sm:$0xff] }
  0xb7   :  { %8097 = vmatprep.subr.bf16.mxu0 %v8096_v28  ;;  %8111 = vmatpush3.bf16.msra.mxu1 %v9498_v29  ;;  %v9534_v53 = vrot.slane %v9530_v51, %v9525_v50  ;;  %v6809_v61 = vld [vmem:[%s10874_s8] ss:$0 sm:$0xff]  ;;  %v222_v49 = vld [vmem:[%s10878_s12 + $0x18] sm:$0xff] }
  0xb8   :  { %8113 = vmatprep.subr.bf16.mxu1 %v9510_v39  ;;  %v219_v40 = vld [vmem:[%s10878_s12] sm:$0xff] }
  0xb9   :  { %10978 = vst [vmem:[#allocation30_spill] sm:$0xff] %v9534_v53  ;;  %v9612_v44 = vpack.c.bf16 %v220_v41, %v219_v40  ;;  %v206_v46 = vld [vmem:[#allocation14 + $0x18] sm:$0xff] }
  0xba   :  { %8099 = vmatpush3.bf16.msra.mxu0 %v8096_v28  ;;  %v9624_v52 = vpack.c.bf16 %v206_v46, %v205_v43 }
  0xbb   :  { %8115 = vmatpush3.bf16.msra.mxu1 %v9510_v39  ;;  %8124 = vmatprep.subr.bf16.mxu0 %v10884_v38  ;;  %10989 = vst [vmem:[#allocation41_spill] sm:$0xff] %v9612_v44 }
  0xbc   :  { %8117 = vmatprep.subr.bf16.mxu1 %v9514_v42  ;;  %10990 = vst [vmem:[#allocation42_spill] sm:$0xff] %v9624_v52 }
  0xbd   :  { %7341 = vmatmul.mubr.msk.f32.vlgmr.msra.gmra.mrb[0].mxu0 %vm247_vm0, %v225_v30 }
  0xbe   :  { %7343 = vmatprep.mubr.msk.f32.mxu0 %vm247_vm0, %v226_v31  ;;  %8126 = vmatpush3.bf16.msra.mxu0 %v9612_v44 }
  0xbf   :  { %8119 = vmatpush3.bf16.msra.mxu1 %v9514_v42  ;;  %8127 = vmatprep.subr.bf16.mxu0 %v10884_v38 }
  0xc0   :  { %8121 = vmatprep.subr.bf16.mxu1 %v9518_v45 }
  0xc1   :  { %7344 = vmatmul.mubr.msk.f32.gmra.mrb[2].mxu0 %vm247_vm0, %v227_v32 }
  0xc2   :  { %7346 = vmatprep.mubr.msk.f32.mxu0 %vm247_vm0, %v228_v33 }
  0xc3   :  { %8123 = vmatpush3.bf16.msra.mxu1 %v9518_v45 }
  0xc4   :  { %8130 = vmatprep.subr.bf16.mxu1 %v10884_v38 }
  0xc5   :  { %7347 = vmatmul.mubr.msk.f32.gmra.mrb[4].mxu0 %vm247_vm0, %v229_v34 }
  0xc6   :  { %7349 = vmatprep.mubr.msk.f32.mxu0 %vm247_vm0, %v230_v35  ;;  %v203_v35 = vld [vmem:[#allocation14] sm:$0xff] }
  0xc9   :  { %7350 = vmatmul.mubr.msk.f32.gmra.mrb[6].mxu0 %vm247_vm0, %v231_v36  ;;  %v204_v36 = vld [vmem:[#allocation14 + $0x8] sm:$0xff] }
  0xca   :  { %v9600_v37 = vpack.c.bf16 %v204_v36, %v203_v35  ;;  %7388 = vmatprep.mubr.msk.f32.mxu0 %vm9264_vm2, %v10886_v0 }
  0xcc   :  { %10988 = vst [vmem:[#allocation40_spill] sm:$0xff] %v9600_v37 }
 0x189   :  { %v463_v55 = vpop.f32.mrb[0].mxu1 }
 0x18a   :  { %v464_v56 = vadd.f32 %v463_v55, %v9534_v53  ;;  %v9540_v57 = vpop.f32.mrb[1].mxu1  ;;  %v207_v55 = vld [vmem:[#allocation14 + $0x20] sm:$0xff] }
 0x18c   :  { %v475_v58 = vrot.slane %v464_v56, %v9537_v54  ;;  %v208_v56 = vld [vmem:[#allocation14 + $0x28] sm:$0xff] }
 0x18e   :  { %v476_v59 = vcombine.high %v475_v58, %v475_v58  ;;  %v483_v60 = vrot.slane %v475_v58, %v9537_v54  ;;  %v9627_v58 = vpack.c.bf16 %v222_v49, %v221_v48  ;;  %v9671_v48 = vld [vmem:[#allocation8 + $0x38] sm:$0xff] }
 0x18f   :  { %10995 = vst [vmem:[#allocation47_spill] sm:$0xff] %v9671_v48 }
 0x190   :  { %v496_v62 = vrot.slane %v483_v60, %v9525_v50  ;;  %v7342_v63 = vpop.f32.mrb[0].mxu0  ;;  %v490_v3 = vrot.slane %v476_v59, %v9537_v54  ;;  %v491_v11 = vcombine.high %v483_v60, %v483_v60  ;;  %10991 = vst [vmem:[#allocation43_spill] sm:$0xff] %v9627_v58  ;;  %v9631_v59 = vpack.c.bf16 %v208_v56, %v207_v55  ;;  %v209_v60 = vld [vmem:[#allocation14 + $0x30] sm:$0xff] }
 0x191   :  { %v9548_v1 = vadd.f32 %v7342_v63, %v6809_v61  ;;  %v338_v2 = vpop.f32.mrb[1].mxu0  ;;  %8129 = vmatpush3.bf16.msra.mxu0 %v9627_v58 }
 0x192   :  { %v9551_v4 = vadd.f32 %v6809_v61, %v338_v2  ;;  %v500_v12 = vrot.slane %v490_v3, %v9525_v50  ;;  %v492_v18 = vcombine.high %v490_v3, %v490_v3  ;;  %v504_v21 = vrot.slane %v491_v11, %v9525_v50  ;;  %10992 = vst [vmem:[#allocation44_spill] sm:$0xff] %v9631_v59  ;;  %v173_v2 = vld [vmem:[%s10868_s2] sm:$0xf]  ;;  %v9649_v3 = vld [vmem:[#allocation8 + $0x8] sm:$0xff] }
 0x193   :  { %10980 = vst [vmem:[#allocation32_spill] sm:$0xff] %v9548_v1  ;;  %728 = vrot.lane.b32.xlu0 %v9548_v1, %s9253_s10  ;;  %v514_v14 = vmul.f32 %v496_v62, %v9548_v1  ;;  %8150 = vmatprep.subr.bf16.mxu0 %v10884_v38 }
 0x194   :  { %10981 = vst [vmem:[#allocation33_spill] sm:$0xff] %v9551_v4  ;;  %v7345_v5 = vpop.f32.mrb[2].mxu0  ;;  %v513_v6 = vmul.f32 %v496_v62, %v9551_v4  ;;  %v508_v32 = vrot.slane %v492_v18, %v9525_v50  ;;  %v838_v62 = vld [vmem:[#allocation2] sm:$0xf] }
 0x195   :  { %v9556_v7 = vadd.f32 %v7345_v5, %v6809_v61  ;;  %v348_v10 = vpop.f32.mrb[3].mxu0  ;;  %7389 = vmatmul.mubr.msk.f32.vlgmr.msra.gmra.mrb[8].mxu0 %vm393_vm1, %v838_v62  ;;  %v9651_v5 = vld [vmem:[#allocation8] sm:$0xff] }
 0x196   :  { %v9559_v13 = vadd.f32 %v6809_v61, %v348_v10  ;;  %7368 = vmatprep.mubr.msk.f32.mxu1 %vm247_vm0, %v513_v6  ;;  %7418 = vmatprep.mubr.msk.f32.mxu0 %vm9264_vm2, %v10886_v0 }
 0x197   :  { %10982 = vst [vmem:[#allocation34_spill] sm:$0xff] %v9556_v7  ;;  %732 = vrot.lane.b32.xlu1 %v9556_v7, %s9253_s10  ;;  %726 = vrot.lane.b32.xlu0 %v9551_v4, %s9253_s10  ;;  %v516_v24 = vmul.f32 %v500_v12, %v9556_v7 }
 0x198   :  { %10983 = vst [vmem:[#allocation35_spill] sm:$0xff] %v9559_v13  ;;  %7369 = vmatmul.mubr.msk.f32.vlgmr.msra.gmra.mrb[2].mxu1 %vm247_vm0, %v514_v14  ;;  %v7348_v15 = vpop.f32.mrb[4].mxu0  ;;  %v515_v16 = vmul.f32 %v500_v12, %v9559_v13  ;;  %v9655_v14 = vld [vmem:[#allocation8 + $0x18] sm:$0xff] }
 0x199   :  { %v358_v19 = vpop.f32.mrb[5].mxu0  ;;  %v9570_v22 = vadd.f32 %v7348_v15, %v6809_v61  ;;  %8132 = vmatpush3.bf16.msra.mxu1 %v9600_v37 }
 0x19a   :  { %v9572_v23 = vadd.f32 %v6809_v61, %v358_v19  ;;  %7371 = vmatprep.mubr.msk.f32.mxu1 %vm247_vm0, %v515_v16  ;;  %8133 = vmatprep.subr.bf16.mxu1 %v10884_v38  ;;  %v9658_v16 = vld [vmem:[#allocation8 + $0x10] sm:$0xff] }
 0x19b   :  { %10984 = vst [vmem:[#allocation36_spill] sm:$0xff] %v9570_v22  ;;  %730 = vrot.lane.b32.xlu1 %v9559_v13, %s9253_s10  ;;  %v518_v31 = vmul.f32 %v504_v21, %v9570_v22 }
 0x19c   :  { %10985 = vst [vmem:[#allocation37_spill] sm:$0xff] %v9572_v23  ;;  %7372 = vmatmul.mubr.msk.f32.gmra.mrb[4].mxu1 %vm247_vm0, %v516_v24  ;;  %v7351_v25 = vpop.f32.mrb[6].mxu0  ;;  %734 = vrot.lane.b32.xlu0 %v9572_v23, %s9253_s10  ;;  %v517_v26 = vmul.f32 %v504_v21, %v9572_v23 }
 0x19d   :  { %v368_v27 = vpop.f32.mrb[7].mxu0  ;;  %v9582_v28 = vadd.f32 %v7351_v25, %v6809_v61  ;;  %8135 = vmatpush3.bf16.msra.mxu1 %v9624_v52 }
 0x19e   :  { %v9584_v30 = vadd.f32 %v6809_v61, %v368_v27  ;;  %7374 = vmatprep.mubr.msk.f32.mxu1 %vm247_vm0, %v517_v26  ;;  %8136 = vmatprep.subr.bf16.mxu1 %v10884_v38  ;;  %v210_v61 = vld [vmem:[#allocation14 + $0x38] sm:$0xff]  ;;  %v9663_v27 = vld [vmem:[#allocation8 + $0x28] sm:$0xff] }
 0x19f   :  { %10986 = vst [vmem:[#allocation38_spill] sm:$0xff] %v9582_v28  ;;  %736 = vrot.lane.b32.xlu1 %v9570_v22, %s9253_s10  ;;  %v520_v34 = vmul.f32 %v508_v32, %v9582_v28  ;;  %v9636_v63 = vpack.c.bf16 %v210_v61, %v209_v60  ;;  %v9674_v60 = vld [vmem:[#allocation8 + $0x30] sm:$0xff] }
 0x1a0   :  { %10987 = vst [vmem:[#allocation39_spill] sm:$0xff] %v9584_v30  ;;  %7375 = vmatmul.mubr.msk.f32.gmra.mrb[6].mxu1 %vm247_vm0, %v518_v31  ;;  %738 = vrot.lane.b32.xlu0 %v9584_v30, %s9253_s10  ;;  %v519_v33 = vmul.f32 %v508_v32, %v9584_v30  ;;  %10996 = vst [vmem:[#allocation48_spill] sm:$0xff] %v9674_v60 }
 0x1a1   :  { %8138 = vmatpush3.bf16.msra.mxu1 %v9631_v59  ;;  %10993 = vst [vmem:[#allocation45_spill] sm:$0xff] %v9636_v63 }
 0x1a2   :  { %7377 = vmatprep.mubr.msk.f32.mxu1 %vm247_vm0, %v519_v33  ;;  %8139 = vmatprep.subr.bf16.mxu1 %v10884_v38  ;;  %v9666_v33 = vld [vmem:[#allocation8 + $0x20] sm:$0xff] }
 0x1a3   :  { %740 = vrot.lane.b32.xlu1 %v9582_v28, %s9253_s10  ;;  %10994 = vst [vmem:[#allocation46_spill] sm:$0xff] %v9666_v33 }
 0x1a4   :  { %7378 = vmatmul.mubr.msk.f32.gmra.mrb[8].mxu1 %vm247_vm0, %v520_v34 }
 0x1a5   :  { %7407 = vmatprep.mubr.msk.f32.mxu1 %vm9264_vm2, %v10886_v0  ;;  %8141 = vmatpush3.bf16.msra.mxu1 %v9636_v63 }
 0x1a6   :  { %8143 = vmatprep.subr.bf16.mxu1 %v9485_v8 }
 0x1a7   :  { %1010 = vrot.lane.b32.xlu1 %v173_v2, %s9265_s24 }
 0x26b   :  { %v7370_v6 = vpop.f32.mrb[2].mxu1 }
 0x26c   :  { %v651_v10 = vadd.f32 %v7370_v6, %v9649_v3  ;;  %v611_v11 = vpop.f32.mrb[3].mxu1 }
 0x26d   :  { %v650_v12 = vadd.f32 %v611_v11, %v9651_v5 }
 0x26e   :  { %v659_v15 = vsel %vm247_vm0, %v651_v10, -inf }
 0x26f   :  { %v658_v18 = vsel %vm247_vm0, %v650_v12, -inf  ;;  %v7373_v19 = vpop.f32.mrb[4].mxu1 }
 0x270   :  { %v660_v21 = vmax.f32 %v658_v18, %v659_v15  ;;  %v653_v24 = vadd.f32 %v7373_v19, %v9655_v14  ;;  %v621_v25 = vpop.f32.mrb[5].mxu1 }
 0x271   :  { %v652_v26 = vadd.f32 %v621_v25, %v9658_v16 }
 0x272   :  { %v661_v31 = vrot.slane %v660_v21, 4  ;;  %v668_v32 = vsel %vm247_vm0, %v653_v24, -inf }
 0x273   :  { %v667_v34 = vsel %vm247_vm0, %v652_v26, -inf  ;;  %v7376_v35 = vpop.f32.mrb[6].mxu1 }
 0x274   :  { %v662_v36 = vmax.f32 %v660_v21, %v661_v31  ;;  %v669_v40 = vmax.f32 %v667_v34, %v668_v32  ;;  %v655_v41 = vadd.f32 %v7376_v35, %v9663_v27  ;;  %v631_v43 = vpop.f32.mrb[7].mxu1 }
 0x275   :  { %v654_v46 = vadd.f32 %v631_v43, %v9666_v33 }
 0x276   :  { %v663_v49 = vrot.slane %v662_v36, 2  ;;  %v670_v55 = vrot.slane %v669_v40, 4  ;;  %v677_v56 = vsel %vm247_vm0, %v655_v41, -inf }
 0x277   :  { %v676_v61 = vsel %vm247_vm0, %v654_v46, -inf  ;;  %v7379_v62 = vpop.f32.mrb[8].mxu1 }
 0x278   :  { %v664_v2 = vmax.f32 %v662_v36, %v663_v49  ;;  %v671_v6 = vmax.f32 %v669_v40, %v670_v55  ;;  %v678_v11 = vmax.f32 %v676_v61, %v677_v56  ;;  %v657_v15 = vadd.f32 %v7379_v62, %v9671_v48  ;;  %v641_v18 = vpop.f32.mrb[9].mxu1 }
 0x279   :  { %v656_v19 = vadd.f32 %v641_v18, %v9674_v60 }
 0x27a   :  { %v665_v21 = vrot.slane %v664_v2, 1  ;;  %v672_v25 = vrot.slane %v671_v6, 2  ;;  %v679_v31 = vrot.slane %v678_v11, 4  ;;  %v686_v32 = vsel %vm247_vm0, %v657_v15, -inf }
 0x27b   :  { %v685_v34 = vsel %vm247_vm0, %v656_v19, -inf }
 0x27c   :  { %v666_v35 = vmax.f32 %v664_v2, %v665_v21  ;;  %v673_v43 = vmax.f32 %v671_v6, %v672_v25  ;;  %v680_v38 = vmax.f32 %v678_v11, %v679_v31  ;;  %v687_v0 = vmax.f32 %v685_v34, %v686_v32 }
 0x27e   :  { %v694_v8 = vsub.f32 %v650_v12, %v666_v35  ;;  %v695_v36 = vsub.f32 %v651_v10, %v666_v35  ;;  %v674_v40 = vrot.slane %v673_v43, 1  ;;  %v681_v49 = vrot.slane %v680_v38, 2  ;;  %v9681_v12 = vpop.permute.xlu0 %728 }
 0x27f   :  { %v688_v55 = vrot.slane %v687_v0, 4 }
 0x280   :  { %v702_v56 = vmul.f32 1.442695, %v694_v8  ;;  %v704_v61 = vmul.f32 1.442695, %v695_v36  ;;  %v675_v62 = vmax.f32 %v673_v43, %v674_v40  ;;  %v682_v18 = vmax.f32 %v680_v38, %v681_v49 }
 0x281   :  { %v689_v58 = vmax.f32 %v687_v0, %v688_v55  ;;  %v9683_v0 = vpop.permute.xlu1 %732 }
 0x282   :  { %8652 = vpow2.f32 %v702_v56  ;;  %v696_v44 = vsub.f32 %v652_v26, %v675_v62  ;;  %v697_v60 = vsub.f32 %v653_v24, %v675_v62  ;;  %v683_v48 = vrot.slane %v682_v18, 1  ;;  %10997 = vst [vmem:[#allocation49_spill] sm:$0xff] %v9683_v0 }
 0x283   :  { %8654 = vpow2.f32 %v704_v61  ;;  %v690_v33 = vrot.slane %v689_v58, 2 }
 0x284   :  { %v706_v2 = vmul.f32 1.442695, %v696_v44  ;;  %v708_v6 = vmul.f32 1.442695, %v697_v60  ;;  %v684_v11 = vmax.f32 %v682_v18, %v683_v48  ;;  %v9685_v60 = vpop.permute.xlu0 %726 }
 0x285   :  { %v691_v21 = vmax.f32 %v689_v58, %v690_v33  ;;  %v9691_v43 = vpop.permute.xlu1 %730 }
 0x286   :  { %8656 = vpow2.f32 %v706_v2  ;;  %v698_v10 = vsub.f32 %v654_v46, %v684_v11  ;;  %v699_v25 = vsub.f32 %v655_v41, %v684_v11 }
 0x287   :  { %8658 = vpow2.f32 %v708_v6  ;;  %v692_v8 = vrot.slane %v691_v21, 1 }
 0x288   :  { %v710_v31 = vmul.f32 1.442695, %v698_v10  ;;  %v712_v38 = vmul.f32 1.442695, %v699_v25  ;;  %v9699_v6 = vpop.permute.xlu0 %734 }
 0x289   :  { %v693_v26 = vmax.f32 %v691_v21, %v692_v8  ;;  %10998 = vst [vmem:[#allocation50_spill] sm:$0xff] %v9699_v6 }
 0x28a   :  { %8660 = vpow2.f32 %v710_v31 }
 0x28b   :  { %8662 = vpow2.f32 %v712_v38  ;;  %v700_v24 = vsub.f32 %v656_v19, %v693_v26  ;;  %v701_v32 = vsub.f32 %v657_v15, %v693_v26  ;;  %v9703_v26 = vpop.permute.xlu1 %736 }
 0x28c   :  { %v8653_v44 = vpop.eup %8652  ;;  %10999 = vst [vmem:[#allocation51_spill] sm:$0xff] %v9703_v26 }
 0x28d   :  { %v8655_v58 = vpop.eup %8654  ;;  %v750_v33 = vmul.f32 %v8653_v44, %v9685_v60  ;;  %v794_v46 = vsel %vm247_vm0, %v8653_v44, 0.0  ;;  %v714_v41 = vmul.f32 1.442695, %v700_v24  ;;  %v716_v48 = vmul.f32 1.442695, %v701_v32 }
 0x28e   :  { %v751_v34 = vmul.f32 %v8655_v58, %v9681_v12  ;;  %v795_v35 = vsel %vm247_vm0, %v8655_v58, 0.0 }
 0x28f   :  { %v758_v36 = vsel %vm247_vm0, %v750_v33, 0.0  ;;  %v796_v19 = vadd.f32 %v795_v35, %v794_v46  ;;  %8664 = vpow2.f32 %v714_v41 }
 0x290   :  { %v8657_v15 = vpop.eup %8656  ;;  %v759_v40 = vsel %vm247_vm0, %v751_v34, 0.0  ;;  %8666 = vpow2.f32 %v716_v48 }
 0x291   :  { %v8659_v49 = vpop.eup %8658  ;;  %v760_v55 = vadd.f32 %v759_v40, %v758_v36  ;;  %v797_v56 = vrot.slane %v796_v19, 4  ;;  %v752_v61 = vmul.f32 %v8657_v15, %v9691_v43  ;;  %v803_v62 = vsel %vm247_vm0, %v8657_v15, 0.0 }
 0x292   :  { %v753_v18 = vmul.f32 %v8659_v49, %v9683_v0  ;;  %v804_v2 = vsel %vm247_vm0, %v8659_v49, 0.0 }
 0x293   :  { %v761_v11 = vrot.slane %v760_v55, 4  ;;  %v798_v21 = vadd.f32 %v797_v56, %v796_v19  ;;  %v767_v10 = vsel %vm247_vm0, %v752_v61, 0.0  ;;  %v805_v25 = vadd.f32 %v804_v2, %v803_v62 }
 0x294   :  { %v8661_v8 = vpop.eup %8660  ;;  %v768_v31 = vsel %vm247_vm0, %v753_v18, 0.0 }
 0x295   :  { %v8663_v38 = vpop.eup %8662  ;;  %v762_v24 = vadd.f32 %v761_v11, %v760_v55  ;;  %v799_v32 = vrot.slane %v798_v21, 2  ;;  %v769_v44 = vadd.f32 %v768_v31, %v767_v10  ;;  %v806_v58 = vrot.slane %v805_v25, 4  ;;  %v9711_v55 = vpop.permute.xlu0 %738 }
 0x296   :  { %v754_v33 = vmul.f32 %v8661_v8, %v9699_v6  ;;  %v755_v46 = vmul.f32 %v8663_v38, %v9703_v26  ;;  %v812_v41 = vsel %vm247_vm0, %v8661_v8, 0.0  ;;  %v813_v48 = vsel %vm247_vm0, %v8663_v38, 0.0  ;;  %11000 = vst [vmem:[#allocation52_spill] sm:$0xff] %v9711_v55 }
 0x297   :  { %v800_v34 = vadd.f32 %v799_v32, %v798_v21  ;;  %v770_v35 = vrot.slane %v769_v44, 4  ;;  %v807_v36 = vadd.f32 %v806_v58, %v805_v25  ;;  %v814_v40 = vadd.f32 %v813_v48, %v812_v41  ;;  %v9715_v25 = vpop.permute.xlu1 %740 }
 0x298   :  { %v776_v19 = vsel %vm247_vm0, %v754_v33, 0.0  ;;  %v777_v15 = vsel %vm247_vm0, %v755_v46, 0.0  ;;  %v763_v56 = vrot.slane %v762_v24, 2  ;;  %11001 = vst [vmem:[#allocation53_spill] sm:$0xff] %v9715_v25 }
 0x299   :  { %v8665_v49 = vpop.eup %8664  ;;  %v801_v61 = vrot.slane %v800_v34, 1  ;;  %v808_v62 = vrot.slane %v807_v36, 2  ;;  %v778_v18 = vadd.f32 %v777_v15, %v776_v19  ;;  %v771_v11 = vadd.f32 %v770_v35, %v769_v44 }
 0x29a   :  { %v8667_v2 = vpop.eup %8666  ;;  %v815_v10 = vrot.slane %v814_v40, 4  ;;  %v756_v8 = vmul.f32 %v8665_v49, %v9711_v55  ;;  %v821_v21 = vsel %vm247_vm0, %v8665_v49, 0.0  ;;  %v764_v49 = vadd.f32 %v763_v56, %v762_v24 }
 0x29b   :  { %v802_v31 = vadd.f32 %v801_v61, %v800_v34  ;;  %v809_v38 = vadd.f32 %v808_v62, %v807_v36  ;;  %v779_v32 = vrot.slane %v778_v18, 4  ;;  %v757_v33 = vmul.f32 %v8667_v2, %v9715_v25 }
 0x29c   :  { %v816_v58 = vadd.f32 %v815_v10, %v814_v40  ;;  %v785_v46 = vsel %vm247_vm0, %v756_v8, 0.0  ;;  %v822_v41 = vsel %vm247_vm0, %v8667_v2, 0.0  ;;  %v772_v35 = vrot.slane %v771_v11, 2 }
 0x29d   :  { %8668 = vrcp.f32 %v802_v31  ;;  %v810_v48 = vrot.slane %v809_v38, 1  ;;  %v823_v44 = vadd.f32 %v822_v41, %v821_v21  ;;  %v786_v15 = vsel %vm247_vm0, %v757_v33, 0.0 }
 0x29e   :  { %v817_v19 = vrot.slane %v816_v58, 2  ;;  %v780_v26 = vadd.f32 %v779_v32, %v778_v18  ;;  %v787_v34 = vadd.f32 %v786_v15, %v785_v46  ;;  %v765_v8 = vrot.slane %v764_v49, 1 }
 0x29f   :  { %v811_v55 = vadd.f32 %v810_v48, %v809_v38  ;;  %v824_v36 = vrot.slane %v823_v44, 4  ;;  %v773_v25 = vadd.f32 %v772_v35, %v771_v11 }
 0x2a0   :  { %v818_v61 = vadd.f32 %v817_v19, %v816_v58  ;;  %v788_v40 = vrot.slane %v787_v34, 4  ;;  %v781_v31 = vrot.slane %v780_v26, 2  ;;  %v766_v0 = vadd.f32 %v765_v8, %v764_v49 }
 0x2a1   :  { %8670 = vrcp.f32 %v811_v55  ;;  %v825_v62 = vadd.f32 %v824_v36, %v823_v44  ;;  %v774_v33 = vrot.slane %v773_v25, 1 }
 0x2a2   :  { %v819_v10 = vrot.slane %v818_v61, 1  ;;  %v789_v21 = vadd.f32 %v788_v40, %v787_v34  ;;  %v782_v18 = vadd.f32 %v781_v31, %v780_v26  ;;  %v914_v40 = vpop.f32.mrb[8].mxu0 }
 0x2a3   :  { %v826_v2 = vrot.slane %v825_v62, 2  ;;  %v775_v55 = vadd.f32 %v774_v33, %v773_v25 }
 0x2a4   :  { %v820_v6 = vadd.f32 %v819_v10, %v818_v61  ;;  %v790_v38 = vrot.slane %v789_v21, 2  ;;  %v783_v48 = vrot.slane %v782_v18, 1  ;;  %v11002_v61 = vmov 0.0  }
 0x2a5   :  { %v827_v41 = vadd.f32 %v826_v2, %v825_v62  ;;  %v7390_v62 = vpop.f32.mrb[9].mxu0  ;;  %v384_v10 = vsub.s32 1, %v9522_v47  ;;  %v9737_v2 = vld [vmem:[%s10879_s13] ss:$0 sm:$0xff] }
 0x2a6   :  { %8672 = vrcp.f32 %v820_v6  ;;  %v791_v11 = vadd.f32 %v790_v38, %v789_v21  ;;  %v784_v19 = vadd.f32 %v783_v48, %v782_v18  ;;  %v915_v21 = vadd.f32 %v9737_v2, %v914_v40 }
 0x2a7   :  { %v8669_v24 = vpop.eup %8668  ;;  %v828_v56 = vrot.slane %v827_v41, 1  ;;  %v9732_v8 = vrot.slane %v9530_v51, %v384_v10 }
 0x2a8   :  { %v834_v32 = vmul.f32 %v8669_v24, %v766_v0  ;;  %v792_v6 = vrot.slane %v791_v11, 1 }
 0x2a9   :  { %v829_v58 = vadd.f32 %v828_v56, %v827_v41  ;;  %v466_v31 = vadd.f32 %v9540_v57, %v9732_v8  ;;  %v1011_v57 = vpop.permute.xlu1 %1010 }
 0x2aa   :  { %v793_v26 = vadd.f32 %v792_v6, %v791_v11 }
 0x2ab   :  { %v8671_v46 = vpop.eup %8670  ;;  %8674 = vrcp.f32 %v829_v58 }
 0x2ac   :  { %v835_v44 = vmul.f32 %v8671_v46, %v775_v55 }
 0x2ae   :  { %v923_v35 = vsel %vm922_vm3, %v835_v44, %v834_v32 }
 0x2b0   :  { %v8673_v15 = vpop.eup %8672 }
 0x2b1   :  { %v836_v49 = vmul.f32 %v8673_v15, %v784_v19  ;;  %v187_v19 = vld [vmem:[#allocation10 + $0x28] sm:$0xff]  ;;  %v190_v15 = vld [vmem:[#allocation10 + $0x40] sm:$0xff] }
 0x2b3   :  { %v925_v34 = vsel %vm924_vm4, %v836_v49, %v923_v35  ;;  %v184_v35 = vld [vmem:[#allocation10 + $0x10] sm:$0xff]  ;;  %v193_v49 = vld [vmem:[#allocation10 + $0x58] sm:$0xff] }
 0x2b4   :  { %v9747_v6 = vpack.c.bf16 %v187_v19, %v184_v35 }
 0x2b5   :  { %v8675_v36 = vpop.eup %8674 }
 0x2b6   :  { %v837_v0 = vmul.f32 %v8675_v36, %v793_v26  ;;  %8152 = vmatpush3.bf16.msra.mxu0 %v9747_v6  ;;  %v11003_v26 = vmov 0.0|0.0  }
 0x2b7   :  { %8153 = vmatprep.subr.bf16.mxu0 %v11003_v26 }
 0x2b8   :  { %v927_v25 = vsel %vm926_vm5, %v837_v0, %v925_v34  ;;  %v9750_v34 = vpack.c.bf16 %v193_v49, %v190_v15  ;;  %v211_v49 = vld [vmem:[#allocation16] sm:$0xff] }
 0x2b9   :  { %7408 = vmatmul.mubr.msk.f32.vlgmr.msra.gmra.mrb[10].mxu1 %vm247_vm0, %v927_v25 }
 0x2ba   :  { %8145 = vmatpush1.bf16.msra.mxu1 %v9487_v9  ;;  %1099 = vmatprep.mubr.f32.mxu1 %v11002_v61 }
 0x2bb   :  { %8147 = vmatprep.subr.bf16.mxu1 %v9490_v17  ;;  %8155 = vmatpush3.bf16.msra.mxu0 %v9750_v34 }
 0x2bc   :  { %8172 = vmatprep.subr.bf16.mxu0 %v11003_v26 }
 0x2be   :  { %8149 = vmatpush1.bf16.msra.mxu1 %v9493_v20 }
 0x2bf   :  { %8157 = vmatprep.subr.bf16.mxu1 %v9498_v29 }
 0x38c   :  { %v996_v41 = vpop.f32.mrb[10].mxu1 }
 0x38d   :  { %v1000_v33 = vadd.f32 %v996_v41, %v466_v31  ;;  %v7409_v24 = vpop.f32.mrb[11].mxu1 }
 0x38f   :  { %v1001_v56 = vadd.f32 %v1000_v33, %v915_v21 }
 0x391   :  { %8676 = vtanh.f32 %v1001_v56  ;;  %v6830_v51 = vmul.f32 -1.442695, %v1001_v56 }
 0x393   :  { %8678 = vpow2.f32 %v6830_v51 }
 0x39b   :  { %v8677_v18 = vpop.eup %8676 }
 0x39c   :  { %1015 = vrot.lane.b32.xlu0 %v8677_v18, %s9253_s10 }
 0x39d   :  { %v8679_v38 = vpop.eup %8678 }
 0x39e   :  { %v1005_v32 = vadd.f32 1.0, %v8679_v38 }
 0x3a0   :  { %8680 = vrcp.f32 %v1005_v32 }
 0x3aa   :  { %v8681_v58 = vpop.eup %8680 }
 0x3ab   :  { %v1013_v48 = vmul.f32 %v8681_v58, %v1011_v57 }
 0x40e   :  { %v1016_v55 = vpop.permute.xlu0 %1015 }
 0x40f   :  { %v1018_v46 = vmul.f32 %v8681_v58, %v1016_v55 }
 0x411   :  { %1020 = vrot.lane.b32.xlu0 %v1018_v46, %s9265_s24 }
 0x483   :  { %v1021_v11 = vpop.permute.xlu0 %1020 }
 0x484   :  { %v9744_v44 = vadd.f32 %v1021_v11, %v1013_v48 }
 0x486   :  { %8682 = vtanh.f32 %v9744_v44 }
 0x490   :  { %v8683_v36 = vpop.eup %8682 }
 0x491   :  { %1026 = vrot.lane.b32.xlu1 %v8683_v36, %s9253_s10  ;;  %v212_v36 = vld [vmem:[#allocation16 + $0x8] sm:$0xff] }
 0x503   :  { %v1027_v0 = vpop.permute.xlu1 %1026 }
 0x504   :  { %v1029_v25 = vmul.f32 %v8681_v58, %v1027_v0  ;;  %v9805_v0 = vpack.c.bf16 %v212_v36, %v211_v49 }
 0x506   :  { %1031 = vrot.lane.b32.xlu0 %v1029_v25, %s9265_s24  ;;  %v213_v25 = vld [vmem:[#allocation16 + $0x10] sm:$0xff] }
 0x578   :  { %v1032_v40 = vpop.permute.xlu0 %1031 }
 0x579   :  { %6831 = vmatmul.mubr.msk.f32.vlgmr.msra.gmra.mrb[12].mxu1 %vm393_vm1, %v1032_v40  ;;  %7419 = vmatmul.mubr.msk.f32.vlgmr.msra.gmra.mrb[10].mxu0 %vm393_vm1, %v1032_v40  ;;  %v214_v40 = vld [vmem:[#allocation16 + $0x18] sm:$0xff] }
 0x57a   :  { %8159 = vmatpush3.bf16.msra.mxu1 %v9498_v29  ;;  %7465 = vmatprep.mubr.msk.f32.mxu0 %vm9264_vm2, %v11002_v61 }
 0x57b   :  { %8161 = vmatprep.subr.bf16.mxu1 %v9510_v39  ;;  %8174 = vmatpush3.bf16.msra.mxu0 %v9805_v0 }
 0x57c   :  { %8175 = vmatprep.subr.bf16.mxu0 %v11003_v26 }
 0x57e   :  { %8163 = vmatpush3.bf16.msra.mxu1 %v9510_v39 }
 0x57f   :  { %8165 = vmatprep.subr.bf16.mxu1 %v9514_v42 }
 0x582   :  { %8167 = vmatpush3.bf16.msra.mxu1 %v9514_v42 }
 0x583   :  { %8169 = vmatprep.subr.bf16.mxu1 %v9518_v45 }
 0x586   :  { %8171 = vmatpush3.bf16.msra.mxu1 %v9518_v45 }
 0x587   :  { %8190 = vmatprep.subr.bf16.mxu1 %v11003_v26 }
 0x64c   :  { %v1101_v62 = vpop.f32.mrb[12].mxu1 }
 0x64d   :  { %v1102_v10 = vadd.f32 %v1101_v62, %v9534_v53  ;;  %v9770_v31 = vpop.f32.mrb[13].mxu1  ;;  %v9809_v62 = vpack.c.bf16 %v214_v40, %v213_v25 }
 0x64f   :  { %v1183_v21 = vrot.slane %v1102_v10, %v9537_v54  ;;  %v215_v10 = vld [vmem:[#allocation16 + $0x20] sm:$0xff]  ;;  %8177 = vmatpush3.bf16.msra.mxu0 %v9809_v62 }
 0x650   :  { %8178 = vmatprep.subr.bf16.mxu0 %v11003_v26 }
 0x651   :  { %v1184_v41 = vcombine.high %v1183_v21, %v1183_v21  ;;  %v1191_v33 = vrot.slane %v1183_v21, %v9537_v54  ;;  %v216_v21 = vld [vmem:[#allocation16 + $0x28] sm:$0xff] }
 0x653   :  { %v1198_v24 = vrot.slane %v1184_v41, %v9537_v54  ;;  %v1204_v56 = vrot.slane %v1191_v33, %v9525_v50  ;;  %v1199_v18 = vcombine.high %v1191_v33, %v1191_v33  ;;  %v9812_v41 = vpack.c.bf16 %v216_v21, %v215_v10  ;;  %v217_v33 = vld [vmem:[#allocation16 + $0x30] sm:$0xff]  ;;  %v11005_v10 = vld [vmem:[#allocation46_spill] sm:$0xff] }
 0x655   :  { %v1208_v51 = vrot.slane %v1198_v24, %v9525_v50  ;;  %v1222_v38 = vmul.f32 %v1204_v56, %v9548_v1  ;;  %v1221_v32 = vmul.f32 %v1204_v56, %v9551_v4  ;;  %v1200_v55 = vcombine.high %v1198_v24, %v1198_v24  ;;  %v218_v24 = vld [vmem:[#allocation16 + $0x38] sm:$0xff]  ;;  %8180 = vmatpush3.bf16.msra.mxu0 %v9812_v41 }
 0x656   :  { %v1212_v46 = vrot.slane %v1199_v18, %v9525_v50  ;;  %v9816_v56 = vpack.c.bf16 %v218_v24, %v217_v33  ;;  %8181 = vmatprep.subr.bf16.mxu0 %v11003_v26 }
 0x657   :  { %v1223_v58 = vmul.f32 %v1208_v51, %v9559_v13  ;;  %7437 = vmatprep.mubr.msk.f32.mxu1 %vm247_vm0, %v1221_v32  ;;  %v1224_v57 = vmul.f32 %v1208_v51, %v9556_v7  ;;  %v1216_v11 = vrot.slane %v1200_v55, %v9525_v50 }
 0x658   :  { %7438 = vmatmul.mubr.msk.f32.vlgmr.msra.gmra.mrb[14].mxu1 %vm247_vm0, %v1222_v38  ;;  %v1225_v48 = vmul.f32 %v1212_v46, %v9572_v23  ;;  %v1226_v35 = vmul.f32 %v1212_v46, %v9570_v22  ;;  %11004 = vst [vmem:[#allocation54_spill] sm:$0xff] %v9816_v56 }
 0x659   :  { %7440 = vmatprep.mubr.msk.f32.mxu1 %vm247_vm0, %v1223_v58  ;;  %8192 = vmatpush3.bf16.msra.mxu1 %v9600_v37  ;;  %v1227_v19 = vmul.f32 %v1216_v11, %v9584_v30  ;;  %v1228_v15 = vmul.f32 %v1216_v11, %v9582_v28 }
 0x65a   :  { %8193 = vmatprep.subr.bf16.mxu1 %v11003_v26  ;;  %8183 = vmatpush3.bf16.msra.mxu0 %v9816_v56 }
 0x65b   :  { %8184 = vmatprep.subr.bf16.mxu0 %v11003_v26 }
 0x65c   :  { %7441 = vmatmul.mubr.msk.f32.gmra.mrb[16].mxu1 %vm247_vm0, %v1224_v57 }
 0x65d   :  { %7443 = vmatprep.mubr.msk.f32.mxu1 %vm247_vm0, %v1225_v48  ;;  %8195 = vmatpush3.bf16.msra.mxu1 %v9624_v52 }
 0x65e   :  { %8196 = vmatprep.subr.bf16.mxu1 %v11003_v26 }
 0x660   :  { %7444 = vmatmul.mubr.msk.f32.gmra.mrb[18].mxu1 %vm247_vm0, %v1226_v35 }
 0x661   :  { %7446 = vmatprep.mubr.msk.f32.mxu1 %vm247_vm0, %v1227_v19  ;;  %8198 = vmatpush3.bf16.msra.mxu1 %v9631_v59 }
 0x662   :  { %8199 = vmatprep.subr.bf16.mxu1 %v11003_v26 }
 0x664   :  { %7447 = vmatmul.mubr.msk.f32.gmra.mrb[20].mxu1 %vm247_vm0, %v1228_v15 }
 0x665   :  { %8201 = vmatpush3.bf16.msra.mxu1 %v9636_v63  ;;  %7495 = vmatprep.mubr.msk.f32.mxu1 %vm9264_vm2, %v11002_v61 }
 0x666   :  { %8210 = vmatprep.subr.bf16.mxu1 %v11003_v26 }
 0x72b   :  { %v7439_v18 = vpop.f32.mrb[14].mxu1 }
 0x72c   :  { %v1359_v51 = vadd.f32 %v7439_v18, %v9649_v3  ;;  %v1319_v38 = vpop.f32.mrb[15].mxu1 }
 0x72d   :  { %v1358_v32 = vadd.f32 %v1319_v38, %v9651_v5 }
 0x72e   :  { %v1367_v58 = vsel %vm247_vm0, %v1359_v51, -inf }
 0x72f   :  { %v1366_v55 = vsel %vm247_vm0, %v1358_v32, -inf  ;;  %v7442_v46 = vpop.f32.mrb[16].mxu1 }
 0x730   :  { %v1368_v57 = vmax.f32 %v1366_v55, %v1367_v58  ;;  %v1361_v48 = vadd.f32 %v7442_v46, %v9655_v14  ;;  %v1329_v11 = vpop.f32.mrb[17].mxu1  ;;  %v11006_v46 = vld [vmem:[#allocation47_spill] sm:$0xff] }
 0x731   :  { %v1360_v35 = vadd.f32 %v1329_v11, %v9658_v16 }
 0x732   :  { %v1369_v19 = vrot.slane %v1368_v57, 4  ;;  %v1376_v15 = vsel %vm247_vm0, %v1361_v48, -inf }
 0x733   :  { %v1375_v49 = vsel %vm247_vm0, %v1360_v35, -inf  ;;  %v7445_v3 = vpop.f32.mrb[18].mxu1 }
 0x734   :  { %v1370_v36 = vmax.f32 %v1368_v57, %v1369_v19  ;;  %v1377_v25 = vmax.f32 %v1375_v49, %v1376_v15  ;;  %v1363_v5 = vadd.f32 %v7445_v3, %v9663_v27  ;;  %v1339_v40 = vpop.f32.mrb[19].mxu1  ;;  %v11007_v57 = vld [vmem:[#allocation48_spill] sm:$0xff] }
 0x735   :  { %v1362_v21 = vadd.f32 %v1339_v40, %v11005_v10 }
 0x736   :  { %v1371_v33 = vrot.slane %v1370_v36, 2  ;;  %v1378_v24 = vrot.slane %v1377_v25, 4  ;;  %v1385_v14 = vsel %vm247_vm0, %v1363_v5, -inf }
 0x737   :  { %v1384_v18 = vsel %vm247_vm0, %v1362_v21, -inf  ;;  %v7448_v16 = vpop.f32.mrb[20].mxu1 }
 0x738   :  { %v1372_v38 = vmax.f32 %v1370_v36, %v1371_v33  ;;  %v1379_v58 = vmax.f32 %v1377_v25, %v1378_v24  ;;  %v1386_v55 = vmax.f32 %v1384_v18, %v1385_v14  ;;  %v1365_v11 = vadd.f32 %v7448_v16, %v11006_v46  ;;  %v1349_v63 = vpop.f32.mrb[21].mxu1 }
 0x739   :  { %v1364_v19 = vadd.f32 %v1349_v63, %v11007_v57 }
 0x73a   :  { %v1373_v15 = vrot.slane %v1372_v38, 1  ;;  %v1380_v27 = vrot.slane %v1379_v58, 2  ;;  %v1387_v49 = vrot.slane %v1386_v55, 4  ;;  %v1394_v3 = vsel %vm247_vm0, %v1365_v11, -inf }
 0x73b   :  { %v1393_v40 = vsel %vm247_vm0, %v1364_v19, -inf }
 0x73c   :  { %v1374_v10 = vmax.f32 %v1372_v38, %v1373_v15  ;;  %v1381_v28 = vmax.f32 %v1379_v58, %v1380_v27  ;;  %v1388_v59 = vmax.f32 %v1386_v55, %v1387_v49  ;;  %v1395_v30 = vmax.f32 %v1393_v40, %v1394_v3 }
 0x73e   :  { %v1402_v22 = vsub.f32 %v1358_v32, %v1374_v10  ;;  %v1403_v36 = vsub.f32 %v1359_v51, %v1374_v10  ;;  %v1382_v25 = vrot.slane %v1381_v28, 1  ;;  %v1389_v33 = vrot.slane %v1388_v59, 2 }
 0x73f   :  { %v1396_v24 = vrot.slane %v1395_v30, 4 }
 0x740   :  { %v1410_v14 = vmul.f32 1.442695, %v1402_v22  ;;  %v1412_v18 = vmul.f32 1.442695, %v1403_v36  ;;  %v1383_v16 = vmax.f32 %v1381_v28, %v1382_v25  ;;  %v1390_v63 = vmax.f32 %v1388_v59, %v1389_v33 }
 0x741   :  { %v1397_v46 = vmax.f32 %v1395_v30, %v1396_v24 }
 0x742   :  { %8684 = vpow2.f32 %v1410_v14  ;;  %v1404_v57 = vsub.f32 %v1360_v35, %v1383_v16  ;;  %v1405_v52 = vsub.f32 %v1361_v48, %v1383_v16  ;;  %v1391_v23 = vrot.slane %v1390_v63, 1 }
 0x743   :  { %8686 = vpow2.f32 %v1412_v18  ;;  %v1398_v7 = vrot.slane %v1397_v46, 2  ;;  %v11008_v18 = vld [vmem:[#allocation49_spill] sm:$0xff] }
 0x744   :  { %v1414_v38 = vmul.f32 1.442695, %v1404_v57  ;;  %v1416_v58 = vmul.f32 1.442695, %v1405_v52  ;;  %v1392_v55 = vmax.f32 %v1390_v63, %v1391_v23 }
 0x745   :  { %v1399_v15 = vmax.f32 %v1397_v46, %v1398_v7 }
 0x746   :  { %8688 = vpow2.f32 %v1414_v38  ;;  %v1406_v51 = vsub.f32 %v1362_v21, %v1392_v55  ;;  %v1407_v32 = vsub.f32 %v1363_v5, %v1392_v55 }
 0x747   :  { %8690 = vpow2.f32 %v1416_v58  ;;  %v1400_v27 = vrot.slane %v1399_v15, 1 }
 0x748   :  { %v1418_v22 = vmul.f32 1.442695, %v1406_v51  ;;  %v1420_v49 = vmul.f32 1.442695, %v1407_v32 }
 0x749   :  { %v1401_v28 = vmax.f32 %v1399_v15, %v1400_v27 }
 0x74a   :  { %8692 = vpow2.f32 %v1418_v22 }
 0x74b   :  { %8694 = vpow2.f32 %v1420_v49  ;;  %v1408_v30 = vsub.f32 %v1364_v19, %v1401_v28  ;;  %v1409_v59 = vsub.f32 %v1365_v11, %v1401_v28  ;;  %v11009_v28 = vld [vmem:[#allocation50_spill] sm:$0xff] }
 0x74c   :  { %v8685_v48 = vpop.eup %8684 }
 0x74d   :  { %v8687_v35 = vpop.eup %8686  ;;  %v1426_v3 = vmul.f32 %v8685_v48, %v9685_v60  ;;  %v1470_v52 = vsel %vm247_vm0, %v8685_v48, 0.0  ;;  %v1422_v23 = vmul.f32 1.442695, %v1408_v30  ;;  %v1424_v7 = vmul.f32 1.442695, %v1409_v59  ;;  %v11010_v59 = vld [vmem:[#allocation51_spill] sm:$0xff] }
 0x74e   :  { %v1427_v21 = vmul.f32 %v8687_v35, %v9681_v12  ;;  %v1471_v5 = vsel %vm247_vm0, %v8687_v35, 0.0 }
 0x74f   :  { %v1434_v40 = vsel %vm247_vm0, %v1426_v3, 0.0  ;;  %v1472_v10 = vadd.f32 %v1471_v5, %v1470_v52  ;;  %8696 = vpow2.f32 %v1422_v23 }
 0x750   :  { %v8689_v36 = vpop.eup %8688  ;;  %v1435_v19 = vsel %vm247_vm0, %v1427_v21, 0.0  ;;  %8698 = vpow2.f32 %v1424_v7 }
 0x751   :  { %v8691_v11 = vpop.eup %8690  ;;  %v1436_v25 = vadd.f32 %v1435_v19, %v1434_v40  ;;  %v1473_v33 = vrot.slane %v1472_v10, 4  ;;  %v1428_v24 = vmul.f32 %v8689_v36, %v9691_v43  ;;  %v1479_v14 = vsel %vm247_vm0, %v8689_v36, 0.0 }
 0x752   :  { %v1429_v16 = vmul.f32 %v8691_v11, %v11008_v18  ;;  %v1480_v63 = vsel %vm247_vm0, %v8691_v11, 0.0 }
 0x753   :  { %v1437_v46 = vrot.slane %v1436_v25, 4  ;;  %v1474_v57 = vadd.f32 %v1473_v33, %v1472_v10  ;;  %v1443_v38 = vsel %vm247_vm0, %v1428_v24, 0.0  ;;  %v1481_v58 = vadd.f32 %v1480_v63, %v1479_v14 }
 0x754   :  { %v8693_v55 = vpop.eup %8692  ;;  %v1444_v15 = vsel %vm247_vm0, %v1429_v16, 0.0  ;;  %v11011_v16 = vld [vmem:[#allocation52_spill] sm:$0xff] }
 0x755   :  { %v8695_v51 = vpop.eup %8694  ;;  %v1438_v32 = vadd.f32 %v1437_v46, %v1436_v25  ;;  %v1475_v27 = vrot.slane %v1474_v57, 2  ;;  %v1445_v22 = vadd.f32 %v1444_v15, %v1443_v38  ;;  %v1482_v49 = vrot.slane %v1481_v58, 4 }
 0x756   :  { %v1430_v30 = vmul.f32 %v8693_v55, %v11009_v28  ;;  %v1431_v48 = vmul.f32 %v8695_v51, %v11010_v59  ;;  %v1488_v35 = vsel %vm247_vm0, %v8693_v55, 0.0  ;;  %v1489_v3 = vsel %vm247_vm0, %v8695_v51, 0.0  ;;  %v11012_v55 = vld [vmem:[#allocation53_spill] sm:$0xff] }
 0x757   :  { %v1476_v52 = vadd.f32 %v1475_v27, %v1474_v57  ;;  %v1446_v23 = vrot.slane %v1445_v22, 4  ;;  %v1483_v7 = vadd.f32 %v1482_v49, %v1481_v58  ;;  %v1490_v21 = vadd.f32 %v1489_v3, %v1488_v35 }
 0x758   :  { %v1452_v5 = vsel %vm247_vm0, %v1430_v30, 0.0  ;;  %v1453_v40 = vsel %vm247_vm0, %v1431_v48, 0.0  ;;  %v1439_v25 = vrot.slane %v1438_v32, 2 }
 0x759   :  { %v8697_v10 = vpop.eup %8696  ;;  %v1477_v36 = vrot.slane %v1476_v52, 1  ;;  %v1484_v19 = vrot.slane %v1483_v7, 2  ;;  %v1454_v11 = vadd.f32 %v1453_v40, %v1452_v5  ;;  %v1447_v24 = vadd.f32 %v1446_v23, %v1445_v22 }
 0x75a   :  { %v8699_v33 = vpop.eup %8698  ;;  %v1491_v14 = vrot.slane %v1490_v21, 4  ;;  %v1432_v63 = vmul.f32 %v8697_v10, %v11011_v16  ;;  %v1497_v46 = vsel %vm247_vm0, %v8697_v10, 0.0  ;;  %v1440_v23 = vadd.f32 %v1439_v25, %v1438_v32 }
 0x75b   :  { %v1478_v57 = vadd.f32 %v1477_v36, %v1476_v52  ;;  %v1485_v38 = vadd.f32 %v1484_v19, %v1483_v7  ;;  %v1455_v58 = vrot.slane %v1454_v11, 4  ;;  %v1433_v15 = vmul.f32 %v8699_v33, %v11012_v55 }
 0x75c   :  { %v1492_v51 = vadd.f32 %v1491_v14, %v1490_v21  ;;  %v1461_v27 = vsel %vm247_vm0, %v1432_v63, 0.0  ;;  %v1498_v49 = vsel %vm247_vm0, %v8699_v33, 0.0  ;;  %v1448_v5 = vrot.slane %v1447_v24, 2 }
 0x75d   :  { %8700 = vrcp.f32 %v1478_v57  ;;  %v1486_v30 = vrot.slane %v1485_v38, 1  ;;  %v1462_v48 = vsel %vm247_vm0, %v1433_v15, 0.0  ;;  %v1499_v22 = vadd.f32 %v1498_v49, %v1497_v46 }
 0x75e   :  { %v1493_v35 = vrot.slane %v1492_v51, 2  ;;  %v1463_v3 = vadd.f32 %v1462_v48, %v1461_v27  ;;  %v1456_v7 = vadd.f32 %v1455_v58, %v1454_v11  ;;  %v1441_v14 = vrot.slane %v1440_v23, 1 }
 0x75f   :  { %v1487_v40 = vadd.f32 %v1486_v30, %v1485_v38  ;;  %v1500_v52 = vrot.slane %v1499_v22, 4  ;;  %v1449_v63 = vadd.f32 %v1448_v5, %v1447_v24 }
 0x760   :  { %v1494_v10 = vadd.f32 %v1493_v35, %v1492_v51  ;;  %v1464_v36 = vrot.slane %v1463_v3, 4  ;;  %v1457_v57 = vrot.slane %v1456_v7, 2  ;;  %v1442_v46 = vadd.f32 %v1441_v14, %v1440_v23  ;;  %v11015_v14 = vld [vmem:[#allocation28_spill] sm:$0xff] }
 0x761   :  { %8702 = vrcp.f32 %v1487_v40  ;;  %v1501_v21 = vadd.f32 %v1500_v52, %v1499_v22  ;;  %v1450_v27 = vrot.slane %v1449_v63, 1 }
 0x762   :  { %v1495_v19 = vrot.slane %v1494_v10, 1  ;;  %v1465_v16 = vadd.f32 %v1464_v36, %v1463_v3  ;;  %v1458_v38 = vadd.f32 %v1457_v57, %v1456_v7 }
 0x763   :  { %v1502_v33 = vrot.slane %v1501_v21, 2  ;;  %v1451_v51 = vadd.f32 %v1450_v27, %v1449_v63  ;;  %v388_v63 = vsub.s32 2, %v9522_v47 }
 0x764   :  { %v1496_v55 = vadd.f32 %v1495_v19, %v1494_v10  ;;  %v1466_v49 = vrot.slane %v1465_v16, 2  ;;  %v1459_v48 = vrot.slane %v1458_v38, 1  ;;  %v1596_v19 = vld [vmem:[#allocation2 + $0x4] sm:$0xf] }
 0x765   :  { %v1503_v15 = vadd.f32 %v1502_v33, %v1501_v21  ;;  %v11013_v21 = vld [vmem:[#allocation41_spill] sm:$0xff]  ;;  %v8932_v33 = vld [vmem:[%s10872_s6] sm:$0x7] }
 0x766   :  { %8704 = vrcp.f32 %v1496_v55  ;;  %v1467_v22 = vadd.f32 %v1466_v49, %v1465_v16  ;;  %v1460_v5 = vadd.f32 %v1459_v48, %v1458_v38  ;;  %v11014_v16 = vld [vmem:[#allocation43_spill] sm:$0xff]  ;;  %v9888_v57 = vrot.slane %v8932_v33, %v388_v63 }
 0x767   :  { %v8701_v32 = vpop.eup %8700  ;;  %v1504_v25 = vrot.slane %v1503_v15, 1 }
 0x768   :  { %v1510_v11 = vmul.f32 %v8701_v32, %v1442_v46  ;;  %v1468_v40 = vrot.slane %v1467_v22, 1 }
 0x769   :  { %v1505_v58 = vadd.f32 %v1504_v25, %v1503_v15  ;;  %v1104_v15 = vadd.f32 %v9770_v31, %v9732_v8 }
 0x76a   :  { %v1469_v52 = vadd.f32 %v1468_v40, %v1467_v22 }
 0x76b   :  { %v8703_v30 = vpop.eup %8702  ;;  %8706 = vrcp.f32 %v1505_v58 }
 0x76c   :  { %v1511_v24 = vmul.f32 %v8703_v30, %v1451_v51 }
 0x76e   :  { %v1518_v35 = vsel %vm922_vm3, %v1511_v24, %v1510_v11 }
 0x770   :  { %v8705_v3 = vpop.eup %8704 }
 0x771   :  { %v1512_v55 = vmul.f32 %v8705_v3, %v1460_v5 }
 0x773   :  { %v1519_v23 = vsel %vm924_vm4, %v1512_v55, %v1518_v35 }
 0x775   :  { %v8707_v10 = vpop.eup %8706 }
 0x776   :  { %v1513_v7 = vmul.f32 %v8707_v10, %v1469_v52 }
 0x778   :  { %v1520_v36 = vsel %vm926_vm5, %v1513_v7, %v1519_v23 }
 0x779   :  { %7466 = vmatmul.mubr.msk.f32.vlgmr.msra.gmra.mrb[10].mxu0 %vm247_vm0, %v1520_v36  ;;  %7496 = vmatmul.mubr.msk.f32.vlgmr.msra.gmra.mrb[22].mxu1 %vm247_vm0, %v1520_v36 }
 0x77a   :  { %8186 = vmatpush3.bf16.msra.mxu0 %v11013_v21  ;;  %7476 = vmatprep.mubr.msk.f32.mxu0 %vm9264_vm2, %v11002_v61 }
 0x77b   :  { %8187 = vmatprep.subr.bf16.mxu0 %v11003_v26  ;;  %8212 = vmatpush3.bf16.msra.mxu1 %v9747_v6 }
 0x77c   :  { %8213 = vmatprep.subr.bf16.mxu1 %v11003_v26  ;;  %7506 = vmatprep.mubr.msk.f32.mxu1 %vm9264_vm2, %v11002_v61 }
 0x77e   :  { %8189 = vmatpush3.bf16.msra.mxu0 %v11014_v16 }
 0x77f   :  { %8203 = vmatprep.subr.bf16.mxu0 %v11015_v14  ;;  %8215 = vmatpush3.bf16.msra.mxu1 %v9750_v34 }
 0x780   :  { %8232 = vmatprep.subr.bf16.mxu1 %v11003_v26 }
 0x781   :  { %7477 = vmatmul.mubr.msk.f32.vlgmr.msra.gmra.mrb[12].mxu0 %vm393_vm1, %v1596_v19 }
 0x782   :  { %8205 = vmatpush1.bf16.msra.mxu0 %v9487_v9  ;;  %1835 = vmatprep.mubr.f32.mxu0 %v11002_v61 }
 0x783   :  { %8207 = vmatprep.subr.bf16.mxu0 %v9490_v17 }
 0x786   :  { %8209 = vmatpush1.bf16.msra.mxu0 %v9493_v20 }
 0x787   :  { %8217 = vmatprep.subr.bf16.mxu0 %v9498_v29 }
 0x84c   :  { %v1589_v46 = vpop.f32.mrb[10].mxu0  ;;  %v1736_v27 = vpop.f32.mrb[22].mxu1 }
 0x84d   :  { %v8604_v32 = vadd.f32 %v1589_v46, %v9888_v57  ;;  %v1740_v25 = vadd.f32 %v1736_v27, %v1104_v15  ;;  %v7467_v38 = vpop.f32.mrb[11].mxu0  ;;  %v7497_v49 = vpop.f32.mrb[23].mxu1 }
 0x84f   :  { %1594 = vst [vmem:[#allocation17] sm:$0xf] %v8604_v32 }
 0x854   :  { %v1666_v11 = vpop.f32.mrb[12].mxu0 }
 0x855   :  { %v1667_v47 = vadd.f32 %v9737_v2, %v1666_v11  ;;  %v7478_v58 = vpop.f32.mrb[13].mxu0 }
 0x856   :  { %v11016_v58 = vld [vmem:[#allocation34_spill] sm:$0xff] }
 0x857   :  { %v1741_v51 = vadd.f32 %v1740_v25, %v1667_v47 }
 0x859   :  { %8708 = vtanh.f32 %v1741_v51  ;;  %v6844_v48 = vmul.f32 -1.442695, %v1741_v51 }
 0x85b   :  { %8710 = vpow2.f32 %v6844_v48 }
 0x863   :  { %v8709_v30 = vpop.eup %8708 }
 0x864   :  { %1751 = vrot.lane.b32.xlu1 %v8709_v30, %s9253_s10  ;;  %v11017_v30 = vld [vmem:[#allocation37_spill] sm:$0xff] }
 0x865   :  { %v8711_v31 = vpop.eup %8710 }
 0x866   :  { %v1745_v22 = vadd.f32 1.0, %v8711_v31 }
 0x868   :  { %8712 = vrcp.f32 %v1745_v22  ;;  %v11018_v22 = vld [vmem:[#allocation42_spill] sm:$0xff] }
 0x872   :  { %v8713_v24 = vpop.eup %8712 }
 0x873   :  { %v1749_v3 = vmul.f32 %v8713_v24, %v9744_v44 }
 0x8d6   :  { %v1752_v35 = vpop.permute.xlu1 %1751 }
 0x8d7   :  { %v1754_v5 = vmul.f32 %v8713_v24, %v1752_v35 }
 0x8d9   :  { %1756 = vrot.lane.b32.xlu0 %v1754_v5, %s9265_s24  ;;  %v11020_v5 = vld [vmem:[#allocation39_spill] sm:$0xff] }
 0x94b   :  { %v1757_v40 = vpop.permute.xlu0 %1756 }
 0x94c   :  { %v9897_v2 = vadd.f32 %v1757_v40, %v1749_v3  ;;  %v11021_v40 = vld [vmem:[#allocation44_spill] sm:$0xff] }
 0x94e   :  { %8714 = vtanh.f32 %v9897_v2 }
 0x958   :  { %v8715_v55 = vpop.eup %8714 }
 0x959   :  { %1762 = vrot.lane.b32.xlu1 %v8715_v55, %s9253_s10  ;;  %v11022_v55 = vld [vmem:[#allocation38_spill] sm:$0xff] }
 0x9cb   :  { %v1763_v23 = vpop.permute.xlu1 %1762 }
 0x9cc   :  { %v1765_v52 = vmul.f32 %v8713_v24, %v1763_v23  ;;  %v11019_v24 = vld [vmem:[#allocation36_spill] sm:$0xff] }
 0x9ce   :  { %1767 = vrot.lane.b32.xlu0 %v1765_v52, %s9265_s24  ;;  %v11023_v52 = vld [vmem:[#allocation45_spill] sm:$0xff] }
 0xa40   :  { %v1768_v10 = vpop.permute.xlu0 %1767 }
 0xa41   :  { %6845 = vmatmul.mubr.msk.f32.vlgmr.msra.gmra.mrb[14].mxu0 %vm393_vm1, %v1768_v10  ;;  %7507 = vmatmul.mubr.msk.f32.vlgmr.msra.gmra.mrb[24].mxu1 %vm393_vm1, %v1768_v10 }
 0xa42   :  { %8219 = vmatpush3.bf16.msra.mxu0 %v9498_v29  ;;  %8234 = vmatpush3.bf16.msra.mxu1 %v9805_v0 }
 0xa43   :  { %8221 = vmatprep.subr.bf16.mxu0 %v9510_v39  ;;  %8235 = vmatprep.subr.bf16.mxu1 %v11003_v26 }
 0xa44   :  { %7553 = vmatprep.mubr.msk.f32.mxu1 %vm9264_vm2, %v11002_v61 }
 0xa46   :  { %8223 = vmatpush3.bf16.msra.mxu0 %v9510_v39  ;;  %8237 = vmatpush3.bf16.msra.mxu1 %v9809_v62 }
 0xa47   :  { %8225 = vmatprep.subr.bf16.mxu0 %v9514_v42  ;;  %8238 = vmatprep.subr.bf16.mxu1 %v11003_v26 }
 0xa4a   :  { %8227 = vmatpush3.bf16.msra.mxu0 %v9514_v42  ;;  %8240 = vmatpush3.bf16.msra.mxu1 %v9812_v41 }
 0xa4b   :  { %8229 = vmatprep.subr.bf16.mxu0 %v9518_v45  ;;  %8241 = vmatprep.subr.bf16.mxu1 %v11003_v26 }
 0xa4e   :  { %8231 = vmatpush3.bf16.msra.mxu0 %v9518_v45  ;;  %8243 = vmatpush3.bf16.msra.mxu1 %v9816_v56 }
 0xa4f   :  { %8250 = vmatprep.subr.bf16.mxu0 %v11003_v26  ;;  %8244 = vmatprep.subr.bf16.mxu1 %v11003_v26 }
 0xb14   :  { %v1837_v44 = vpop.f32.mrb[14].mxu0 }
 0xb15   :  { %v1838_v7 = vadd.f32 %v1837_v44, %v9534_v53  ;;  %v9923_v36 = vpop.f32.mrb[15].mxu0  ;;  %v9958_v44 = vld [vmem:[#allocation8 + $0x8] sm:$0xff] }
 0xb16   :  { %11024 = vst [vmem:[#allocation46_spill] sm:$0xff] %v9958_v44 }
 0xb17   :  { %v1919_v19 = vrot.slane %v1838_v7, %v9537_v54 }
 0xb19   :  { %v1920_v63 = vcombine.high %v1919_v19, %v1919_v19  ;;  %v1927_v33 = vrot.slane %v1919_v19, %v9537_v54 }
 0xb1b   :  { %v1934_v15 = vrot.slane %v1920_v63, %v9537_v54  ;;  %v1940_v46 = vrot.slane %v1927_v33, %v9525_v50  ;;  %v1935_v27 = vcombine.high %v1927_v33, %v1927_v33  ;;  %v9961_v63 = vld [vmem:[#allocation8] sm:$0xff] }
 0xb1c   :  { %11025 = vst [vmem:[#allocation47_spill] sm:$0xff] %v9961_v63 }
 0xb1d   :  { %v1944_v32 = vrot.slane %v1934_v15, %v9525_v50  ;;  %v1958_v25 = vmul.f32 %v1940_v46, %v9548_v1  ;;  %v1957_v38 = vmul.f32 %v1940_v46, %v9551_v4  ;;  %v1936_v11 = vcombine.high %v1934_v15, %v1934_v15 }
 0xb1e   :  { %v1948_v47 = vrot.slane %v1935_v27, %v9525_v50 }
 0xb1f   :  { %v1959_v49 = vmul.f32 %v1944_v32, %v9559_v13  ;;  %7525 = vmatprep.mubr.msk.f32.mxu0 %vm247_vm0, %v1957_v38  ;;  %v1960_v51 = vmul.f32 %v1944_v32, %v11016_v58  ;;  %v1952_v31 = vrot.slane %v1936_v11, %v9525_v50  ;;  %v9969_v11 = vld [vmem:[#allocation8 + $0x10] sm:$0xff] }
 0xb20   :  { %7526 = vmatmul.mubr.msk.f32.vlgmr.msra.gmra.mrb[16].mxu0 %vm247_vm0, %v1958_v25  ;;  %v1961_v48 = vmul.f32 %v1948_v47, %v11017_v30  ;;  %v1962_v35 = vmul.f32 %v1948_v47, %v11019_v24  ;;  %v9966_v25 = vld [vmem:[#allocation8 + $0x18] sm:$0xff]  ;;  %11027 = vst [vmem:[#allocation49_spill] sm:$0xff] %v9969_v11 }
 0xb21   :  { %7528 = vmatprep.mubr.msk.f32.mxu0 %vm247_vm0, %v1959_v49  ;;  %8252 = vmatpush3.bf16.msra.mxu0 %v9600_v37  ;;  %v1963_v3 = vmul.f32 %v1952_v31, %v11020_v5  ;;  %v1964_v23 = vmul.f32 %v1952_v31, %v11022_v55  ;;  %11026 = vst [vmem:[#allocation48_spill] sm:$0xff] %v9966_v25 }
 0xb22   :  { %8253 = vmatprep.subr.bf16.mxu0 %v11003_v26 }
 0xb24   :  { %7529 = vmatmul.mubr.msk.f32.gmra.mrb[18].mxu0 %vm247_vm0, %v1960_v51 }
 0xb25   :  { %7531 = vmatprep.mubr.msk.f32.mxu0 %vm247_vm0, %v1961_v48  ;;  %8255 = vmatpush3.bf16.msra.mxu0 %v11018_v22 }
 0xb26   :  { %8256 = vmatprep.subr.bf16.mxu0 %v11003_v26 }
 0xb28   :  { %7532 = vmatmul.mubr.msk.f32.gmra.mrb[20].mxu0 %vm247_vm0, %v1962_v35 }
 0xb29   :  { %7534 = vmatprep.mubr.msk.f32.mxu0 %vm247_vm0, %v1963_v3  ;;  %8258 = vmatpush3.bf16.msra.mxu0 %v11021_v40 }
 0xb2a   :  { %8259 = vmatprep.subr.bf16.mxu0 %v11003_v26 }
 0xb2c   :  { %7535 = vmatmul.mubr.msk.f32.gmra.mrb[22].mxu0 %vm247_vm0, %v1964_v23 }
 0xb2d   :  { %8261 = vmatpush3.bf16.msra.mxu0 %v11023_v52  ;;  %7583 = vmatprep.mubr.msk.f32.mxu0 %vm9264_vm2, %v11002_v61 }
 0xb2e   :  { %8270 = vmatprep.subr.bf16.mxu0 %v11003_v26 }
 0xbf3   :  { %v7527_v10 = vpop.f32.mrb[16].mxu0 }
 0xbf4   :  { %v2095_v7 = vadd.f32 %v9958_v44, %v7527_v10  ;;  %v2055_v19 = vpop.f32.mrb[17].mxu0  ;;  %v9974_v10 = vld [vmem:[#allocation8 + $0x28] sm:$0xff] }
 0xbf5   :  { %v2094_v33 = vadd.f32 %v9961_v63, %v2055_v19  ;;  %11028 = vst [vmem:[#allocation50_spill] sm:$0xff] %v9974_v10 }
 0xbf6   :  { %v2103_v15 = vsel %vm247_vm0, %v2095_v7, -inf }
 0xbf7   :  { %v2102_v46 = vsel %vm247_vm0, %v2094_v33, -inf  ;;  %v7530_v27 = vpop.f32.mrb[18].mxu0 }
 0xbf8   :  { %v2104_v32 = vmax.f32 %v2102_v46, %v2103_v15  ;;  %v2097_v38 = vadd.f32 %v9966_v25, %v7530_v27  ;;  %v2065_v49 = vpop.f32.mrb[19].mxu0  ;;  %v9977_v46 = vld [vmem:[#allocation8 + $0x20] sm:$0xff] }
 0xbf9   :  { %v2096_v47 = vadd.f32 %v9969_v11, %v2065_v49  ;;  %11029 = vst [vmem:[#allocation51_spill] sm:$0xff] %v9977_v46 }
 0xbfa   :  { %v2105_v51 = vrot.slane %v2104_v32, 4  ;;  %v2112_v48 = vsel %vm247_vm0, %v2097_v38, -inf }
 0xbfb   :  { %v2111_v31 = vsel %vm247_vm0, %v2096_v47, -inf  ;;  %v7533_v35 = vpop.f32.mrb[20].mxu0 }
 0xbfc   :  { %v2106_v3 = vmax.f32 %v2104_v32, %v2105_v51  ;;  %v2113_v23 = vmax.f32 %v2111_v31, %v2112_v48  ;;  %v2099_v19 = vadd.f32 %v9974_v10, %v7533_v35  ;;  %v2075_v15 = vpop.f32.mrb[21].mxu0  ;;  %v9982_v51 = vld [vmem:[#allocation8 + $0x38] sm:$0xff]  ;;  %v9985_v35 = vld [vmem:[#allocation8 + $0x30] sm:$0xff] }
 0xbfd   :  { %v2098_v27 = vadd.f32 %v9977_v46, %v2075_v15  ;;  %11030 = vst [vmem:[#allocation41_spill] sm:$0xff] %v9982_v51  ;;  %11031 = vst [vmem:[#allocation43_spill] sm:$0xff] %v9985_v35 }
 0xbfe   :  { %v2107_v25 = vrot.slane %v2106_v3, 2  ;;  %v2114_v63 = vrot.slane %v2113_v23, 4  ;;  %v2121_v49 = vsel %vm247_vm0, %v2099_v19, -inf }
 0xbff   :  { %v2120_v11 = vsel %vm247_vm0, %v2098_v27, -inf  ;;  %v7536_v44 = vpop.f32.mrb[22].mxu0 }
 0xc00   :  { %v2108_v52 = vmax.f32 %v2106_v3, %v2107_v25  ;;  %v2115_v55 = vmax.f32 %v2113_v23, %v2114_v63  ;;  %v2122_v32 = vmax.f32 %v2120_v11, %v2121_v49  ;;  %v2101_v48 = vadd.f32 %v9982_v51, %v7536_v44  ;;  %v2085_v31 = vpop.f32.mrb[23].mxu0 }
 0xc01   :  { %v2100_v10 = vadd.f32 %v9985_v35, %v2085_v31 }
 0xc02   :  { %v2109_v15 = vrot.slane %v2108_v52, 1  ;;  %v2116_v46 = vrot.slane %v2115_v55, 2  ;;  %v2123_v40 = vrot.slane %v2122_v32, 4  ;;  %v2130_v5 = vsel %vm247_vm0, %v2101_v48, -inf }
 0xc03   :  { %v2129_v24 = vsel %vm247_vm0, %v2100_v10, -inf }
 0xc04   :  { %v2110_v22 = vmax.f32 %v2108_v52, %v2109_v15  ;;  %v2117_v25 = vmax.f32 %v2115_v55, %v2116_v46  ;;  %v2124_v63 = vmax.f32 %v2122_v32, %v2123_v40  ;;  %v2131_v11 = vmax.f32 %v2129_v24, %v2130_v5 }
 0xc06   :  { %v2138_v3 = vsub.f32 %v2094_v33, %v2110_v22  ;;  %v2139_v23 = vsub.f32 %v2095_v7, %v2110_v22  ;;  %v2118_v49 = vrot.slane %v2117_v25, 1  ;;  %v2125_v44 = vrot.slane %v2124_v63, 2 }
 0xc07   :  { %v2132_v51 = vrot.slane %v2131_v11, 4 }
 0xc08   :  { %v2146_v30 = vmul.f32 1.442695, %v2138_v3  ;;  %v2148_v58 = vmul.f32 1.442695, %v2139_v23  ;;  %v2119_v37 = vmax.f32 %v2117_v25, %v2118_v49  ;;  %v2126_v31 = vmax.f32 %v2124_v63, %v2125_v44 }
 0xc09   :  { %v2133_v35 = vmax.f32 %v2131_v11, %v2132_v51 }
 0xc0a   :  { %8716 = vpow2.f32 %v2146_v30  ;;  %v2140_v13 = vsub.f32 %v2096_v47, %v2119_v37  ;;  %v2141_v4 = vsub.f32 %v2097_v38, %v2119_v37  ;;  %v2127_v1 = vrot.slane %v2126_v31, 1 }
 0xc0b   :  { %8718 = vpow2.f32 %v2148_v58  ;;  %v2134_v50 = vrot.slane %v2133_v35, 2 }
 0xc0c   :  { %v2150_v52 = vmul.f32 1.442695, %v2140_v13  ;;  %v2152_v55 = vmul.f32 1.442695, %v2141_v4  ;;  %v2128_v40 = vmax.f32 %v2126_v31, %v2127_v1 }
 0xc0d   :  { %v2135_v24 = vmax.f32 %v2133_v35, %v2134_v50 }
 0xc0e   :  { %8720 = vpow2.f32 %v2150_v52  ;;  %v2142_v22 = vsub.f32 %v2098_v27, %v2128_v40  ;;  %v2143_v5 = vsub.f32 %v2099_v19, %v2128_v40 }
 0xc0f   :  { %8722 = vpow2.f32 %v2152_v55  ;;  %v2136_v7 = vrot.slane %v2135_v24, 1 }
 0xc10   :  { %v2154_v33 = vmul.f32 1.442695, %v2142_v22  ;;  %v2156_v46 = vmul.f32 1.442695, %v2143_v5 }
 0xc11   :  { %v2137_v32 = vmax.f32 %v2135_v24, %v2136_v7 }
 0xc12   :  { %8724 = vpow2.f32 %v2154_v33 }
 0xc13   :  { %8726 = vpow2.f32 %v2156_v46  ;;  %v2144_v30 = vsub.f32 %v2100_v10, %v2137_v32  ;;  %v2145_v47 = vsub.f32 %v2101_v48, %v2137_v32 }
 0xc14   :  { %v8717_v37 = vpop.eup %8716 }
 0xc15   :  { %v8719_v38 = vpop.eup %8718  ;;  %v2162_v58 = vmul.f32 %v8717_v37, %v9685_v60  ;;  %v2206_v4 = vsel %vm247_vm0, %v8717_v37, 0.0  ;;  %v2158_v1 = vmul.f32 1.442695, %v2144_v30  ;;  %v2160_v50 = vmul.f32 1.442695, %v2145_v47 }
 0xc16   :  { %v2163_v13 = vmul.f32 %v8719_v38, %v9681_v12  ;;  %v2207_v19 = vsel %vm247_vm0, %v8719_v38, 0.0 }
 0xc17   :  { %v2170_v27 = vsel %vm247_vm0, %v2162_v58, 0.0  ;;  %v2208_v51 = vadd.f32 %v2207_v19, %v2206_v4  ;;  %8728 = vpow2.f32 %v2158_v1 }
 0xc18   :  { %v8721_v35 = vpop.eup %8720  ;;  %v2171_v10 = vsel %vm247_vm0, %v2163_v13, 0.0  ;;  %8730 = vpow2.f32 %v2160_v50 }
 0xc19   :  { %v8723_v48 = vpop.eup %8722  ;;  %v2172_v15 = vadd.f32 %v2171_v10, %v2170_v27  ;;  %v2209_v25 = vrot.slane %v2208_v51, 4  ;;  %v2164_v63 = vmul.f32 %v8721_v35, %v9691_v43  ;;  %v2215_v11 = vsel %vm247_vm0, %v8721_v35, 0.0 }
 0xc1a   :  { %v2165_v3 = vmul.f32 %v8723_v48, %v11008_v18  ;;  %v2216_v23 = vsel %vm247_vm0, %v8723_v48, 0.0 }
 0xc1b   :  { %v2173_v49 = vrot.slane %v2172_v15, 4  ;;  %v2210_v44 = vadd.f32 %v2209_v25, %v2208_v51  ;;  %v2179_v31 = vsel %vm247_vm0, %v2164_v63, 0.0  ;;  %v2217_v52 = vadd.f32 %v2216_v23, %v2215_v11  ;;  %v11032_v25 = vld [vmem:[#allocation52_spill] sm:$0xff] }
 0xc1c   :  { %v8725_v55 = vpop.eup %8724  ;;  %v2180_v40 = vsel %vm247_vm0, %v2165_v3, 0.0 }
 0xc1d   :  { %v8727_v24 = vpop.eup %8726  ;;  %v2174_v22 = vadd.f32 %v2173_v49, %v2172_v15  ;;  %v2211_v5 = vrot.slane %v2210_v44, 2  ;;  %v2181_v7 = vadd.f32 %v2180_v40, %v2179_v31  ;;  %v2218_v33 = vrot.slane %v2217_v52, 4 }
 0xc1e   :  { %v2166_v46 = vmul.f32 %v8725_v55, %v11009_v28  ;;  %v2167_v32 = vmul.f32 %v8727_v24, %v11010_v59  ;;  %v2224_v30 = vsel %vm247_vm0, %v8725_v55, 0.0  ;;  %v2225_v47 = vsel %vm247_vm0, %v8727_v24, 0.0 }
 0xc1f   :  { %v2212_v37 = vadd.f32 %v2211_v5, %v2210_v44  ;;  %v2182_v38 = vrot.slane %v2181_v7, 4  ;;  %v2219_v58 = vadd.f32 %v2218_v33, %v2217_v52  ;;  %v2226_v4 = vadd.f32 %v2225_v47, %v2224_v30  ;;  %v11033_v44 = vld [vmem:[#allocation53_spill] sm:$0xff] }
 0xc20   :  { %v2188_v1 = vsel %vm247_vm0, %v2166_v46, 0.0  ;;  %v2189_v50 = vsel %vm247_vm0, %v2167_v32, 0.0  ;;  %v2175_v35 = vrot.slane %v2174_v22, 2 }
 0xc21   :  { %v8729_v13 = vpop.eup %8728  ;;  %v2213_v19 = vrot.slane %v2212_v37, 1  ;;  %v2220_v27 = vrot.slane %v2219_v58, 2  ;;  %v2190_v51 = vadd.f32 %v2189_v50, %v2188_v1  ;;  %v2183_v48 = vadd.f32 %v2182_v38, %v2181_v7 }
 0xc22   :  { %v8731_v10 = vpop.eup %8730  ;;  %v2227_v15 = vrot.slane %v2226_v4, 4  ;;  %v2168_v63 = vmul.f32 %v8729_v13, %v11032_v25  ;;  %v2233_v11 = vsel %vm247_vm0, %v8729_v13, 0.0  ;;  %v2176_v32 = vadd.f32 %v2175_v35, %v2174_v22 }
 0xc23   :  { %v2214_v3 = vadd.f32 %v2213_v19, %v2212_v37  ;;  %v2221_v23 = vadd.f32 %v2220_v27, %v2219_v58  ;;  %v2191_v49 = vrot.slane %v2190_v51, 4  ;;  %v2169_v31 = vmul.f32 %v8731_v10, %v11033_v44 }
 0xc24   :  { %v2228_v52 = vadd.f32 %v2227_v15, %v2226_v4  ;;  %v2197_v55 = vsel %vm247_vm0, %v2168_v63, 0.0  ;;  %v2234_v40 = vsel %vm247_vm0, %v8731_v10, 0.0  ;;  %v2184_v30 = vrot.slane %v2183_v48, 2 }
 0xc25   :  { %8732 = vrcp.f32 %v2214_v3  ;;  %v2222_v24 = vrot.slane %v2221_v23, 1  ;;  %v2198_v5 = vsel %vm247_vm0, %v2169_v31, 0.0  ;;  %v2235_v7 = vadd.f32 %v2234_v40, %v2233_v11 }
 0xc26   :  { %v2229_v33 = vrot.slane %v2228_v52, 2  ;;  %v2199_v46 = vadd.f32 %v2198_v5, %v2197_v55  ;;  %v2192_v38 = vadd.f32 %v2191_v49, %v2190_v51  ;;  %v2177_v13 = vrot.slane %v2176_v32, 1 }
 0xc27   :  { %v2223_v47 = vadd.f32 %v2222_v24, %v2221_v23  ;;  %v2236_v37 = vrot.slane %v2235_v7, 4  ;;  %v2185_v19 = vadd.f32 %v2184_v30, %v2183_v48 }
 0xc28   :  { %v2230_v58 = vadd.f32 %v2229_v33, %v2228_v52  ;;  %v2200_v1 = vrot.slane %v2199_v46, 4  ;;  %v2193_v10 = vrot.slane %v2192_v38, 2  ;;  %v2178_v11 = vadd.f32 %v2177_v13, %v2176_v32 }
 0xc29   :  { %8734 = vrcp.f32 %v2223_v47  ;;  %v2237_v4 = vadd.f32 %v2236_v37, %v2235_v7  ;;  %v2186_v31 = vrot.slane %v2185_v19, 1 }
 0xc2a   :  { %v2231_v50 = vrot.slane %v2230_v58, 1  ;;  %v2201_v63 = vadd.f32 %v2200_v1, %v2199_v46  ;;  %v2194_v23 = vadd.f32 %v2193_v10, %v2192_v38 }
 0xc2b   :  { %v2238_v27 = vrot.slane %v2237_v4, 2  ;;  %v2187_v52 = vadd.f32 %v2186_v31, %v2185_v19 }
 0xc2c   :  { %v2232_v15 = vadd.f32 %v2231_v50, %v2230_v58  ;;  %v2202_v55 = vrot.slane %v2201_v63, 2  ;;  %v2195_v24 = vrot.slane %v2194_v23, 1  ;;  %v1840_v50 = vadd.f32 %v9923_v36, %v9732_v8 }
 0xc2d   :  { %v2239_v3 = vadd.f32 %v2238_v27, %v2237_v4  ;;  %v2333_v4 = vld [vmem:[#allocation2 + $0x8] sm:$0xf] }
 0xc2e   :  { %8736 = vrcp.f32 %v2232_v15  ;;  %v2203_v5 = vadd.f32 %v2202_v55, %v2201_v63  ;;  %v2196_v33 = vadd.f32 %v2195_v24, %v2194_v23 }
 0xc2f   :  { %v8733_v22 = vpop.eup %8732  ;;  %v2240_v35 = vrot.slane %v2239_v3, 1 }
 0xc30   :  { %v2246_v51 = vmul.f32 %v8733_v22, %v2178_v11  ;;  %v2204_v30 = vrot.slane %v2203_v5, 1  ;;  %v10043_v11 = vld [vmem:[%s10879_s13] ss:$0 sm:$0xff] }
 0xc31   :  { %v2241_v49 = vadd.f32 %v2240_v35, %v2239_v3 }
 0xc32   :  { %v2205_v37 = vadd.f32 %v2204_v30, %v2203_v5 }
 0xc33   :  { %v8735_v40 = vpop.eup %8734  ;;  %8738 = vrcp.f32 %v2241_v49 }
 0xc34   :  { %v2247_v48 = vmul.f32 %v8735_v40, %v2187_v52 }
 0xc36   :  { %v2254_v7 = vsel %vm922_vm3, %v2247_v48, %v2246_v51 }
 0xc38   :  { %v8737_v46 = vpop.eup %8736 }
 0xc39   :  { %v2248_v47 = vmul.f32 %v8737_v46, %v2196_v33 }
 0xc3b   :  { %v2255_v32 = vsel %vm924_vm4, %v2248_v47, %v2254_v7 }
 0xc3d   :  { %v8739_v58 = vpop.eup %8738 }
 0xc3e   :  { %v2249_v38 = vmul.f32 %v8739_v58, %v2205_v37 }
 0xc40   :  { %v2256_v1 = vsel %vm926_vm5, %v2249_v38, %v2255_v32 }
 0xc41   :  { %7554 = vmatmul.mubr.msk.f32.vlgmr.msra.gmra.mrb[24].mxu1 %vm247_vm0, %v2256_v1  ;;  %7584 = vmatmul.mubr.msk.f32.vlgmr.msra.gmra.mrb[24].mxu0 %vm247_vm0, %v2256_v1 }
 0xc42   :  { %8246 = vmatpush3.bf16.msra.mxu1 %v11013_v21  ;;  %7564 = vmatprep.mubr.msk.f32.mxu1 %vm9264_vm2, %v11002_v61 }
 0xc43   :  { %8247 = vmatprep.subr.bf16.mxu1 %v11003_v26  ;;  %8272 = vmatpush3.bf16.msra.mxu0 %v9747_v6 }
 0xc44   :  { %8273 = vmatprep.subr.bf16.mxu0 %v11003_v26  ;;  %7594 = vmatprep.mubr.msk.f32.mxu0 %vm9264_vm2, %v11002_v61 }
 0xc46   :  { %8249 = vmatpush3.bf16.msra.mxu1 %v11014_v16 }
 0xc47   :  { %8263 = vmatprep.subr.bf16.mxu1 %v11015_v14  ;;  %8275 = vmatpush3.bf16.msra.mxu0 %v9750_v34 }
 0xc48   :  { %8292 = vmatprep.subr.bf16.mxu0 %v11003_v26 }
 0xc49   :  { %7565 = vmatmul.mubr.msk.f32.vlgmr.msra.gmra.mrb[26].mxu1 %vm393_vm1, %v2333_v4  ;;  %v11034_v4 = vld [vmem:[#allocation29_spill] sm:$0xff] }
 0xc4a   :  { %8265 = vmatpush1.bf16.msra.mxu1 %v9487_v9  ;;  %2572 = vmatprep.mubr.f32.mxu1 %v11002_v61 }
 0xc4b   :  { %8267 = vmatprep.subr.bf16.mxu1 %v9490_v17 }
 0xc4e   :  { %8269 = vmatpush1.bf16.msra.mxu1 %v9493_v20 }
 0xc4f   :  { %8277 = vmatprep.subr.bf16.mxu1 %v9498_v29 }
 0xd14   :  { %v2325_v13 = vpop.f32.mrb[24].mxu1  ;;  %v2473_v19 = vpop.f32.mrb[24].mxu0 }
 0xd15   :  { %v8605_v27 = vadd.f32 %v2325_v13, %v9888_v57  ;;  %v2477_v10 = vadd.f32 %v2473_v19, %v1840_v50  ;;  %v7555_v15 = vpop.f32.mrb[25].mxu1  ;;  %v7585_v63 = vpop.f32.mrb[25].mxu0 }
 0xd16   :  { %v11036_v15 = vld [vmem:[#allocation33_spill] sm:$0xff] }
 0xd17   :  { %2331 = vst [vmem:[#allocation17 + $0x4] sm:$0xf] %v8605_v27  ;;  %v11035_v27 = vld [vmem:[#allocation32_spill] sm:$0xff] }
 0xd1c   :  { %v2403_v3 = vpop.f32.mrb[26].mxu1 }
 0xd1d   :  { %v2404_v31 = vadd.f32 %v10043_v11, %v2403_v3  ;;  %v7566_v22 = vpop.f32.mrb[27].mxu1  ;;  %v11037_v3 = vld [vmem:[#allocation35_spill] sm:$0xff] }
 0xd1f   :  { %v2478_v35 = vadd.f32 %v2477_v10, %v2404_v31 }
 0xd21   :  { %8740 = vtanh.f32 %v2478_v35  ;;  %v6858_v23 = vmul.f32 -1.442695, %v2478_v35 }
 0xd23   :  { %8742 = vpow2.f32 %v6858_v23  ;;  %v11039_v23 = vld [vmem:[#allocation34_spill] sm:$0xff] }
 0xd2b   :  { %v8741_v36 = vpop.eup %8740 }
 0xd2c   :  { %2488 = vrot.lane.b32.xlu1 %v8741_v36, %s9253_s10  ;;  %v11038_v36 = vld [vmem:[#allocation40_spill] sm:$0xff] }
 0xd2d   :  { %v8743_v55 = vpop.eup %8742 }
 0xd2e   :  { %v2482_v51 = vadd.f32 1.0, %v8743_v55 }
 0xd30   :  { %8744 = vrcp.f32 %v2482_v51  ;;  %v11040_v51 = vld [vmem:[#allocation37_spill] sm:$0xff] }
 0xd3a   :  { %v8745_v49 = vpop.eup %8744 }
 0xd3b   :  { %v2486_v24 = vmul.f32 %v8745_v49, %v9897_v2 }
 0xd9e   :  { %v2489_v52 = vpop.permute.xlu1 %2488 }
 0xd9f   :  { %v2491_v40 = vmul.f32 %v8745_v49, %v2489_v52 }
 0xda1   :  { %2493 = vrot.lane.b32.xlu0 %v2491_v40, %s9265_s24  ;;  %v11041_v40 = vld [vmem:[#allocation42_spill] sm:$0xff] }
 0xe13   :  { %v2494_v5 = vpop.permute.xlu0 %2493 }
 0xe14   :  { %v10049_v48 = vadd.f32 %v2494_v5, %v2486_v24  ;;  %v11042_v24 = vld [vmem:[#allocation36_spill] sm:$0xff] }
 0xe16   :  { %8746 = vtanh.f32 %v10049_v48 }
 0xe20   :  { %v8747_v7 = vpop.eup %8746 }
 0xe21   :  { %2499 = vrot.lane.b32.xlu1 %v8747_v7, %s9253_s10  ;;  %v11043_v7 = vld [vmem:[#allocation39_spill] sm:$0xff] }
 0xe93   :  { %v2500_v33 = vpop.permute.xlu1 %2499 }
 0xe94   :  { %v2502_v46 = vmul.f32 %v8745_v49, %v2500_v33 }
 0xe96   :  { %2504 = vrot.lane.b32.xlu0 %v2502_v46, %s9265_s24  ;;  %v11044_v46 = vld [vmem:[#allocation44_spill] sm:$0xff] }
 0xf08   :  { %v2505_v30 = vpop.permute.xlu0 %2504 }
 0xf09   :  { %6859 = vmatmul.mubr.msk.f32.vlgmr.msra.gmra.mrb[28].mxu1 %vm393_vm1, %v2505_v30  ;;  %7595 = vmatmul.mubr.msk.f32.vlgmr.msra.gmra.mrb[26].mxu0 %vm393_vm1, %v2505_v30  ;;  %v11045_v30 = vld [vmem:[#allocation38_spill] sm:$0xff] }
 0xf0a   :  { %8279 = vmatpush3.bf16.msra.mxu1 %v9498_v29  ;;  %8294 = vmatpush3.bf16.msra.mxu0 %v9805_v0 }
 0xf0b   :  { %8281 = vmatprep.subr.bf16.mxu1 %v9510_v39  ;;  %8295 = vmatprep.subr.bf16.mxu0 %v11003_v26 }
 0xf0c   :  { %7641 = vmatprep.mubr.msk.f32.mxu0 %vm9264_vm2, %v11002_v61 }
 0xf0e   :  { %8283 = vmatpush3.bf16.msra.mxu1 %v9510_v39  ;;  %8297 = vmatpush3.bf16.msra.mxu0 %v9809_v62 }
 0xf0f   :  { %8285 = vmatprep.subr.bf16.mxu1 %v9514_v42  ;;  %8298 = vmatprep.subr.bf16.mxu0 %v11003_v26 }
 0xf12   :  { %8287 = vmatpush3.bf16.msra.mxu1 %v9514_v42  ;;  %8300 = vmatpush3.bf16.msra.mxu0 %v9812_v41 }
 0xf13   :  { %8289 = vmatprep.subr.bf16.mxu1 %v9518_v45  ;;  %8301 = vmatprep.subr.bf16.mxu0 %v11003_v26 }
 0xf16   :  { %8291 = vmatpush3.bf16.msra.mxu1 %v9518_v45  ;;  %8303 = vmatpush3.bf16.msra.mxu0 %v9816_v56 }
 0xf17   :  { %8310 = vmatprep.subr.bf16.mxu1 %v11003_v26  ;;  %8304 = vmatprep.subr.bf16.mxu0 %v11003_v26 }
 0xfdc   :  { %v2574_v2 = vpop.f32.mrb[28].mxu1 }
 0xfdd   :  { %v2575_v47 = vadd.f32 %v2574_v2, %v9534_v53  ;;  %v10075_v32 = vpop.f32.mrb[29].mxu1 }
 0xfdf   :  { %v2656_v37 = vrot.slane %v2575_v47, %v9537_v54  ;;  %v11046_v47 = vld [vmem:[#allocation45_spill] sm:$0xff] }
 0xfe1   :  { %v2657_v58 = vcombine.high %v2656_v37, %v2656_v37  ;;  %v2664_v38 = vrot.slane %v2656_v37, %v9537_v54 }
 0xfe3   :  { %v2671_v1 = vrot.slane %v2657_v58, %v9537_v54  ;;  %v2677_v50 = vrot.slane %v2664_v38, %v11034_v4  ;;  %v2672_v13 = vcombine.high %v2664_v38, %v2664_v38  ;;  %v11047_v58 = vld [vmem:[#allocation46_spill] sm:$0xff] }
 0xfe5   :  { %v2681_v19 = vrot.slane %v2671_v1, %v11034_v4  ;;  %v2695_v10 = vmul.f32 %v2677_v50, %v11035_v27  ;;  %v2694_v63 = vmul.f32 %v2677_v50, %v11036_v15  ;;  %v2673_v22 = vcombine.high %v2671_v1, %v2671_v1  ;;  %v11048_v50 = vld [vmem:[#allocation47_spill] sm:$0xff] }
 0xfe6   :  { %v2685_v35 = vrot.slane %v2672_v13, %v11034_v4 }
 0xfe7   :  { %v2696_v31 = vmul.f32 %v2681_v19, %v11037_v3  ;;  %7613 = vmatprep.mubr.msk.f32.mxu1 %vm247_vm0, %v2694_v63  ;;  %v2697_v55 = vmul.f32 %v2681_v19, %v11039_v23  ;;  %v2689_v52 = vrot.slane %v2673_v22, %v11034_v4  ;;  %v11049_v22 = vld [vmem:[#allocation48_spill] sm:$0xff] }
 0xfe8   :  { %7614 = vmatmul.mubr.msk.f32.vlgmr.msra.gmra.mrb[30].mxu1 %vm247_vm0, %v2695_v10  ;;  %v2698_v49 = vmul.f32 %v2685_v35, %v11040_v51  ;;  %v2699_v5 = vmul.f32 %v2685_v35, %v11042_v24  ;;  %v11053_v51 = vld [vmem:[#allocation41_spill] sm:$0xff] }
 0xfe9   :  { %7616 = vmatprep.mubr.msk.f32.mxu1 %vm247_vm0, %v2696_v31  ;;  %8312 = vmatpush3.bf16.msra.mxu1 %v11038_v36  ;;  %v2700_v33 = vmul.f32 %v2689_v52, %v11043_v7  ;;  %v2701_v2 = vmul.f32 %v2689_v52, %v11045_v30 }
 0xfea   :  { %8313 = vmatprep.subr.bf16.mxu1 %v11003_v26 }
 0xfec   :  { %7617 = vmatmul.mubr.msk.f32.gmra.mrb[32].mxu1 %vm247_vm0, %v2697_v55 }
 0xfed   :  { %7619 = vmatprep.mubr.msk.f32.mxu1 %vm247_vm0, %v2698_v49  ;;  %8315 = vmatpush3.bf16.msra.mxu1 %v11041_v40  ;;  %v11050_v49 = vld [vmem:[#allocation49_spill] sm:$0xff] }
 0xfee   :  { %8316 = vmatprep.subr.bf16.mxu1 %v11003_v26 }
 0xff0   :  { %7620 = vmatmul.mubr.msk.f32.gmra.mrb[34].mxu1 %vm247_vm0, %v2699_v5 }
 0xff1   :  { %7622 = vmatprep.mubr.msk.f32.mxu1 %vm247_vm0, %v2700_v33  ;;  %8318 = vmatpush3.bf16.msra.mxu1 %v11044_v46  ;;  %v11052_v46 = vld [vmem:[#allocation51_spill] sm:$0xff] }
 0xff2   :  { %8319 = vmatprep.subr.bf16.mxu1 %v11003_v26 }
 0xff4   :  { %7623 = vmatmul.mubr.msk.f32.gmra.mrb[36].mxu1 %vm247_vm0, %v2701_v2 }
 0xff5   :  { %8321 = vmatpush3.bf16.msra.mxu1 %v11046_v47  ;;  %7671 = vmatprep.mubr.msk.f32.mxu1 %vm9264_vm2, %v11002_v61 }
 0xff6   :  { %8330 = vmatprep.subr.bf16.mxu1 %v11003_v26 }
0x10bb   :  { %v7615_v37 = vpop.f32.mrb[30].mxu1 }
0x10bc   :  { %v2832_v38 = vadd.f32 %v11047_v58, %v7615_v37  ;;  %v2792_v1 = vpop.f32.mrb[31].mxu1 }
0x10bd   :  { %v2831_v13 = vadd.f32 %v11048_v50, %v2792_v1  ;;  %v11051_v1 = vld [vmem:[#allocation50_spill] sm:$0xff] }
0x10be   :  { %v2840_v19 = vsel %vm247_vm0, %v2832_v38, -inf }
0x10bf   :  { %v2839_v10 = vsel %vm247_vm0, %v2831_v13, -inf  ;;  %v7618_v63 = vpop.f32.mrb[32].mxu1 }
0x10c0   :  { %v2841_v31 = vmax.f32 %v2839_v10, %v2840_v19  ;;  %v2834_v35 = vadd.f32 %v11049_v22, %v7618_v63  ;;  %v2802_v55 = vpop.f32.mrb[33].mxu1 }
0x10c1   :  { %v2833_v52 = vadd.f32 %v11050_v49, %v2802_v55 }
0x10c2   :  { %v2842_v5 = vrot.slane %v2841_v31, 4  ;;  %v2849_v33 = vsel %vm247_vm0, %v2834_v35, -inf }
0x10c3   :  { %v2848_v2 = vsel %vm247_vm0, %v2833_v52, -inf  ;;  %v7621_v37 = vpop.f32.mrb[34].mxu1 }
0x10c4   :  { %v2843_v58 = vmax.f32 %v2841_v31, %v2842_v5  ;;  %v2850_v47 = vmax.f32 %v2848_v2, %v2849_v33  ;;  %v2836_v50 = vadd.f32 %v11051_v1, %v7621_v37  ;;  %v2812_v30 = vpop.f32.mrb[35].mxu1  ;;  %v11054_v31 = vld [vmem:[#allocation43_spill] sm:$0xff] }
0x10c5   :  { %v2835_v7 = vadd.f32 %v11052_v46, %v2812_v30 }
0x10c6   :  { %v2844_v24 = vrot.slane %v2843_v58, 2  ;;  %v2851_v19 = vrot.slane %v2850_v47, 4  ;;  %v2858_v10 = vsel %vm247_vm0, %v2836_v50, -inf }
0x10c7   :  { %v2857_v63 = vsel %vm247_vm0, %v2835_v7, -inf  ;;  %v7624_v22 = vpop.f32.mrb[36].mxu1 }
0x10c8   :  { %v2845_v55 = vmax.f32 %v2843_v58, %v2844_v24  ;;  %v2852_v49 = vmax.f32 %v2850_v47, %v2851_v19  ;;  %v2859_v40 = vmax.f32 %v2857_v63, %v2858_v10  ;;  %v2838_v23 = vadd.f32 %v11053_v51, %v7624_v22  ;;  %v2822_v36 = vpop.f32.mrb[37].mxu1 }
0x10c9   :  { %v2837_v5 = vadd.f32 %v11054_v31, %v2822_v36 }
0x10ca   :  { %v2846_v33 = vrot.slane %v2845_v55, 1  ;;  %v2853_v2 = vrot.slane %v2852_v49, 2  ;;  %v2860_v37 = vrot.slane %v2859_v40, 4  ;;  %v2867_v46 = vsel %vm247_vm0, %v2838_v23, -inf }
0x10cb   :  { %v2866_v30 = vsel %vm247_vm0, %v2837_v5, -inf }
0x10cc   :  { %v2847_v1 = vmax.f32 %v2845_v55, %v2846_v33  ;;  %v2854_v3 = vmax.f32 %v2852_v49, %v2853_v2  ;;  %v2861_v15 = vmax.f32 %v2859_v40, %v2860_v37  ;;  %v2868_v27 = vmax.f32 %v2866_v30, %v2867_v46 }
0x10ce   :  { %v2875_v4 = vsub.f32 %v2831_v13, %v2847_v1  ;;  %v2876_v24 = vsub.f32 %v2832_v38, %v2847_v1  ;;  %v2855_v47 = vrot.slane %v2854_v3, 1  ;;  %v2862_v58 = vrot.slane %v2861_v15, 2 }
0x10cf   :  { %v2869_v19 = vrot.slane %v2868_v27, 4 }
0x10d0   :  { %v2883_v51 = vmul.f32 1.442695, %v2875_v4  ;;  %v2885_v10 = vmul.f32 1.442695, %v2876_v24  ;;  %v2856_v63 = vmax.f32 %v2854_v3, %v2855_v47  ;;  %v2863_v36 = vmax.f32 %v2861_v15, %v2862_v58 }
0x10d1   :  { %v2870_v22 = vmax.f32 %v2868_v27, %v2869_v19 }
0x10d2   :  { %8748 = vpow2.f32 %v2883_v51  ;;  %v2877_v31 = vsub.f32 %v2833_v52, %v2856_v63  ;;  %v2878_v54 = vsub.f32 %v2834_v35, %v2856_v63  ;;  %v2864_v53 = vrot.slane %v2863_v36, 1 }
0x10d3   :  { %8750 = vpow2.f32 %v2885_v10  ;;  %v2871_v56 = vrot.slane %v2870_v22, 2 }
0x10d4   :  { %v2887_v55 = vmul.f32 1.442695, %v2877_v31  ;;  %v2889_v49 = vmul.f32 1.442695, %v2878_v54  ;;  %v2865_v40 = vmax.f32 %v2863_v36, %v2864_v53 }
0x10d5   :  { %v2872_v33 = vmax.f32 %v2870_v22, %v2871_v56 }
0x10d6   :  { %8752 = vpow2.f32 %v2887_v55  ;;  %v2879_v38 = vsub.f32 %v2835_v7, %v2865_v40  ;;  %v2880_v13 = vsub.f32 %v2836_v50, %v2865_v40 }
0x10d7   :  { %8754 = vpow2.f32 %v2889_v49  ;;  %v2873_v2 = vrot.slane %v2872_v33, 1 }
0x10d8   :  { %v2891_v4 = vmul.f32 1.442695, %v2879_v38  ;;  %v2893_v37 = vmul.f32 1.442695, %v2880_v13 }
0x10d9   :  { %v2874_v3 = vmax.f32 %v2872_v33, %v2873_v2 }
0x10da   :  { %8756 = vpow2.f32 %v2891_v4 }
0x10db   :  { %8758 = vpow2.f32 %v2893_v37  ;;  %v2881_v27 = vsub.f32 %v2837_v5, %v2874_v3  ;;  %v2882_v15 = vsub.f32 %v2838_v23, %v2874_v3 }
0x10dc   :  { %v8749_v35 = vpop.eup %8748 }
0x10dd   :  { %v8751_v52 = vpop.eup %8750  ;;  %v2899_v46 = vmul.f32 %v8749_v35, %v9685_v60  ;;  %v2943_v54 = vsel %vm247_vm0, %v8749_v35, 0.0  ;;  %v2895_v53 = vmul.f32 1.442695, %v2881_v27  ;;  %v2897_v56 = vmul.f32 1.442695, %v2882_v15 }
0x10de   :  { %v2900_v7 = vmul.f32 %v8751_v52, %v9681_v12  ;;  %v2944_v50 = vsel %vm247_vm0, %v8751_v52, 0.0 }
0x10df   :  { %v2907_v30 = vsel %vm247_vm0, %v2899_v46, 0.0  ;;  %v2945_v1 = vadd.f32 %v2944_v50, %v2943_v54  ;;  %8760 = vpow2.f32 %v2895_v53 }
0x10e0   :  { %v8753_v24 = vpop.eup %8752  ;;  %v2908_v5 = vsel %vm247_vm0, %v2900_v7, 0.0  ;;  %8762 = vpow2.f32 %v2897_v56 }
0x10e1   :  { %v8755_v23 = vpop.eup %8754  ;;  %v2909_v47 = vadd.f32 %v2908_v5, %v2907_v30  ;;  %v2946_v58 = vrot.slane %v2945_v1, 4  ;;  %v2901_v19 = vmul.f32 %v8753_v24, %v9691_v43  ;;  %v2952_v51 = vsel %vm247_vm0, %v8753_v24, 0.0 }
0x10e2   :  { %v2902_v10 = vmul.f32 %v8755_v23, %v11008_v18  ;;  %v2953_v63 = vsel %vm247_vm0, %v8755_v23, 0.0 }
0x10e3   :  { %v2910_v36 = vrot.slane %v2909_v47, 4  ;;  %v2947_v22 = vadd.f32 %v2946_v58, %v2945_v1  ;;  %v2916_v31 = vsel %vm247_vm0, %v2901_v19, 0.0  ;;  %v2954_v55 = vadd.f32 %v2953_v63, %v2952_v51 }
0x10e4   :  { %v8757_v49 = vpop.eup %8756  ;;  %v2917_v40 = vsel %vm247_vm0, %v2902_v10, 0.0 }
0x10e5   :  { %v8759_v33 = vpop.eup %8758  ;;  %v2911_v38 = vadd.f32 %v2910_v36, %v2909_v47  ;;  %v2948_v13 = vrot.slane %v2947_v22, 2  ;;  %v2918_v2 = vadd.f32 %v2917_v40, %v2916_v31  ;;  %v2955_v4 = vrot.slane %v2954_v55, 4 }
0x10e6   :  { %v2903_v37 = vmul.f32 %v8757_v49, %v11009_v28  ;;  %v2904_v3 = vmul.f32 %v8759_v33, %v11010_v59  ;;  %v2961_v27 = vsel %vm247_vm0, %v8757_v49, 0.0  ;;  %v2962_v15 = vsel %vm247_vm0, %v8759_v33, 0.0 }
0x10e7   :  { %v2949_v35 = vadd.f32 %v2948_v13, %v2947_v22  ;;  %v2919_v52 = vrot.slane %v2918_v2, 4  ;;  %v2956_v46 = vadd.f32 %v2955_v4, %v2954_v55  ;;  %v2963_v54 = vadd.f32 %v2962_v15, %v2961_v27 }
0x10e8   :  { %v2925_v53 = vsel %vm247_vm0, %v2903_v37, 0.0  ;;  %v2926_v56 = vsel %vm247_vm0, %v2904_v3, 0.0  ;;  %v2912_v24 = vrot.slane %v2911_v38, 2 }
0x10e9   :  { %v8761_v7 = vpop.eup %8760  ;;  %v2950_v50 = vrot.slane %v2949_v35, 1  ;;  %v2957_v30 = vrot.slane %v2956_v46, 2  ;;  %v2927_v1 = vadd.f32 %v2926_v56, %v2925_v53  ;;  %v2920_v23 = vadd.f32 %v2919_v52, %v2918_v2 }
0x10ea   :  { %v8763_v5 = vpop.eup %8762  ;;  %v2964_v47 = vrot.slane %v2963_v54, 4  ;;  %v2905_v58 = vmul.f32 %v8761_v7, %v11032_v25  ;;  %v2970_v19 = vsel %vm247_vm0, %v8761_v7, 0.0  ;;  %v2913_v4 = vadd.f32 %v2912_v24, %v2911_v38 }
0x10eb   :  { %v2951_v51 = vadd.f32 %v2950_v50, %v2949_v35  ;;  %v2958_v10 = vadd.f32 %v2957_v30, %v2956_v46  ;;  %v2928_v63 = vrot.slane %v2927_v1, 4  ;;  %v2906_v36 = vmul.f32 %v8763_v5, %v11033_v44 }
0x10ec   :  { %v2965_v22 = vadd.f32 %v2964_v47, %v2963_v54  ;;  %v2934_v31 = vsel %vm247_vm0, %v2905_v58, 0.0  ;;  %v2971_v55 = vsel %vm247_vm0, %v8763_v5, 0.0  ;;  %v2921_v37 = vrot.slane %v2920_v23, 2 }
0x10ed   :  { %8764 = vrcp.f32 %v2951_v51  ;;  %v2959_v49 = vrot.slane %v2958_v10, 1  ;;  %v2935_v40 = vsel %vm247_vm0, %v2906_v36, 0.0  ;;  %v2972_v33 = vadd.f32 %v2971_v55, %v2970_v19 }
0x10ee   :  { %v2966_v13 = vrot.slane %v2965_v22, 2  ;;  %v2936_v2 = vadd.f32 %v2935_v40, %v2934_v31  ;;  %v2929_v15 = vadd.f32 %v2928_v63, %v2927_v1  ;;  %v2914_v53 = vrot.slane %v2913_v4, 1 }
0x10ef   :  { %v2960_v3 = vadd.f32 %v2959_v49, %v2958_v10  ;;  %v2973_v27 = vrot.slane %v2972_v33, 4  ;;  %v2922_v56 = vadd.f32 %v2921_v37, %v2920_v23 }
0x10f0   :  { %v2967_v35 = vadd.f32 %v2966_v13, %v2965_v22  ;;  %v2937_v52 = vrot.slane %v2936_v2, 4  ;;  %v2930_v50 = vrot.slane %v2929_v15, 2  ;;  %v2915_v58 = vadd.f32 %v2914_v53, %v2913_v4 }
0x10f1   :  { %8766 = vrcp.f32 %v2960_v3  ;;  %v2974_v46 = vadd.f32 %v2973_v27, %v2972_v33  ;;  %v2923_v19 = vrot.slane %v2922_v56, 1 }
0x10f2   :  { %v2968_v54 = vrot.slane %v2967_v35, 1  ;;  %v2938_v5 = vadd.f32 %v2937_v52, %v2936_v2  ;;  %v2931_v51 = vadd.f32 %v2930_v50, %v2929_v15  ;;  %v2577_v52 = vadd.f32 %v10075_v32, %v9732_v8 }
0x10f3   :  { %v2975_v7 = vrot.slane %v2974_v46, 2  ;;  %v2924_v36 = vadd.f32 %v2923_v19, %v2922_v56 }
0x10f4   :  { %v2969_v30 = vadd.f32 %v2968_v54, %v2967_v35  ;;  %v2939_v10 = vrot.slane %v2938_v5, 2  ;;  %v2932_v31 = vrot.slane %v2931_v51, 1  ;;  %v3070_v35 = vld [vmem:[#allocation2 + $0xc] sm:$0xf] }
0x10f5   :  { %v2976_v47 = vadd.f32 %v2975_v7, %v2974_v46 }
0x10f6   :  { %8768 = vrcp.f32 %v2969_v30  ;;  %v2940_v55 = vadd.f32 %v2939_v10, %v2938_v5  ;;  %v2933_v40 = vadd.f32 %v2932_v31, %v2931_v51 }
0x10f7   :  { %v8765_v38 = vpop.eup %8764  ;;  %v2977_v24 = vrot.slane %v2976_v47, 1 }
0x10f8   :  { %v2983_v1 = vmul.f32 %v8765_v38, %v2915_v58  ;;  %v2941_v13 = vrot.slane %v2940_v55, 1 }
0x10f9   :  { %v2978_v63 = vadd.f32 %v2977_v24, %v2976_v47 }
0x10fa   :  { %v2942_v37 = vadd.f32 %v2941_v13, %v2940_v55 }
0x10fb   :  { %v8767_v22 = vpop.eup %8766  ;;  %8770 = vrcp.f32 %v2978_v63 }
0x10fc   :  { %v2984_v23 = vmul.f32 %v8767_v22, %v2924_v36 }
0x10fe   :  { %v2991_v49 = vsel %vm922_vm3, %v2984_v23, %v2983_v1 }
0x1100   :  { %v8769_v33 = vpop.eup %8768 }
0x1101   :  { %v2985_v2 = vmul.f32 %v8769_v33, %v2933_v40  ;;  %v11056_v40 = vld [vmem:[#allocation30_spill] sm:$0xff] }
0x1103   :  { %v2992_v4 = vsel %vm924_vm4, %v2985_v2, %v2991_v49  ;;  %v11057_v2 = vld [vmem:[#allocation31_spill] sm:$0xff] }
0x1105   :  { %v8771_v3 = vpop.eup %8770 }
0x1106   :  { %v2986_v27 = vmul.f32 %v8771_v3, %v2942_v37 }
0x1108   :  { %v2993_v15 = vsel %vm926_vm5, %v2986_v27, %v2992_v4 }
0x1109   :  { %7642 = vmatmul.mubr.msk.f32.vlgmr.msra.gmra.mrb[26].mxu0 %vm247_vm0, %v2993_v15  ;;  %7672 = vmatmul.mubr.msk.f32.vlgmr.msra.gmra.mrb[38].mxu1 %vm247_vm0, %v2993_v15  ;;  %v11058_v15 = vld [vmem:[#allocation29_spill] sm:$0xff] }
0x110a   :  { %8306 = vmatpush3.bf16.msra.mxu0 %v11013_v21  ;;  %7652 = vmatprep.mubr.msk.f32.mxu0 %vm9264_vm2, %v11002_v61 }
0x110b   :  { %8307 = vmatprep.subr.bf16.mxu0 %v11003_v26  ;;  %8332 = vmatpush3.bf16.msra.mxu1 %v9747_v6 }
0x110c   :  { %8333 = vmatprep.subr.bf16.mxu1 %v11003_v26  ;;  %7682 = vmatprep.mubr.msk.f32.mxu1 %vm9264_vm2, %v11002_v61 }
0x110e   :  { %8309 = vmatpush3.bf16.msra.mxu0 %v11014_v16 }
0x110f   :  { %8323 = vmatprep.subr.bf16.mxu0 %v11015_v14  ;;  %8335 = vmatpush3.bf16.msra.mxu1 %v9750_v34 }
0x1110   :  { %8352 = vmatprep.subr.bf16.mxu1 %v11003_v26 }
0x1111   :  { %7653 = vmatmul.mubr.msk.f32.vlgmr.msra.gmra.mrb[28].mxu0 %vm393_vm1, %v3070_v35 }
0x1112   :  { %8325 = vmatpush1.bf16.msra.mxu0 %v9487_v9  ;;  %3309 = vmatprep.mubr.f32.mxu0 %v11002_v61 }
0x1113   :  { %8327 = vmatprep.subr.bf16.mxu0 %v9490_v17 }
0x1116   :  { %8329 = vmatpush1.bf16.msra.mxu0 %v9493_v20 }
0x1117   :  { %8337 = vmatprep.subr.bf16.mxu0 %v9498_v29 }
0x11dc   :  { %v3062_v46 = vpop.f32.mrb[26].mxu0  ;;  %v3210_v54 = vpop.f32.mrb[38].mxu1 }
0x11dd   :  { %v8606_v53 = vadd.f32 %v3062_v46, %v9888_v57  ;;  %v3214_v56 = vadd.f32 %v3210_v54, %v2577_v52  ;;  %v7643_v7 = vpop.f32.mrb[27].mxu0  ;;  %v7673_v50 = vpop.f32.mrb[39].mxu1  ;;  %v11059_v54 = vld [vmem:[#allocation32_spill] sm:$0xff] }
0x11de   :  { %v11061_v50 = vld [vmem:[#allocation35_spill] sm:$0xff] }
0x11df   :  { %3068 = vst [vmem:[#allocation17 + $0x8] sm:$0xf] %v8606_v53 }
0x11e4   :  { %v3140_v30 = vpop.f32.mrb[28].mxu0 }
0x11e5   :  { %v3141_v5 = vadd.f32 %v10043_v11, %v3140_v30  ;;  %v7654_v47 = vpop.f32.mrb[29].mxu0 }
0x11e7   :  { %v3215_v58 = vadd.f32 %v3214_v56, %v3141_v5  ;;  %v11060_v56 = vld [vmem:[#allocation33_spill] sm:$0xff] }
0x11e9   :  { %8772 = vtanh.f32 %v3215_v58  ;;  %v6872_v38 = vmul.f32 -1.442695, %v3215_v58  ;;  %v11062_v58 = vld [vmem:[#allocation40_spill] sm:$0xff] }
0x11eb   :  { %8774 = vpow2.f32 %v6872_v38 }
0x11f3   :  { %v8773_v19 = vpop.eup %8772 }
0x11f4   :  { %3225 = vrot.lane.b32.xlu1 %v8773_v19, %s9253_s10  ;;  %v11063_v19 = vld [vmem:[#allocation34_spill] sm:$0xff] }
0x11f5   :  { %v8775_v32 = vpop.eup %8774 }
0x11f6   :  { %v3219_v24 = vadd.f32 1.0, %v8775_v32  ;;  %v11064_v32 = vld [vmem:[#allocation37_spill] sm:$0xff] }
0x11f8   :  { %8776 = vrcp.f32 %v3219_v24 }
0x1202   :  { %v8777_v51 = vpop.eup %8776 }
0x1203   :  { %v3223_v63 = vmul.f32 %v8777_v51, %v10049_v48  ;;  %v11055_v48 = vld [vmem:[#allocation54_spill] sm:$0xff] }
0x1266   :  { %v3226_v10 = vpop.permute.xlu1 %3225 }
0x1267   :  { %v3228_v1 = vmul.f32 %v8777_v51, %v3226_v10  ;;  %v11065_v10 = vld [vmem:[#allocation42_spill] sm:$0xff] }
0x1269   :  { %3230 = vrot.lane.b32.xlu0 %v3228_v1, %s9265_s24  ;;  %v11066_v1 = vld [vmem:[#allocation36_spill] sm:$0xff] }
0x12db   :  { %v3231_v36 = vpop.permute.xlu0 %3230 }
0x12dc   :  { %v10180_v11 = vadd.f32 %v3231_v36, %v3223_v63  ;;  %v11067_v36 = vld [vmem:[#allocation39_spill] sm:$0xff] }
0x12de   :  { %8778 = vtanh.f32 %v10180_v11 }
0x12e8   :  { %v8779_v22 = vpop.eup %8778 }
0x12e9   :  { %3236 = vrot.lane.b32.xlu1 %v8779_v22, %s9253_s10 }
0x135b   :  { %v3237_v31 = vpop.permute.xlu1 %3236 }
0x135c   :  { %v3239_v55 = vmul.f32 %v8777_v51, %v3237_v31  ;;  %v11068_v31 = vld [vmem:[#allocation44_spill] sm:$0xff] }
0x135e   :  { %3241 = vrot.lane.b32.xlu0 %v3239_v55, %s9265_s24  ;;  %v11069_v55 = vld [vmem:[#allocation38_spill] sm:$0xff] }
0x13d0   :  { %v3242_v23 = vpop.permute.xlu0 %3241 }
0x13d1   :  { %6873 = vmatmul.mubr.msk.f32.vlgmr.msra.gmra.mrb[30].mxu0 %vm393_vm1, %v3242_v23  ;;  %7683 = vmatmul.mubr.msk.f32.vlgmr.msra.gmra.mrb[40].mxu1 %vm393_vm1, %v3242_v23 }
0x13d2   :  { %8339 = vmatpush3.bf16.msra.mxu0 %v9498_v29  ;;  %8354 = vmatpush3.bf16.msra.mxu1 %v9805_v0 }
0x13d3   :  { %8341 = vmatprep.subr.bf16.mxu0 %v9510_v39  ;;  %8355 = vmatprep.subr.bf16.mxu1 %v11003_v26 }
0x13d4   :  { %7729 = vmatprep.mubr.msk.f32.mxu1 %vm9264_vm2, %v11002_v61 }
0x13d6   :  { %8343 = vmatpush3.bf16.msra.mxu0 %v9510_v39  ;;  %8357 = vmatpush3.bf16.msra.mxu1 %v9809_v62 }
0x13d7   :  { %8345 = vmatprep.subr.bf16.mxu0 %v9514_v42  ;;  %8358 = vmatprep.subr.bf16.mxu1 %v11003_v26 }
0x13da   :  { %8347 = vmatpush3.bf16.msra.mxu0 %v9514_v42  ;;  %8360 = vmatpush3.bf16.msra.mxu1 %v9812_v41 }
0x13db   :  { %8349 = vmatprep.subr.bf16.mxu0 %v9518_v45  ;;  %8361 = vmatprep.subr.bf16.mxu1 %v11003_v26 }
0x13de   :  { %8351 = vmatpush3.bf16.msra.mxu0 %v9518_v45  ;;  %8363 = vmatpush3.bf16.msra.mxu1 %v11055_v48 }
0x13df   :  { %8370 = vmatprep.subr.bf16.mxu0 %v11003_v26  ;;  %8364 = vmatprep.subr.bf16.mxu1 %v11003_v26 }
0x14a4   :  { %v3311_v49 = vpop.f32.mrb[30].mxu0 }
0x14a5   :  { %v3312_v33 = vadd.f32 %v3311_v49, %v11056_v40  ;;  %v10206_v13 = vpop.f32.mrb[31].mxu0  ;;  %v11070_v49 = vld [vmem:[#allocation45_spill] sm:$0xff] }
0x14a7   :  { %v3393_v4 = vrot.slane %v3312_v33, %v11057_v2 }
0x14a9   :  { %v3394_v37 = vcombine.high %v3393_v4, %v3393_v4  ;;  %v3401_v3 = vrot.slane %v3393_v4, %v11057_v2  ;;  %v10241_v4 = vld [vmem:[#allocation8 + $0x8] sm:$0xff] }
0x14aa   :  { %11071 = vst [vmem:[#allocation28_spill] sm:$0xff] %v10241_v4 }
0x14ab   :  { %v3408_v27 = vrot.slane %v3394_v37, %v11057_v2  ;;  %v3414_v35 = vrot.slane %v3401_v3, %v11058_v15  ;;  %v3409_v52 = vcombine.high %v3401_v3, %v3401_v3 }
0x14ad   :  { %v3418_v46 = vrot.slane %v3408_v27, %v11058_v15  ;;  %v3432_v53 = vmul.f32 %v3414_v35, %v11059_v54  ;;  %v3431_v7 = vmul.f32 %v3414_v35, %v11060_v56  ;;  %v3410_v5 = vcombine.high %v3408_v27, %v3408_v27  ;;  %v10244_v27 = vld [vmem:[#allocation8] sm:$0xff] }
0x14ae   :  { %v3422_v47 = vrot.slane %v3409_v52, %v11058_v15  ;;  %11072 = vst [vmem:[#allocation52_spill] sm:$0xff] %v10244_v27 }
0x14af   :  { %v3433_v30 = vmul.f32 %v3418_v46, %v11061_v50  ;;  %7701 = vmatprep.mubr.msk.f32.mxu0 %vm247_vm0, %v3431_v7  ;;  %v3434_v38 = vmul.f32 %v3418_v46, %v11063_v19  ;;  %v3426_v51 = vrot.slane %v3410_v5, %v11058_v15 }
0x14b0   :  { %7702 = vmatmul.mubr.msk.f32.vlgmr.msra.gmra.mrb[32].mxu0 %vm247_vm0, %v3432_v53  ;;  %v3435_v24 = vmul.f32 %v3422_v47, %v11064_v32  ;;  %v3436_v63 = vmul.f32 %v3422_v47, %v11066_v1 }
0x14b1   :  { %7704 = vmatprep.mubr.msk.f32.mxu0 %vm247_vm0, %v3433_v30  ;;  %8372 = vmatpush3.bf16.msra.mxu0 %v11062_v58  ;;  %v3437_v22 = vmul.f32 %v3426_v51, %v11067_v36  ;;  %v3438_v23 = vmul.f32 %v3426_v51, %v11069_v55  ;;  %v10249_v30 = vld [vmem:[#allocation8 + $0x18] sm:$0xff] }
0x14b2   :  { %8373 = vmatprep.subr.bf16.mxu0 %v11003_v26  ;;  %11073 = vst [vmem:[#allocation53_spill] sm:$0xff] %v10249_v30 }
0x14b4   :  { %7705 = vmatmul.mubr.msk.f32.gmra.mrb[34].mxu0 %vm247_vm0, %v3434_v38  ;;  %v10252_v38 = vld [vmem:[#allocation8 + $0x10] sm:$0xff] }
0x14b5   :  { %7707 = vmatprep.mubr.msk.f32.mxu0 %vm247_vm0, %v3435_v24  ;;  %8375 = vmatpush3.bf16.msra.mxu0 %v11065_v10  ;;  %11074 = vst [vmem:[#allocation46_spill] sm:$0xff] %v10252_v38 }
0x14b6   :  { %8376 = vmatprep.subr.bf16.mxu0 %v11003_v26 }
0x14b8   :  { %7708 = vmatmul.mubr.msk.f32.gmra.mrb[36].mxu0 %vm247_vm0, %v3436_v63 }
0x14b9   :  { %7710 = vmatprep.mubr.msk.f32.mxu0 %vm247_vm0, %v3437_v22  ;;  %8378 = vmatpush3.bf16.msra.mxu0 %v11068_v31 }
0x14ba   :  { %8379 = vmatprep.subr.bf16.mxu0 %v11003_v26 }
0x14bc   :  { %7711 = vmatmul.mubr.msk.f32.gmra.mrb[38].mxu0 %vm247_vm0, %v3438_v23 }
0x14bd   :  { %8381 = vmatpush3.bf16.msra.mxu0 %v11070_v49  ;;  %7759 = vmatprep.mubr.msk.f32.mxu0 %vm9264_vm2, %v11002_v61 }
0x14be   :  { %8390 = vmatprep.subr.bf16.mxu0 %v11003_v26 }
0x1583   :  { %v7703_v33 = vpop.f32.mrb[32].mxu0 }
0x1584   :  { %v3569_v37 = vadd.f32 %v10241_v4, %v7703_v33  ;;  %v3529_v3 = vpop.f32.mrb[33].mxu0  ;;  %v10260_v4 = vld [vmem:[#allocation8 + $0x20] sm:$0xff] }
0x1585   :  { %v3568_v35 = vadd.f32 %v10244_v27, %v3529_v3  ;;  %v10257_v27 = vld [vmem:[#allocation8 + $0x28] sm:$0xff]  ;;  %11076 = vst [vmem:[#allocation48_spill] sm:$0xff] %v10260_v4 }
0x1586   :  { %v3577_v52 = vsel %vm247_vm0, %v3569_v37, -inf  ;;  %11075 = vst [vmem:[#allocation47_spill] sm:$0xff] %v10257_v27 }
0x1587   :  { %v3576_v46 = vsel %vm247_vm0, %v3568_v35, -inf  ;;  %v7706_v53 = vpop.f32.mrb[34].mxu0 }
0x1588   :  { %v3578_v7 = vmax.f32 %v3576_v46, %v3577_v52  ;;  %v3571_v5 = vadd.f32 %v10249_v30, %v7706_v53  ;;  %v3539_v47 = vpop.f32.mrb[35].mxu0 }
0x1589   :  { %v3570_v24 = vadd.f32 %v10252_v38, %v3539_v47 }
0x158a   :  { %v3579_v51 = vrot.slane %v3578_v7, 4  ;;  %v3586_v63 = vsel %vm247_vm0, %v3571_v5, -inf }
0x158b   :  { %v3585_v22 = vsel %vm247_vm0, %v3570_v24, -inf  ;;  %v7709_v23 = vpop.f32.mrb[36].mxu0 }
0x158c   :  { %v3580_v33 = vmax.f32 %v3578_v7, %v3579_v51  ;;  %v3587_v3 = vmax.f32 %v3585_v22, %v3586_v63  ;;  %v3573_v52 = vadd.f32 %v10257_v27, %v7709_v23  ;;  %v3549_v46 = vpop.f32.mrb[37].mxu0  ;;  %v10265_v51 = vld [vmem:[#allocation8 + $0x38] sm:$0xff]  ;;  %v10268_v23 = vld [vmem:[#allocation8 + $0x30] sm:$0xff] }
0x158d   :  { %v3572_v53 = vadd.f32 %v10260_v4, %v3549_v46  ;;  %11077 = vst [vmem:[#allocation49_spill] sm:$0xff] %v10265_v51  ;;  %11078 = vst [vmem:[#allocation50_spill] sm:$0xff] %v10268_v23 }
0x158e   :  { %v3581_v30 = vrot.slane %v3580_v33, 2  ;;  %v3588_v49 = vrot.slane %v3587_v3, 4  ;;  %v3595_v47 = vsel %vm247_vm0, %v3573_v52, -inf }
0x158f   :  { %v3594_v38 = vsel %vm247_vm0, %v3572_v53, -inf  ;;  %v7712_v55 = vpop.f32.mrb[38].mxu0 }
0x1590   :  { %v3582_v31 = vmax.f32 %v3580_v33, %v3581_v30  ;;  %v3589_v36 = vmax.f32 %v3587_v3, %v3588_v49  ;;  %v3596_v7 = vmax.f32 %v3594_v38, %v3595_v47  ;;  %v3575_v63 = vadd.f32 %v10265_v51, %v7712_v55  ;;  %v3559_v22 = vpop.f32.mrb[39].mxu0 }
0x1591   :  { %v3574_v27 = vadd.f32 %v10268_v23, %v3559_v22 }
0x1592   :  { %v3583_v46 = vrot.slane %v3582_v31, 1  ;;  %v3590_v4 = vrot.slane %v3589_v36, 2  ;;  %v3597_v1 = vrot.slane %v3596_v7, 4  ;;  %v3604_v10 = vsel %vm247_vm0, %v3575_v63, -inf }
0x1593   :  { %v3603_v32 = vsel %vm247_vm0, %v3574_v27, -inf }
0x1594   :  { %v3584_v19 = vmax.f32 %v3582_v31, %v3583_v46  ;;  %v3591_v30 = vmax.f32 %v3589_v36, %v3590_v4  ;;  %v3598_v49 = vmax.f32 %v3596_v7, %v3597_v1  ;;  %v3605_v38 = vmax.f32 %v3603_v32, %v3604_v10 }
0x1596   :  { %v3612_v33 = vsub.f32 %v3568_v35, %v3584_v19  ;;  %v3613_v3 = vsub.f32 %v3569_v37, %v3584_v19  ;;  %v3592_v47 = vrot.slane %v3591_v30, 1  ;;  %v3599_v55 = vrot.slane %v3598_v49, 2 }
0x1597   :  { %v3606_v51 = vrot.slane %v3605_v38, 4 }
0x1598   :  { %v3620_v58 = vmul.f32 1.442695, %v3612_v33  ;;  %v3622_v50 = vmul.f32 1.442695, %v3613_v3  ;;  %v3593_v56 = vmax.f32 %v3591_v30, %v3592_v47  ;;  %v3600_v22 = vmax.f32 %v3598_v49, %v3599_v55 }
0x1599   :  { %v3607_v23 = vmax.f32 %v3605_v38, %v3606_v51 }
0x159a   :  { %8780 = vpow2.f32 %v3620_v58  ;;  %v3614_v54 = vsub.f32 %v3570_v24, %v3593_v56  ;;  %v3615_v15 = vsub.f32 %v3571_v5, %v3593_v56  ;;  %v3601_v2 = vrot.slane %v3600_v22, 1 }
0x159b   :  { %8782 = vpow2.f32 %v3622_v50  ;;  %v3608_v40 = vrot.slane %v3607_v23, 2 }
0x159c   :  { %v3624_v31 = vmul.f32 1.442695, %v3614_v54  ;;  %v3626_v36 = vmul.f32 1.442695, %v3615_v15  ;;  %v3602_v1 = vmax.f32 %v3600_v22, %v3601_v2 }
0x159d   :  { %v3609_v32 = vmax.f32 %v3607_v23, %v3608_v40 }
0x159e   :  { %8784 = vpow2.f32 %v3624_v31  ;;  %v3616_v19 = vsub.f32 %v3572_v53, %v3602_v1  ;;  %v3617_v10 = vsub.f32 %v3573_v52, %v3602_v1 }
0x159f   :  { %8786 = vpow2.f32 %v3626_v36  ;;  %v3610_v4 = vrot.slane %v3609_v32, 1 }
0x15a0   :  { %v3628_v37 = vmul.f32 1.442695, %v3616_v19  ;;  %v3630_v35 = vmul.f32 1.442695, %v3617_v10 }
0x15a1   :  { %v3611_v7 = vmax.f32 %v3609_v32, %v3610_v4 }
0x15a2   :  { %8788 = vpow2.f32 %v3628_v37 }
0x15a3   :  { %8790 = vpow2.f32 %v3630_v35  ;;  %v3618_v58 = vsub.f32 %v3574_v27, %v3611_v7  ;;  %v3619_v24 = vsub.f32 %v3575_v63, %v3611_v7 }
0x15a4   :  { %v8781_v56 = vpop.eup %8780 }
0x15a5   :  { %v8783_v5 = vpop.eup %8782  ;;  %v3636_v50 = vmul.f32 %v8781_v56, %v9685_v60  ;;  %v3680_v15 = vsel %vm247_vm0, %v8781_v56, 0.0  ;;  %v3632_v2 = vmul.f32 1.442695, %v3618_v58  ;;  %v3634_v40 = vmul.f32 1.442695, %v3619_v24 }
0x15a6   :  { %v3637_v54 = vmul.f32 %v8783_v5, %v9681_v12  ;;  %v3681_v52 = vsel %vm247_vm0, %v8783_v5, 0.0 }
0x15a7   :  { %v3644_v53 = vsel %vm247_vm0, %v3636_v50, 0.0  ;;  %v3682_v51 = vadd.f32 %v3681_v52, %v3680_v15  ;;  %8792 = vpow2.f32 %v3632_v2 }
0x15a8   :  { %v8785_v23 = vpop.eup %8784  ;;  %v3645_v27 = vsel %vm247_vm0, %v3637_v54, 0.0  ;;  %8794 = vpow2.f32 %v3634_v40 }
0x15a9   :  { %v8787_v63 = vpop.eup %8786  ;;  %v3646_v46 = vadd.f32 %v3645_v27, %v3644_v53  ;;  %v3683_v30 = vrot.slane %v3682_v51, 4  ;;  %v3638_v49 = vmul.f32 %v8785_v23, %v9691_v43  ;;  %v3689_v38 = vsel %vm247_vm0, %v8785_v23, 0.0 }
0x15aa   :  { %v3639_v33 = vmul.f32 %v8787_v63, %v11008_v18  ;;  %v3690_v3 = vsel %vm247_vm0, %v8787_v63, 0.0 }
0x15ab   :  { %v3647_v47 = vrot.slane %v3646_v46, 4  ;;  %v3684_v55 = vadd.f32 %v3683_v30, %v3682_v51  ;;  %v3653_v22 = vsel %vm247_vm0, %v3638_v49, 0.0  ;;  %v3691_v31 = vadd.f32 %v3690_v3, %v3689_v38 }
0x15ac   :  { %v8789_v36 = vpop.eup %8788  ;;  %v3654_v1 = vsel %vm247_vm0, %v3639_v33, 0.0 }
0x15ad   :  { %v8791_v32 = vpop.eup %8790  ;;  %v3648_v19 = vadd.f32 %v3647_v47, %v3646_v46  ;;  %v3685_v10 = vrot.slane %v3684_v55, 2  ;;  %v3655_v4 = vadd.f32 %v3654_v1, %v3653_v22  ;;  %v3692_v37 = vrot.slane %v3691_v31, 4 }
0x15ae   :  { %v3640_v35 = vmul.f32 %v8789_v36, %v11009_v28  ;;  %v3641_v7 = vmul.f32 %v8791_v32, %v11010_v59  ;;  %v3698_v58 = vsel %vm247_vm0, %v8789_v36, 0.0  ;;  %v3699_v24 = vsel %vm247_vm0, %v8791_v32, 0.0 }
0x15af   :  { %v3686_v56 = vadd.f32 %v3685_v10, %v3684_v55  ;;  %v3656_v5 = vrot.slane %v3655_v4, 4  ;;  %v3693_v50 = vadd.f32 %v3692_v37, %v3691_v31  ;;  %v3700_v15 = vadd.f32 %v3699_v24, %v3698_v58 }
0x15b0   :  { %v3662_v2 = vsel %vm247_vm0, %v3640_v35, 0.0  ;;  %v3663_v40 = vsel %vm247_vm0, %v3641_v7, 0.0  ;;  %v3649_v23 = vrot.slane %v3648_v19, 2 }
0x15b1   :  { %v8793_v54 = vpop.eup %8792  ;;  %v3687_v52 = vrot.slane %v3686_v56, 1  ;;  %v3694_v53 = vrot.slane %v3693_v50, 2  ;;  %v3664_v51 = vadd.f32 %v3663_v40, %v3662_v2  ;;  %v3657_v63 = vadd.f32 %v3656_v5, %v3655_v4 }
0x15b2   :  { %v8795_v27 = vpop.eup %8794  ;;  %v3701_v46 = vrot.slane %v3700_v15, 4  ;;  %v3642_v30 = vmul.f32 %v8793_v54, %v11032_v25  ;;  %v3707_v49 = vsel %vm247_vm0, %v8793_v54, 0.0  ;;  %v3650_v37 = vadd.f32 %v3649_v23, %v3648_v19 }
0x15b3   :  { %v3688_v38 = vadd.f32 %v3687_v52, %v3686_v56  ;;  %v3695_v33 = vadd.f32 %v3694_v53, %v3693_v50  ;;  %v3665_v3 = vrot.slane %v3664_v51, 4  ;;  %v3643_v47 = vmul.f32 %v8795_v27, %v11033_v44 }
0x15b4   :  { %v3702_v55 = vadd.f32 %v3701_v46, %v3700_v15  ;;  %v3671_v22 = vsel %vm247_vm0, %v3642_v30, 0.0  ;;  %v3708_v31 = vsel %vm247_vm0, %v8795_v27, 0.0  ;;  %v3658_v35 = vrot.slane %v3657_v63, 2 }
0x15b5   :  { %8796 = vrcp.f32 %v3688_v38  ;;  %v3696_v36 = vrot.slane %v3695_v33, 1  ;;  %v3672_v1 = vsel %vm247_vm0, %v3643_v47, 0.0  ;;  %v3709_v32 = vadd.f32 %v3708_v31, %v3707_v49 }
0x15b6   :  { %v3703_v10 = vrot.slane %v3702_v55, 2  ;;  %v3673_v4 = vadd.f32 %v3672_v1, %v3671_v22  ;;  %v3666_v24 = vadd.f32 %v3665_v3, %v3664_v51  ;;  %v3651_v2 = vrot.slane %v3650_v37, 1 }
0x15b7   :  { %v3697_v7 = vadd.f32 %v3696_v36, %v3695_v33  ;;  %v3710_v58 = vrot.slane %v3709_v32, 4  ;;  %v3659_v40 = vadd.f32 %v3658_v35, %v3657_v63 }
0x15b8   :  { %v3704_v56 = vadd.f32 %v3703_v10, %v3702_v55  ;;  %v3674_v5 = vrot.slane %v3673_v4, 4  ;;  %v3667_v52 = vrot.slane %v3666_v24, 2  ;;  %v3652_v30 = vadd.f32 %v3651_v2, %v3650_v37 }
0x15b9   :  { %8798 = vrcp.f32 %v3697_v7  ;;  %v3711_v50 = vadd.f32 %v3710_v58, %v3709_v32  ;;  %v3660_v49 = vrot.slane %v3659_v40, 1 }
0x15ba   :  { %v3705_v15 = vrot.slane %v3704_v56, 1  ;;  %v3675_v27 = vadd.f32 %v3674_v5, %v3673_v4  ;;  %v3668_v38 = vadd.f32 %v3667_v52, %v3666_v24  ;;  %v3314_v5 = vadd.f32 %v10206_v13, %v9732_v8 }
0x15bb   :  { %v3712_v54 = vrot.slane %v3711_v50, 2  ;;  %v3661_v47 = vadd.f32 %v3660_v49, %v3659_v40 }
0x15bc   :  { %v3706_v53 = vadd.f32 %v3705_v15, %v3704_v56  ;;  %v3676_v33 = vrot.slane %v3675_v27, 2  ;;  %v3669_v22 = vrot.slane %v3668_v38, 1  ;;  %v3807_v56 = vld [vmem:[#allocation2 + $0x10] sm:$0xf] }
0x15bd   :  { %v3713_v46 = vadd.f32 %v3712_v54, %v3711_v50 }
0x15be   :  { %8800 = vrcp.f32 %v3706_v53  ;;  %v3677_v31 = vadd.f32 %v3676_v33, %v3675_v27  ;;  %v3670_v1 = vadd.f32 %v3669_v22, %v3668_v38  ;;  %v10326_v27 = vld [vmem:[%s10879_s13] ss:$0 sm:$0xff] }
0x15bf   :  { %v8797_v19 = vpop.eup %8796  ;;  %v3714_v23 = vrot.slane %v3713_v46, 1 }
0x15c0   :  { %v3720_v51 = vmul.f32 %v8797_v19, %v3652_v30  ;;  %v3678_v10 = vrot.slane %v3677_v31, 1 }
0x15c1   :  { %v3715_v3 = vadd.f32 %v3714_v23, %v3713_v46 }
0x15c2   :  { %v3679_v35 = vadd.f32 %v3678_v10, %v3677_v31 }
0x15c3   :  { %v8799_v55 = vpop.eup %8798  ;;  %8802 = vrcp.f32 %v3715_v3 }
0x15c4   :  { %v3721_v63 = vmul.f32 %v8799_v55, %v3661_v47 }
0x15c6   :  { %v3728_v36 = vsel %vm922_vm3, %v3721_v63, %v3720_v51 }
0x15c8   :  { %v8801_v32 = vpop.eup %8800 }
0x15c9   :  { %v3722_v4 = vmul.f32 %v8801_v32, %v3670_v1  ;;  %v11079_v32 = vld [vmem:[#allocation30_spill] sm:$0xff] }
0x15cb   :  { %v3729_v37 = vsel %vm924_vm4, %v3722_v4, %v3728_v36 }
0x15cd   :  { %v8803_v7 = vpop.eup %8802 }
0x15ce   :  { %v3723_v58 = vmul.f32 %v8803_v7, %v3679_v35 }
0x15d0   :  { %v3730_v24 = vsel %vm926_vm5, %v3723_v58, %v3729_v37  ;;  %v11080_v37 = vld [vmem:[#allocation31_spill] sm:$0xff] }
0x15d1   :  { %7730 = vmatmul.mubr.msk.f32.vlgmr.msra.gmra.mrb[40].mxu1 %vm247_vm0, %v3730_v24  ;;  %7760 = vmatmul.mubr.msk.f32.vlgmr.msra.gmra.mrb[40].mxu0 %vm247_vm0, %v3730_v24 }
0x15d2   :  { %8366 = vmatpush3.bf16.msra.mxu1 %v11013_v21  ;;  %7740 = vmatprep.mubr.msk.f32.mxu1 %vm9264_vm2, %v11002_v61 }
0x15d3   :  { %8367 = vmatprep.subr.bf16.mxu1 %v11003_v26  ;;  %8392 = vmatpush3.bf16.msra.mxu0 %v9747_v6 }
0x15d4   :  { %8393 = vmatprep.subr.bf16.mxu0 %v11003_v26  ;;  %7770 = vmatprep.mubr.msk.f32.mxu0 %vm9264_vm2, %v11002_v61 }
0x15d6   :  { %8369 = vmatpush3.bf16.msra.mxu1 %v11014_v16 }
0x15d7   :  { %8383 = vmatprep.subr.bf16.mxu1 %v11015_v14  ;;  %8395 = vmatpush3.bf16.msra.mxu0 %v9750_v34 }
0x15d8   :  { %8412 = vmatprep.subr.bf16.mxu0 %v11003_v26 }
0x15d9   :  { %7741 = vmatmul.mubr.msk.f32.vlgmr.msra.gmra.mrb[42].mxu1 %vm393_vm1, %v3807_v56  ;;  %v11081_v56 = vld [vmem:[#allocation29_spill] sm:$0xff] }
0x15da   :  { %8385 = vmatpush1.bf16.msra.mxu1 %v9487_v9  ;;  %4046 = vmatprep.mubr.f32.mxu1 %v11002_v61 }
0x15db   :  { %8387 = vmatprep.subr.bf16.mxu1 %v9490_v17 }
0x15de   :  { %8389 = vmatpush1.bf16.msra.mxu1 %v9493_v20 }
0x15df   :  { %8397 = vmatprep.subr.bf16.mxu1 %v9498_v29 }
0x16a4   :  { %v3799_v50 = vpop.f32.mrb[40].mxu1  ;;  %v3947_v15 = vpop.f32.mrb[40].mxu0 }
0x16a5   :  { %v8607_v2 = vadd.f32 %v3799_v50, %v9888_v57  ;;  %v3951_v40 = vadd.f32 %v3947_v15, %v3314_v5  ;;  %v7731_v54 = vpop.f32.mrb[41].mxu1  ;;  %v7761_v52 = vpop.f32.mrb[41].mxu0 }
0x16a6   :  { %v11083_v54 = vld [vmem:[#allocation33_spill] sm:$0xff] }
0x16a7   :  { %3805 = vst [vmem:[#allocation17 + $0xc] sm:$0xf] %v8607_v2  ;;  %v11082_v2 = vld [vmem:[#allocation32_spill] sm:$0xff] }
0x16ac   :  { %v3877_v53 = vpop.f32.mrb[42].mxu1 }
0x16ad   :  { %v3878_v46 = vadd.f32 %v10326_v27, %v3877_v53  ;;  %v7742_v30 = vpop.f32.mrb[43].mxu1  ;;  %v11084_v53 = vld [vmem:[#allocation35_spill] sm:$0xff] }
0x16af   :  { %v3952_v49 = vadd.f32 %v3951_v40, %v3878_v46 }
0x16b1   :  { %8804 = vtanh.f32 %v3952_v49  ;;  %v6886_v19 = vmul.f32 -1.442695, %v3952_v49 }
0x16b3   :  { %8806 = vpow2.f32 %v6886_v19  ;;  %v11086_v19 = vld [vmem:[#allocation34_spill] sm:$0xff] }
0x16bb   :  { %v8805_v13 = vpop.eup %8804 }
0x16bc   :  { %3962 = vrot.lane.b32.xlu1 %v8805_v13, %s9253_s10  ;;  %v11085_v13 = vld [vmem:[#allocation40_spill] sm:$0xff] }
0x16bd   :  { %v8807_v23 = vpop.eup %8806 }
0x16be   :  { %v3956_v38 = vadd.f32 1.0, %v8807_v23 }
0x16c0   :  { %8808 = vrcp.f32 %v3956_v38  ;;  %v11087_v38 = vld [vmem:[#allocation37_spill] sm:$0xff] }
0x16ca   :  { %v8809_v33 = vpop.eup %8808 }
0x16cb   :  { %v3960_v47 = vmul.f32 %v8809_v33, %v10180_v11 }
0x172e   :  { %v3963_v51 = vpop.permute.xlu1 %3962 }
0x172f   :  { %v3965_v3 = vmul.f32 %v8809_v33, %v3963_v51 }
0x1731   :  { %3967 = vrot.lane.b32.xlu0 %v3965_v3, %s9265_s24  ;;  %v11088_v3 = vld [vmem:[#allocation42_spill] sm:$0xff] }
0x17a3   :  { %v3968_v55 = vpop.permute.xlu0 %3967 }
0x17a4   :  { %v10332_v22 = vadd.f32 %v3968_v55, %v3960_v47  ;;  %v11089_v47 = vld [vmem:[#allocation36_spill] sm:$0xff] }
0x17a6   :  { %8810 = vtanh.f32 %v10332_v22 }
0x17b0   :  { %v8811_v31 = vpop.eup %8810 }
0x17b1   :  { %3973 = vrot.lane.b32.xlu1 %v8811_v31, %s9253_s10  ;;  %v11090_v31 = vld [vmem:[#allocation39_spill] sm:$0xff] }
0x1823   :  { %v3974_v63 = vpop.permute.xlu1 %3973 }
0x1824   :  { %v3976_v36 = vmul.f32 %v8809_v33, %v3974_v63 }
0x1826   :  { %3978 = vrot.lane.b32.xlu0 %v3976_v36, %s9265_s24  ;;  %v11091_v36 = vld [vmem:[#allocation44_spill] sm:$0xff] }
0x1898   :  { %v3979_v1 = vpop.permute.xlu0 %3978 }
0x1899   :  { %6887 = vmatmul.mubr.msk.f32.vlgmr.msra.gmra.mrb[44].mxu1 %vm393_vm1, %v3979_v1  ;;  %7771 = vmatmul.mubr.msk.f32.vlgmr.msra.gmra.mrb[42].mxu0 %vm393_vm1, %v3979_v1  ;;  %v11092_v1 = vld [vmem:[#allocation38_spill] sm:$0xff] }
0x189a   :  { %8399 = vmatpush3.bf16.msra.mxu1 %v9498_v29  ;;  %8414 = vmatpush3.bf16.msra.mxu0 %v9805_v0 }
0x189b   :  { %8401 = vmatprep.subr.bf16.mxu1 %v9510_v39  ;;  %8415 = vmatprep.subr.bf16.mxu0 %v11003_v26 }
0x189c   :  { %7817 = vmatprep.mubr.msk.f32.mxu0 %vm9264_vm2, %v11002_v61 }
0x189e   :  { %8403 = vmatpush3.bf16.msra.mxu1 %v9510_v39  ;;  %8417 = vmatpush3.bf16.msra.mxu0 %v9809_v62 }
0x189f   :  { %8405 = vmatprep.subr.bf16.mxu1 %v9514_v42  ;;  %8418 = vmatprep.subr.bf16.mxu0 %v11003_v26 }
0x18a2   :  { %8407 = vmatpush3.bf16.msra.mxu1 %v9514_v42  ;;  %8420 = vmatpush3.bf16.msra.mxu0 %v9812_v41 }
0x18a3   :  { %8409 = vmatprep.subr.bf16.mxu1 %v9518_v45  ;;  %8421 = vmatprep.subr.bf16.mxu0 %v11003_v26 }
0x18a6   :  { %8411 = vmatpush3.bf16.msra.mxu1 %v9518_v45  ;;  %8423 = vmatpush3.bf16.msra.mxu0 %v11055_v48 }
0x18a7   :  { %8430 = vmatprep.subr.bf16.mxu1 %v11003_v26  ;;  %8424 = vmatprep.subr.bf16.mxu0 %v11003_v26 }
0x196c   :  { %v4048_v11 = vpop.f32.mrb[44].mxu1 }
0x196d   :  { %v4049_v10 = vadd.f32 %v4048_v11, %v11079_v32  ;;  %v10358_v4 = vpop.f32.mrb[45].mxu1 }
0x196f   :  { %v4130_v35 = vrot.slane %v4049_v10, %v11080_v37  ;;  %v11093_v10 = vld [vmem:[#allocation45_spill] sm:$0xff] }
0x1971   :  { %v4131_v7 = vcombine.high %v4130_v35, %v4130_v35  ;;  %v4138_v58 = vrot.slane %v4130_v35, %v11080_v37 }
0x1973   :  { %v4145_v24 = vrot.slane %v4131_v7, %v11080_v37  ;;  %v4151_v5 = vrot.slane %v4138_v58, %v11081_v56  ;;  %v4146_v50 = vcombine.high %v4138_v58, %v4138_v58  ;;  %v11094_v7 = vld [vmem:[#allocation28_spill] sm:$0xff] }
0x1975   :  { %v4155_v15 = vrot.slane %v4145_v24, %v11081_v56  ;;  %v4169_v40 = vmul.f32 %v4151_v5, %v11082_v2  ;;  %v4168_v52 = vmul.f32 %v4151_v5, %v11083_v54  ;;  %v4147_v30 = vcombine.high %v4145_v24, %v4145_v24  ;;  %v11095_v5 = vld [vmem:[#allocation52_spill] sm:$0xff] }
0x1976   :  { %v4159_v49 = vrot.slane %v4146_v50, %v11081_v56 }
0x1977   :  { %v4170_v46 = vmul.f32 %v4155_v15, %v11084_v53  ;;  %7789 = vmatprep.mubr.msk.f32.mxu1 %vm247_vm0, %v4168_v52  ;;  %v4171_v23 = vmul.f32 %v4155_v15, %v11086_v19  ;;  %v4163_v51 = vrot.slane %v4147_v30, %v11081_v56  ;;  %v11096_v30 = vld [vmem:[#allocation53_spill] sm:$0xff] }
0x1978   :  { %7790 = vmatmul.mubr.msk.f32.vlgmr.msra.gmra.mrb[46].mxu1 %vm247_vm0, %v4169_v40  ;;  %v4172_v33 = vmul.f32 %v4159_v49, %v11087_v38  ;;  %v4173_v55 = vmul.f32 %v4159_v49, %v11089_v47  ;;  %v11100_v38 = vld [vmem:[#allocation49_spill] sm:$0xff] }
0x1979   :  { %7792 = vmatprep.mubr.msk.f32.mxu1 %vm247_vm0, %v4170_v46  ;;  %8432 = vmatpush3.bf16.msra.mxu1 %v11085_v13  ;;  %v4174_v63 = vmul.f32 %v4163_v51, %v11090_v31  ;;  %v4175_v11 = vmul.f32 %v4163_v51, %v11092_v1 }
0x197a   :  { %8433 = vmatprep.subr.bf16.mxu1 %v11003_v26 }
0x197c   :  { %7793 = vmatmul.mubr.msk.f32.gmra.mrb[48].mxu1 %vm247_vm0, %v4171_v23 }
0x197d   :  { %7795 = vmatprep.mubr.msk.f32.mxu1 %vm247_vm0, %v4172_v33  ;;  %8435 = vmatpush3.bf16.msra.mxu1 %v11088_v3  ;;  %v11097_v33 = vld [vmem:[#allocation46_spill] sm:$0xff] }
0x197e   :  { %8436 = vmatprep.subr.bf16.mxu1 %v11003_v26 }
0x1980   :  { %7796 = vmatmul.mubr.msk.f32.gmra.mrb[50].mxu1 %vm247_vm0, %v4173_v55 }
0x1981   :  { %7798 = vmatprep.mubr.msk.f32.mxu1 %vm247_vm0, %v4174_v63  ;;  %8438 = vmatpush3.bf16.msra.mxu1 %v11091_v36  ;;  %v11099_v36 = vld [vmem:[#allocation48_spill] sm:$0xff] }
0x1982   :  { %8439 = vmatprep.subr.bf16.mxu1 %v11003_v26 }
0x1984   :  { %7799 = vmatmul.mubr.msk.f32.gmra.mrb[52].mxu1 %vm247_vm0, %v4175_v11 }
0x1985   :  { %8441 = vmatpush3.bf16.msra.mxu1 %v11093_v10  ;;  %7847 = vmatprep.mubr.msk.f32.mxu1 %vm9264_vm2, %v11002_v61 }
0x1986   :  { %8450 = vmatprep.subr.bf16.mxu1 %v11003_v26 }
0x1a4b   :  { %v7791_v35 = vpop.f32.mrb[46].mxu1 }
0x1a4c   :  { %v4306_v58 = vadd.f32 %v11094_v7, %v7791_v35  ;;  %v4266_v24 = vpop.f32.mrb[47].mxu1 }
0x1a4d   :  { %v4305_v50 = vadd.f32 %v11095_v5, %v4266_v24  ;;  %v11098_v24 = vld [vmem:[#allocation47_spill] sm:$0xff] }
0x1a4e   :  { %v4314_v15 = vsel %vm247_vm0, %v4306_v58, -inf }
0x1a4f   :  { %v4313_v40 = vsel %vm247_vm0, %v4305_v50, -inf  ;;  %v7794_v52 = vpop.f32.mrb[48].mxu1 }
0x1a50   :  { %v4315_v46 = vmax.f32 %v4313_v40, %v4314_v15  ;;  %v4308_v49 = vadd.f32 %v11096_v30, %v7794_v52  ;;  %v4276_v23 = vpop.f32.mrb[49].mxu1 }
0x1a51   :  { %v4307_v51 = vadd.f32 %v11097_v33, %v4276_v23 }
0x1a52   :  { %v4316_v55 = vrot.slane %v4315_v46, 4  ;;  %v4323_v63 = vsel %vm247_vm0, %v4308_v49, -inf }
0x1a53   :  { %v4322_v11 = vsel %vm247_vm0, %v4307_v51, -inf  ;;  %v7797_v35 = vpop.f32.mrb[50].mxu1 }
0x1a54   :  { %v4317_v7 = vmax.f32 %v4315_v46, %v4316_v55  ;;  %v4324_v10 = vmax.f32 %v4322_v11, %v4323_v63  ;;  %v4310_v5 = vadd.f32 %v11098_v24, %v7797_v35  ;;  %v4286_v1 = vpop.f32.mrb[51].mxu1  ;;  %v11101_v46 = vld [vmem:[#allocation50_spill] sm:$0xff] }
0x1a55   :  { %v4309_v31 = vadd.f32 %v11099_v36, %v4286_v1 }
0x1a56   :  { %v4318_v47 = vrot.slane %v4317_v7, 2  ;;  %v4325_v15 = vrot.slane %v4324_v10, 4  ;;  %v4332_v40 = vsel %vm247_vm0, %v4310_v5, -inf }
0x1a57   :  { %v4331_v52 = vsel %vm247_vm0, %v4309_v31, -inf  ;;  %v7800_v30 = vpop.f32.mrb[52].mxu1 }
0x1a58   :  { %v4319_v23 = vmax.f32 %v4317_v7, %v4318_v47  ;;  %v4326_v33 = vmax.f32 %v4324_v10, %v4325_v15  ;;  %v4333_v3 = vmax.f32 %v4331_v52, %v4332_v40  ;;  %v4312_v19 = vadd.f32 %v11100_v38, %v7800_v30  ;;  %v4296_v13 = vpop.f32.mrb[53].mxu1 }
0x1a59   :  { %v4311_v55 = vadd.f32 %v11101_v46, %v4296_v13 }
0x1a5a   :  { %v4320_v63 = vrot.slane %v4319_v23, 1  ;;  %v4327_v11 = vrot.slane %v4326_v33, 2  ;;  %v4334_v35 = vrot.slane %v4333_v3, 4  ;;  %v4341_v36 = vsel %vm247_vm0, %v4312_v19, -inf }
0x1a5b   :  { %v4340_v1 = vsel %vm247_vm0, %v4311_v55, -inf }
0x1a5c   :  { %v4321_v24 = vmax.f32 %v4319_v23, %v4320_v63  ;;  %v4328_v53 = vmax.f32 %v4326_v33, %v4327_v11  ;;  %v4335_v54 = vmax.f32 %v4333_v3, %v4334_v35  ;;  %v4342_v2 = vmax.f32 %v4340_v1, %v4341_v36 }
0x1a5e   :  { %v4349_v56 = vsub.f32 %v4305_v50, %v4321_v24  ;;  %v4350_v47 = vsub.f32 %v4306_v58, %v4321_v24  ;;  %v4329_v10 = vrot.slane %v4328_v53, 1  ;;  %v4336_v7 = vrot.slane %v4335_v54, 2 }
0x1a5f   :  { %v4343_v15 = vrot.slane %v4342_v2, 4 }
0x1a60   :  { %v4357_v38 = vmul.f32 1.442695, %v4349_v56  ;;  %v4359_v40 = vmul.f32 1.442695, %v4350_v47  ;;  %v4330_v52 = vmax.f32 %v4328_v53, %v4329_v10  ;;  %v4337_v13 = vmax.f32 %v4335_v54, %v4336_v7 }
0x1a61   :  { %v4344_v30 = vmax.f32 %v4342_v2, %v4343_v15 }
0x1a62   :  { %8812 = vpow2.f32 %v4357_v38  ;;  %v4351_v46 = vsub.f32 %v4307_v51, %v4330_v52  ;;  %v4352_v37 = vsub.f32 %v4308_v49, %v4330_v52  ;;  %v4338_v32 = vrot.slane %v4337_v13, 1 }
0x1a63   :  { %8814 = vpow2.f32 %v4359_v40  ;;  %v4345_v48 = vrot.slane %v4344_v30, 2 }
0x1a64   :  { %v4361_v23 = vmul.f32 1.442695, %v4351_v46  ;;  %v4363_v33 = vmul.f32 1.442695, %v4352_v37  ;;  %v4339_v3 = vmax.f32 %v4337_v13, %v4338_v32 }
0x1a65   :  { %v4346_v63 = vmax.f32 %v4344_v30, %v4345_v48 }
0x1a66   :  { %8816 = vpow2.f32 %v4361_v23  ;;  %v4353_v58 = vsub.f32 %v4309_v31, %v4339_v3  ;;  %v4354_v50 = vsub.f32 %v4310_v5, %v4339_v3 }
0x1a67   :  { %8818 = vpow2.f32 %v4363_v33  ;;  %v4347_v11 = vrot.slane %v4346_v63, 1 }
0x1a68   :  { %v4365_v56 = vmul.f32 1.442695, %v4353_v58  ;;  %v4367_v35 = vmul.f32 1.442695, %v4354_v50 }
0x1a69   :  { %v4348_v53 = vmax.f32 %v4346_v63, %v4347_v11 }
0x1a6a   :  { %8820 = vpow2.f32 %v4365_v56 }
0x1a6b   :  { %8822 = vpow2.f32 %v4367_v35  ;;  %v4355_v2 = vsub.f32 %v4311_v55, %v4348_v53  ;;  %v4356_v54 = vsub.f32 %v4312_v19, %v4348_v53 }
0x1a6c   :  { %v8813_v49 = vpop.eup %8812 }
0x1a6d   :  { %v8815_v51 = vpop.eup %8814  ;;  %v4373_v36 = vmul.f32 %v8813_v49, %v9685_v60  ;;  %v4417_v37 = vsel %vm247_vm0, %v8813_v49, 0.0  ;;  %v4369_v32 = vmul.f32 1.442695, %v4355_v2  ;;  %v4371_v48 = vmul.f32 1.442695, %v4356_v54 }
0x1a6e   :  { %v4374_v31 = vmul.f32 %v8815_v51, %v9681_v12  ;;  %v4418_v5 = vsel %vm247_vm0, %v8815_v51, 0.0 }
0x1a6f   :  { %v4381_v1 = vsel %vm247_vm0, %v4373_v36, 0.0  ;;  %v4419_v24 = vadd.f32 %v4418_v5, %v4417_v37  ;;  %8824 = vpow2.f32 %v4369_v32 }
0x1a70   :  { %v8817_v47 = vpop.eup %8816  ;;  %v4382_v55 = vsel %vm247_vm0, %v4374_v31, 0.0  ;;  %8826 = vpow2.f32 %v4371_v48 }
0x1a71   :  { %v8819_v19 = vpop.eup %8818  ;;  %v4383_v10 = vadd.f32 %v4382_v55, %v4381_v1  ;;  %v4420_v7 = vrot.slane %v4419_v24, 4  ;;  %v4375_v15 = vmul.f32 %v8817_v47, %v9691_v43  ;;  %v4426_v38 = vsel %vm247_vm0, %v8817_v47, 0.0 }
0x1a72   :  { %v4376_v40 = vmul.f32 %v8819_v19, %v11008_v18  ;;  %v4427_v52 = vsel %vm247_vm0, %v8819_v19, 0.0 }
0x1a73   :  { %v4384_v13 = vrot.slane %v4383_v10, 4  ;;  %v4421_v30 = vadd.f32 %v4420_v7, %v4419_v24  ;;  %v4390_v46 = vsel %vm247_vm0, %v4375_v15, 0.0  ;;  %v4428_v23 = vadd.f32 %v4427_v52, %v4426_v38 }
0x1a74   :  { %v8821_v33 = vpop.eup %8820  ;;  %v4391_v3 = vsel %vm247_vm0, %v4376_v40, 0.0 }
0x1a75   :  { %v8823_v63 = vpop.eup %8822  ;;  %v4385_v58 = vadd.f32 %v4384_v13, %v4383_v10  ;;  %v4422_v50 = vrot.slane %v4421_v30, 2  ;;  %v4392_v11 = vadd.f32 %v4391_v3, %v4390_v46  ;;  %v4429_v56 = vrot.slane %v4428_v23, 4 }
0x1a76   :  { %v4377_v35 = vmul.f32 %v8821_v33, %v11009_v28  ;;  %v4378_v53 = vmul.f32 %v8823_v63, %v11010_v59  ;;  %v4435_v2 = vsel %vm247_vm0, %v8821_v33, 0.0  ;;  %v4436_v54 = vsel %vm247_vm0, %v8823_v63, 0.0 }
0x1a77   :  { %v4423_v49 = vadd.f32 %v4422_v50, %v4421_v30  ;;  %v4393_v51 = vrot.slane %v4392_v11, 4  ;;  %v4430_v36 = vadd.f32 %v4429_v56, %v4428_v23  ;;  %v4437_v37 = vadd.f32 %v4436_v54, %v4435_v2 }
0x1a78   :  { %v4399_v32 = vsel %vm247_vm0, %v4377_v35, 0.0  ;;  %v4400_v48 = vsel %vm247_vm0, %v4378_v53, 0.0  ;;  %v4386_v47 = vrot.slane %v4385_v58, 2 }
0x1a79   :  { %v8825_v31 = vpop.eup %8824  ;;  %v4424_v5 = vrot.slane %v4423_v49, 1  ;;  %v4431_v1 = vrot.slane %v4430_v36, 2  ;;  %v4401_v24 = vadd.f32 %v4400_v48, %v4399_v32  ;;  %v4394_v19 = vadd.f32 %v4393_v51, %v4392_v11 }
0x1a7a   :  { %v8827_v55 = vpop.eup %8826  ;;  %v4438_v10 = vrot.slane %v4437_v37, 4  ;;  %v4379_v7 = vmul.f32 %v8825_v31, %v11032_v25  ;;  %v4444_v15 = vsel %vm247_vm0, %v8825_v31, 0.0  ;;  %v4387_v56 = vadd.f32 %v4386_v47, %v4385_v58 }
0x1a7b   :  { %v4425_v38 = vadd.f32 %v4424_v5, %v4423_v49  ;;  %v4432_v40 = vadd.f32 %v4431_v1, %v4430_v36  ;;  %v4402_v52 = vrot.slane %v4401_v24, 4  ;;  %v4380_v13 = vmul.f32 %v8827_v55, %v11033_v44 }
0x1a7c   :  { %v4439_v30 = vadd.f32 %v4438_v10, %v4437_v37  ;;  %v4408_v46 = vsel %vm247_vm0, %v4379_v7, 0.0  ;;  %v4445_v23 = vsel %vm247_vm0, %v8827_v55, 0.0  ;;  %v4395_v35 = vrot.slane %v4394_v19, 2 }
0x1a7d   :  { %8828 = vrcp.f32 %v4425_v38  ;;  %v4433_v33 = vrot.slane %v4432_v40, 1  ;;  %v4409_v3 = vsel %vm247_vm0, %v4380_v13, 0.0  ;;  %v4446_v63 = vadd.f32 %v4445_v23, %v4444_v15 }
0x1a7e   :  { %v4440_v50 = vrot.slane %v4439_v30, 2  ;;  %v4410_v11 = vadd.f32 %v4409_v3, %v4408_v46  ;;  %v4403_v54 = vadd.f32 %v4402_v52, %v4401_v24  ;;  %v4388_v32 = vrot.slane %v4387_v56, 1 }
0x1a7f   :  { %v4434_v53 = vadd.f32 %v4433_v33, %v4432_v40  ;;  %v4447_v2 = vrot.slane %v4446_v63, 4  ;;  %v4396_v48 = vadd.f32 %v4395_v35, %v4394_v19 }
0x1a80   :  { %v4441_v49 = vadd.f32 %v4440_v50, %v4439_v30  ;;  %v4411_v51 = vrot.slane %v4410_v11, 4  ;;  %v4404_v5 = vrot.slane %v4403_v54, 2  ;;  %v4389_v7 = vadd.f32 %v4388_v32, %v4387_v56 }
0x1a81   :  { %8830 = vrcp.f32 %v4434_v53  ;;  %v4448_v36 = vadd.f32 %v4447_v2, %v4446_v63  ;;  %v4397_v15 = vrot.slane %v4396_v48, 1 }
0x1a82   :  { %v4442_v37 = vrot.slane %v4441_v49, 1  ;;  %v4412_v55 = vadd.f32 %v4411_v51, %v4410_v11  ;;  %v4405_v38 = vadd.f32 %v4404_v5, %v4403_v54  ;;  %v4051_v51 = vadd.f32 %v10358_v4, %v9732_v8 }
0x1a83   :  { %v4449_v31 = vrot.slane %v4448_v36, 2  ;;  %v4398_v13 = vadd.f32 %v4397_v15, %v4396_v48 }
0x1a84   :  { %v4443_v1 = vadd.f32 %v4442_v37, %v4441_v49  ;;  %v4413_v40 = vrot.slane %v4412_v55, 2  ;;  %v4406_v46 = vrot.slane %v4405_v38, 1  ;;  %v4544_v49 = vld [vmem:[#allocation2 + $0x14] sm:$0xf] }
0x1a85   :  { %v4450_v10 = vadd.f32 %v4449_v31, %v4448_v36 }
0x1a86   :  { %8832 = vrcp.f32 %v4443_v1  ;;  %v4414_v23 = vadd.f32 %v4413_v40, %v4412_v55  ;;  %v4407_v3 = vadd.f32 %v4406_v46, %v4405_v38 }
0x1a87   :  { %v8829_v58 = vpop.eup %8828  ;;  %v4451_v47 = vrot.slane %v4450_v10, 1 }
0x1a88   :  { %v4457_v24 = vmul.f32 %v8829_v58, %v4389_v7  ;;  %v4415_v50 = vrot.slane %v4414_v23, 1 }
0x1a89   :  { %v4452_v52 = vadd.f32 %v4451_v47, %v4450_v10 }
0x1a8a   :  { %v4416_v35 = vadd.f32 %v4415_v50, %v4414_v23 }
0x1a8b   :  { %v8831_v30 = vpop.eup %8830  ;;  %8834 = vrcp.f32 %v4452_v52 }
0x1a8c   :  { %v4458_v19 = vmul.f32 %v8831_v30, %v4398_v13 }
0x1a8e   :  { %v4465_v33 = vsel %vm922_vm3, %v4458_v19, %v4457_v24 }
0x1a90   :  { %v8833_v63 = vpop.eup %8832 }
0x1a91   :  { %v4459_v11 = vmul.f32 %v8833_v63, %v4407_v3  ;;  %v11103_v3 = vld [vmem:[#allocation30_spill] sm:$0xff] }
0x1a93   :  { %v4466_v56 = vsel %vm924_vm4, %v4459_v11, %v4465_v33  ;;  %v11104_v11 = vld [vmem:[#allocation31_spill] sm:$0xff] }
0x1a95   :  { %v8835_v53 = vpop.eup %8834 }
0x1a96   :  { %v4460_v2 = vmul.f32 %v8835_v53, %v4416_v35 }
0x1a98   :  { %v4467_v54 = vsel %vm926_vm5, %v4460_v2, %v4466_v56 }
0x1a99   :  { %7818 = vmatmul.mubr.msk.f32.vlgmr.msra.gmra.mrb[42].mxu0 %vm247_vm0, %v4467_v54  ;;  %7848 = vmatmul.mubr.msk.f32.vlgmr.msra.gmra.mrb[54].mxu1 %vm247_vm0, %v4467_v54  ;;  %v11105_v54 = vld [vmem:[#allocation29_spill] sm:$0xff] }
0x1a9a   :  { %8426 = vmatpush3.bf16.msra.mxu0 %v11013_v21  ;;  %7828 = vmatprep.mubr.msk.f32.mxu0 %vm9264_vm2, %v11002_v61 }
0x1a9b   :  { %8427 = vmatprep.subr.bf16.mxu0 %v11003_v26  ;;  %8452 = vmatpush3.bf16.msra.mxu1 %v9747_v6 }
0x1a9c   :  { %8453 = vmatprep.subr.bf16.mxu1 %v11003_v26  ;;  %7858 = vmatprep.mubr.msk.f32.mxu1 %vm9264_vm2, %v11002_v61 }
0x1a9e   :  { %8429 = vmatpush3.bf16.msra.mxu0 %v11014_v16 }
0x1a9f   :  { %8443 = vmatprep.subr.bf16.mxu0 %v11015_v14  ;;  %8455 = vmatpush3.bf16.msra.mxu1 %v9750_v34 }
0x1aa0   :  { %8472 = vmatprep.subr.bf16.mxu1 %v11003_v26 }
0x1aa1   :  { %7829 = vmatmul.mubr.msk.f32.vlgmr.msra.gmra.mrb[44].mxu0 %vm393_vm1, %v4544_v49 }
0x1aa2   :  { %8445 = vmatpush1.bf16.msra.mxu0 %v9487_v9  ;;  %4783 = vmatprep.mubr.f32.mxu0 %v11002_v61 }
0x1aa3   :  { %8447 = vmatprep.subr.bf16.mxu0 %v9490_v17 }
0x1aa6   :  { %8449 = vmatpush1.bf16.msra.mxu0 %v9493_v20 }
0x1aa7   :  { %8457 = vmatprep.subr.bf16.mxu0 %v9498_v29 }
0x1b6c   :  { %v4536_v36 = vpop.f32.mrb[42].mxu0  ;;  %v4684_v37 = vpop.f32.mrb[54].mxu1 }
0x1b6d   :  { %v8608_v32 = vadd.f32 %v4536_v36, %v9888_v57  ;;  %v4688_v48 = vadd.f32 %v4684_v37, %v4051_v51  ;;  %v7819_v31 = vpop.f32.mrb[43].mxu0  ;;  %v7849_v5 = vpop.f32.mrb[55].mxu1  ;;  %v11106_v37 = vld [vmem:[#allocation32_spill] sm:$0xff] }
0x1b6e   :  { %v11108_v5 = vld [vmem:[#allocation35_spill] sm:$0xff] }
0x1b6f   :  { %4542 = vst [vmem:[#allocation17 + $0x10] sm:$0xf] %v8608_v32 }
0x1b74   :  { %v4614_v1 = vpop.f32.mrb[44].mxu0 }
0x1b75   :  { %v4615_v55 = vadd.f32 %v10326_v27, %v4614_v1  ;;  %v7830_v10 = vpop.f32.mrb[45].mxu0 }
0x1b77   :  { %v4689_v7 = vadd.f32 %v4688_v48, %v4615_v55  ;;  %v11107_v48 = vld [vmem:[#allocation33_spill] sm:$0xff] }
0x1b79   :  { %8836 = vtanh.f32 %v4689_v7  ;;  %v6900_v58 = vmul.f32 -1.442695, %v4689_v7  ;;  %v11109_v7 = vld [vmem:[#allocation40_spill] sm:$0xff] }
0x1b7b   :  { %8838 = vpow2.f32 %v6900_v58 }
0x1b83   :  { %v8837_v15 = vpop.eup %8836 }
0x1b84   :  { %4699 = vrot.lane.b32.xlu1 %v8837_v15, %s9253_s10  ;;  %v11110_v15 = vld [vmem:[#allocation34_spill] sm:$0xff] }
0x1b85   :  { %v8839_v4 = vpop.eup %8838 }
0x1b86   :  { %v4693_v47 = vadd.f32 1.0, %v8839_v4  ;;  %v11111_v4 = vld [vmem:[#allocation37_spill] sm:$0xff] }
0x1b88   :  { %8840 = vrcp.f32 %v4693_v47 }
0x1b92   :  { %v8841_v38 = vpop.eup %8840 }
0x1b93   :  { %v4697_v52 = vmul.f32 %v8841_v38, %v10332_v22  ;;  %v11102_v22 = vld [vmem:[#allocation54_spill] sm:$0xff] }
0x1bf6   :  { %v4700_v40 = vpop.permute.xlu1 %4699 }
0x1bf7   :  { %v4702_v24 = vmul.f32 %v8841_v38, %v4700_v40  ;;  %v11112_v40 = vld [vmem:[#allocation42_spill] sm:$0xff] }
0x1bf9   :  { %4704 = vrot.lane.b32.xlu0 %v4702_v24, %s9265_s24  ;;  %v11113_v24 = vld [vmem:[#allocation36_spill] sm:$0xff] }
0x1c6b   :  { %v4705_v13 = vpop.permute.xlu0 %4704 }
0x1c6c   :  { %v10463_v27 = vadd.f32 %v4705_v13, %v4697_v52  ;;  %v11114_v13 = vld [vmem:[#allocation39_spill] sm:$0xff] }
0x1c6e   :  { %8842 = vtanh.f32 %v10463_v27 }
0x1c78   :  { %v8843_v30 = vpop.eup %8842 }
0x1c79   :  { %4710 = vrot.lane.b32.xlu1 %v8843_v30, %s9253_s10 }
0x1ceb   :  { %v4711_v46 = vpop.permute.xlu1 %4710 }
0x1cec   :  { %v4713_v23 = vmul.f32 %v8841_v38, %v4711_v46  ;;  %v11115_v46 = vld [vmem:[#allocation44_spill] sm:$0xff] }
0x1cee   :  { %4715 = vrot.lane.b32.xlu0 %v4713_v23, %s9265_s24  ;;  %v11116_v23 = vld [vmem:[#allocation38_spill] sm:$0xff] }
0x1d60   :  { %v4716_v19 = vpop.permute.xlu0 %4715 }
0x1d61   :  { %6901 = vmatmul.mubr.msk.f32.vlgmr.msra.gmra.mrb[46].mxu0 %vm393_vm1, %v4716_v19  ;;  %7859 = vmatmul.mubr.msk.f32.vlgmr.msra.gmra.mrb[56].mxu1 %vm393_vm1, %v4716_v19 }
0x1d62   :  { %8459 = vmatpush3.bf16.msra.mxu0 %v9498_v29  ;;  %8474 = vmatpush3.bf16.msra.mxu1 %v9805_v0 }
0x1d63   :  { %8461 = vmatprep.subr.bf16.mxu0 %v9510_v39  ;;  %8475 = vmatprep.subr.bf16.mxu1 %v11003_v26 }
0x1d64   :  { %7905 = vmatprep.mubr.msk.f32.mxu1 %vm9264_vm2, %v11002_v61 }
0x1d66   :  { %8463 = vmatpush3.bf16.msra.mxu0 %v9510_v39  ;;  %8477 = vmatpush3.bf16.msra.mxu1 %v9809_v62 }
0x1d67   :  { %8465 = vmatprep.subr.bf16.mxu0 %v9514_v42  ;;  %8478 = vmatprep.subr.bf16.mxu1 %v11003_v26 }
0x1d6a   :  { %8467 = vmatpush3.bf16.msra.mxu0 %v9514_v42  ;;  %8480 = vmatpush3.bf16.msra.mxu1 %v9812_v41 }
0x1d6b   :  { %8469 = vmatprep.subr.bf16.mxu0 %v9518_v45  ;;  %8481 = vmatprep.subr.bf16.mxu1 %v11003_v26 }
0x1d6e   :  { %8471 = vmatpush3.bf16.msra.mxu0 %v9518_v45  ;;  %8483 = vmatpush3.bf16.msra.mxu1 %v11102_v22 }
0x1d6f   :  { %8490 = vmatprep.subr.bf16.mxu0 %v11003_v26  ;;  %8484 = vmatprep.subr.bf16.mxu1 %v11003_v26 }
0x1e34   :  { %v4785_v33 = vpop.f32.mrb[46].mxu0 }
0x1e35   :  { %v4786_v63 = vadd.f32 %v4785_v33, %v11103_v3  ;;  %v10489_v50 = vpop.f32.mrb[47].mxu0  ;;  %v11117_v33 = vld [vmem:[#allocation45_spill] sm:$0xff] }
0x1e37   :  { %v4867_v56 = vrot.slane %v4786_v63, %v11104_v11 }
0x1e39   :  { %v4868_v35 = vcombine.high %v4867_v56, %v4867_v56  ;;  %v4875_v53 = vrot.slane %v4867_v56, %v11104_v11  ;;  %v10524_v56 = vld [vmem:[#allocation8 + $0x8] sm:$0xff] }
0x1e3a   :  { %11118 = vst [vmem:[#allocation51_spill] sm:$0xff] %v10524_v56 }
0x1e3b   :  { %v4882_v2 = vrot.slane %v4868_v35, %v11104_v11  ;;  %v4888_v49 = vrot.slane %v4875_v53, %v11105_v54  ;;  %v4883_v51 = vcombine.high %v4875_v53, %v4875_v53 }
0x1e3d   :  { %v4892_v36 = vrot.slane %v4882_v2, %v11105_v54  ;;  %v4906_v32 = vmul.f32 %v4888_v49, %v11106_v37  ;;  %v4905_v31 = vmul.f32 %v4888_v49, %v11107_v48  ;;  %v4884_v55 = vcombine.high %v4882_v2, %v4882_v2  ;;  %v10527_v2 = vld [vmem:[#allocation8] sm:$0xff] }
0x1e3e   :  { %v4896_v10 = vrot.slane %v4883_v51, %v11105_v54  ;;  %11119 = vst [vmem:[#allocation41_spill] sm:$0xff] %v10527_v2 }
0x1e3f   :  { %v4907_v1 = vmul.f32 %v4892_v36, %v11108_v5  ;;  %7877 = vmatprep.mubr.msk.f32.mxu0 %vm247_vm0, %v4905_v31  ;;  %v4908_v58 = vmul.f32 %v4892_v36, %v11110_v15  ;;  %v4900_v38 = vrot.slane %v4884_v55, %v11105_v54 }
0x1e40   :  { %7878 = vmatmul.mubr.msk.f32.vlgmr.msra.gmra.mrb[48].mxu0 %vm247_vm0, %v4906_v32  ;;  %v4909_v47 = vmul.f32 %v4896_v10, %v11111_v4  ;;  %v4910_v52 = vmul.f32 %v4896_v10, %v11113_v24 }
0x1e41   :  { %7880 = vmatprep.mubr.msk.f32.mxu0 %vm247_vm0, %v4907_v1  ;;  %8492 = vmatpush3.bf16.msra.mxu0 %v11109_v7  ;;  %v4911_v30 = vmul.f32 %v4900_v38, %v11114_v13  ;;  %v4912_v19 = vmul.f32 %v4900_v38, %v11116_v23  ;;  %v10532_v1 = vld [vmem:[#allocation8 + $0x18] sm:$0xff] }
0x1e42   :  { %8493 = vmatprep.subr.bf16.mxu0 %v11003_v26  ;;  %11120 = vst [vmem:[#allocation43_spill] sm:$0xff] %v10532_v1 }
0x1e44   :  { %7881 = vmatmul.mubr.msk.f32.gmra.mrb[50].mxu0 %vm247_vm0, %v4908_v58  ;;  %v10535_v58 = vld [vmem:[#allocation8 + $0x10] sm:$0xff] }
0x1e45   :  { %7883 = vmatprep.mubr.msk.f32.mxu0 %vm247_vm0, %v4909_v47  ;;  %8495 = vmatpush3.bf16.msra.mxu0 %v11112_v40  ;;  %11121 = vst [vmem:[#allocation28_spill] sm:$0xff] %v10535_v58 }
0x1e46   :  { %8496 = vmatprep.subr.bf16.mxu0 %v11003_v26 }
0x1e48   :  { %7884 = vmatmul.mubr.msk.f32.gmra.mrb[52].mxu0 %vm247_vm0, %v4910_v52 }
0x1e49   :  { %7886 = vmatprep.mubr.msk.f32.mxu0 %vm247_vm0, %v4911_v30  ;;  %8498 = vmatpush3.bf16.msra.mxu0 %v11115_v46 }
0x1e4a   :  { %8499 = vmatprep.subr.bf16.mxu0 %v11003_v26 }
0x1e4c   :  { %7887 = vmatmul.mubr.msk.f32.gmra.mrb[54].mxu0 %vm247_vm0, %v4912_v19 }
0x1e4d   :  { %8501 = vmatpush3.bf16.msra.mxu0 %v11117_v33  ;;  %7935 = vmatprep.mubr.msk.f32.mxu0 %vm9264_vm2, %v11002_v61 }
0x1e4e   :  { %8510 = vmatprep.subr.bf16.mxu0 %v11003_v26 }
0x1f13   :  { %v7879_v63 = vpop.f32.mrb[48].mxu0 }
0x1f14   :  { %v5043_v35 = vadd.f32 %v10524_v56, %v7879_v63  ;;  %v5003_v53 = vpop.f32.mrb[49].mxu0  ;;  %v10543_v56 = vld [vmem:[#allocation8 + $0x20] sm:$0xff] }
0x1f15   :  { %v5042_v49 = vadd.f32 %v10527_v2, %v5003_v53  ;;  %v10540_v2 = vld [vmem:[#allocation8 + $0x28] sm:$0xff]  ;;  %11123 = vst [vmem:[#allocation53_spill] sm:$0xff] %v10543_v56 }
0x1f16   :  { %v5051_v51 = vsel %vm247_vm0, %v5043_v35, -inf  ;;  %11122 = vst [vmem:[#allocation52_spill] sm:$0xff] %v10540_v2 }
0x1f17   :  { %v5050_v36 = vsel %vm247_vm0, %v5042_v49, -inf  ;;  %v7882_v32 = vpop.f32.mrb[50].mxu0 }
0x1f18   :  { %v5052_v31 = vmax.f32 %v5050_v36, %v5051_v51  ;;  %v5045_v55 = vadd.f32 %v10532_v1, %v7882_v32  ;;  %v5013_v10 = vpop.f32.mrb[51].mxu0 }
0x1f19   :  { %v5044_v47 = vadd.f32 %v10535_v58, %v5013_v10 }
0x1f1a   :  { %v5053_v38 = vrot.slane %v5052_v31, 4  ;;  %v5060_v52 = vsel %vm247_vm0, %v5045_v55, -inf }
0x1f1b   :  { %v5059_v30 = vsel %vm247_vm0, %v5044_v47, -inf  ;;  %v7885_v19 = vpop.f32.mrb[52].mxu0 }
0x1f1c   :  { %v5054_v63 = vmax.f32 %v5052_v31, %v5053_v38  ;;  %v5061_v53 = vmax.f32 %v5059_v30, %v5060_v52  ;;  %v5047_v51 = vadd.f32 %v10540_v2, %v7885_v19  ;;  %v5023_v36 = vpop.f32.mrb[53].mxu0  ;;  %v10548_v38 = vld [vmem:[#allocation8 + $0x38] sm:$0xff]  ;;  %v10551_v19 = vld [vmem:[#allocation8 + $0x30] sm:$0xff] }
0x1f1d   :  { %v5046_v32 = vadd.f32 %v10543_v56, %v5023_v36  ;;  %11124 = vst [vmem:[#allocation46_spill] sm:$0xff] %v10548_v38  ;;  %11125 = vst [vmem:[#allocation47_spill] sm:$0xff] %v10551_v19 }
0x1f1e   :  { %v5055_v1 = vrot.slane %v5054_v63, 2  ;;  %v5062_v33 = vrot.slane %v5061_v53, 4  ;;  %v5069_v10 = vsel %vm247_vm0, %v5047_v51, -inf }
0x1f1f   :  { %v5068_v58 = vsel %vm247_vm0, %v5046_v32, -inf  ;;  %v7888_v23 = vpop.f32.mrb[54].mxu0 }
0x1f20   :  { %v5056_v46 = vmax.f32 %v5054_v63, %v5055_v1  ;;  %v5063_v13 = vmax.f32 %v5061_v53, %v5062_v33  ;;  %v5070_v31 = vmax.f32 %v5068_v58, %v5069_v10  ;;  %v5049_v52 = vadd.f32 %v10548_v38, %v7888_v23  ;;  %v5033_v30 = vpop.f32.mrb[55].mxu0 }
0x1f21   :  { %v5048_v2 = vadd.f32 %v10551_v19, %v5033_v30 }
0x1f22   :  { %v5057_v36 = vrot.slane %v5056_v46, 1  ;;  %v5064_v56 = vrot.slane %v5063_v13, 2  ;;  %v5071_v24 = vrot.slane %v5070_v31, 4  ;;  %v5078_v40 = vsel %vm247_vm0, %v5049_v52, -inf }
0x1f23   :  { %v5077_v4 = vsel %vm247_vm0, %v5048_v2, -inf }
0x1f24   :  { %v5058_v15 = vmax.f32 %v5056_v46, %v5057_v36  ;;  %v5065_v1 = vmax.f32 %v5063_v13, %v5064_v56  ;;  %v5072_v33 = vmax.f32 %v5070_v31, %v5071_v24  ;;  %v5079_v58 = vmax.f32 %v5077_v4, %v5078_v40 }
0x1f26   :  { %v5086_v63 = vsub.f32 %v5042_v49, %v5058_v15  ;;  %v5087_v53 = vsub.f32 %v5043_v35, %v5058_v15  ;;  %v5066_v10 = vrot.slane %v5065_v1, 1  ;;  %v5073_v23 = vrot.slane %v5072_v33, 2 }
0x1f27   :  { %v5080_v38 = vrot.slane %v5079_v58, 4 }
0x1f28   :  { %v5094_v7 = vmul.f32 1.442695, %v5086_v63  ;;  %v5096_v5 = vmul.f32 1.442695, %v5087_v53  ;;  %v5067_v48 = vmax.f32 %v5065_v1, %v5066_v10  ;;  %v5074_v30 = vmax.f32 %v5072_v33, %v5073_v23 }
0x1f29   :  { %v5081_v19 = vmax.f32 %v5079_v58, %v5080_v38 }
0x1f2a   :  { %8844 = vpow2.f32 %v5094_v7  ;;  %v5088_v37 = vsub.f32 %v5044_v47, %v5067_v48  ;;  %v5089_v54 = vsub.f32 %v5045_v55, %v5067_v48  ;;  %v5075_v11 = vrot.slane %v5074_v30, 1 }
0x1f2b   :  { %8846 = vpow2.f32 %v5096_v5  ;;  %v5082_v3 = vrot.slane %v5081_v19, 2 }
0x1f2c   :  { %v5098_v46 = vmul.f32 1.442695, %v5088_v37  ;;  %v5100_v13 = vmul.f32 1.442695, %v5089_v54  ;;  %v5076_v24 = vmax.f32 %v5074_v30, %v5075_v11 }
0x1f2d   :  { %v5083_v4 = vmax.f32 %v5081_v19, %v5082_v3 }
0x1f2e   :  { %8848 = vpow2.f32 %v5098_v46  ;;  %v5090_v15 = vsub.f32 %v5046_v32, %v5076_v24  ;;  %v5091_v40 = vsub.f32 %v5047_v51, %v5076_v24 }
0x1f2f   :  { %8850 = vpow2.f32 %v5100_v13  ;;  %v5084_v56 = vrot.slane %v5083_v4, 1 }
0x1f30   :  { %v5102_v35 = vmul.f32 1.442695, %v5090_v15  ;;  %v5104_v49 = vmul.f32 1.442695, %v5091_v40 }
0x1f31   :  { %v5085_v31 = vmax.f32 %v5083_v4, %v5084_v56 }
0x1f32   :  { %8852 = vpow2.f32 %v5102_v35 }
0x1f33   :  { %8854 = vpow2.f32 %v5104_v49  ;;  %v5092_v7 = vsub.f32 %v5048_v2, %v5085_v31  ;;  %v5093_v47 = vsub.f32 %v5049_v52, %v5085_v31 }
0x1f34   :  { %v8845_v48 = vpop.eup %8844 }
0x1f35   :  { %v8847_v55 = vpop.eup %8846  ;;  %v5110_v5 = vmul.f32 %v8845_v48, %v9685_v60  ;;  %v5154_v54 = vsel %vm247_vm0, %v8845_v48, 0.0  ;;  %v5106_v11 = vmul.f32 1.442695, %v5092_v7  ;;  %v5108_v3 = vmul.f32 1.442695, %v5093_v47 }
0x1f36   :  { %v5111_v37 = vmul.f32 %v8847_v55, %v9681_v12  ;;  %v5155_v51 = vsel %vm247_vm0, %v8847_v55, 0.0 }
0x1f37   :  { %v5118_v32 = vsel %vm247_vm0, %v5110_v5, 0.0  ;;  %v5156_v38 = vadd.f32 %v5155_v51, %v5154_v54  ;;  %8856 = vpow2.f32 %v5106_v11 }
0x1f38   :  { %v8849_v19 = vpop.eup %8848  ;;  %v5119_v2 = vsel %vm247_vm0, %v5111_v37, 0.0  ;;  %8858 = vpow2.f32 %v5108_v3 }
0x1f39   :  { %v8851_v52 = vpop.eup %8850  ;;  %v5120_v36 = vadd.f32 %v5119_v2, %v5118_v32  ;;  %v5157_v1 = vrot.slane %v5156_v38, 4  ;;  %v5112_v33 = vmul.f32 %v8849_v19, %v9691_v43  ;;  %v5163_v58 = vsel %vm247_vm0, %v8849_v19, 0.0 }
0x1f3a   :  { %v5113_v63 = vmul.f32 %v8851_v52, %v11008_v18  ;;  %v5164_v53 = vsel %vm247_vm0, %v8851_v52, 0.0 }
0x1f3b   :  { %v5121_v10 = vrot.slane %v5120_v36, 4  ;;  %v5158_v23 = vadd.f32 %v5157_v1, %v5156_v38  ;;  %v5127_v30 = vsel %vm247_vm0, %v5112_v33, 0.0  ;;  %v5165_v46 = vadd.f32 %v5164_v53, %v5163_v58 }
0x1f3c   :  { %v8853_v13 = vpop.eup %8852  ;;  %v5128_v24 = vsel %vm247_vm0, %v5113_v63, 0.0 }
0x1f3d   :  { %v8855_v4 = vpop.eup %8854  ;;  %v5122_v15 = vadd.f32 %v5121_v10, %v5120_v36  ;;  %v5159_v40 = vrot.slane %v5158_v23, 2  ;;  %v5129_v56 = vadd.f32 %v5128_v24, %v5127_v30  ;;  %v5166_v35 = vrot.slane %v5165_v46, 4 }
0x1f3e   :  { %v5114_v49 = vmul.f32 %v8853_v13, %v11009_v28  ;;  %v5115_v31 = vmul.f32 %v8855_v4, %v11010_v59  ;;  %v5172_v7 = vsel %vm247_vm0, %v8853_v13, 0.0  ;;  %v5173_v47 = vsel %vm247_vm0, %v8855_v4, 0.0 }
0x1f3f   :  { %v5160_v48 = vadd.f32 %v5159_v40, %v5158_v23  ;;  %v5130_v55 = vrot.slane %v5129_v56, 4  ;;  %v5167_v5 = vadd.f32 %v5166_v35, %v5165_v46  ;;  %v5174_v54 = vadd.f32 %v5173_v47, %v5172_v7 }
0x1f40   :  { %v5136_v11 = vsel %vm247_vm0, %v5114_v49, 0.0  ;;  %v5137_v3 = vsel %vm247_vm0, %v5115_v31, 0.0  ;;  %v5123_v19 = vrot.slane %v5122_v15, 2 }
0x1f41   :  { %v8857_v37 = vpop.eup %8856  ;;  %v5161_v51 = vrot.slane %v5160_v48, 1  ;;  %v5168_v32 = vrot.slane %v5167_v5, 2  ;;  %v5138_v38 = vadd.f32 %v5137_v3, %v5136_v11  ;;  %v5131_v52 = vadd.f32 %v5130_v55, %v5129_v56 }
0x1f42   :  { %v8859_v2 = vpop.eup %8858  ;;  %v5175_v36 = vrot.slane %v5174_v54, 4  ;;  %v5116_v1 = vmul.f32 %v8857_v37, %v11032_v25  ;;  %v5181_v33 = vsel %vm247_vm0, %v8857_v37, 0.0  ;;  %v5124_v35 = vadd.f32 %v5123_v19, %v5122_v15 }
0x1f43   :  { %v5162_v58 = vadd.f32 %v5161_v51, %v5160_v48  ;;  %v5169_v63 = vadd.f32 %v5168_v32, %v5167_v5  ;;  %v5139_v53 = vrot.slane %v5138_v38, 4  ;;  %v5117_v10 = vmul.f32 %v8859_v2, %v11033_v44 }
0x1f44   :  { %v5176_v23 = vadd.f32 %v5175_v36, %v5174_v54  ;;  %v5145_v30 = vsel %vm247_vm0, %v5116_v1, 0.0  ;;  %v5182_v46 = vsel %vm247_vm0, %v8859_v2, 0.0  ;;  %v5132_v49 = vrot.slane %v5131_v52, 2 }
0x1f45   :  { %8860 = vrcp.f32 %v5162_v58  ;;  %v5170_v13 = vrot.slane %v5169_v63, 1  ;;  %v5146_v24 = vsel %vm247_vm0, %v5117_v10, 0.0  ;;  %v5183_v4 = vadd.f32 %v5182_v46, %v5181_v33 }
0x1f46   :  { %v5177_v40 = vrot.slane %v5176_v23, 2  ;;  %v5147_v56 = vadd.f32 %v5146_v24, %v5145_v30  ;;  %v5140_v47 = vadd.f32 %v5139_v53, %v5138_v38  ;;  %v5125_v11 = vrot.slane %v5124_v35, 1 }
0x1f47   :  { %v5171_v31 = vadd.f32 %v5170_v13, %v5169_v63  ;;  %v5184_v7 = vrot.slane %v5183_v4, 4  ;;  %v5133_v3 = vadd.f32 %v5132_v49, %v5131_v52 }
0x1f48   :  { %v5178_v48 = vadd.f32 %v5177_v40, %v5176_v23  ;;  %v5148_v55 = vrot.slane %v5147_v56, 4  ;;  %v5141_v51 = vrot.slane %v5140_v47, 2  ;;  %v5126_v1 = vadd.f32 %v5125_v11, %v5124_v35 }
0x1f49   :  { %8862 = vrcp.f32 %v5171_v31  ;;  %v5185_v5 = vadd.f32 %v5184_v7, %v5183_v4  ;;  %v5134_v33 = vrot.slane %v5133_v3, 1 }
0x1f4a   :  { %v5179_v54 = vrot.slane %v5178_v48, 1  ;;  %v5149_v2 = vadd.f32 %v5148_v55, %v5147_v56  ;;  %v5142_v58 = vadd.f32 %v5141_v51, %v5140_v47  ;;  %v4788_v55 = vadd.f32 %v10489_v50, %v9732_v8 }
0x1f4b   :  { %v5186_v37 = vrot.slane %v5185_v5, 2  ;;  %v5135_v10 = vadd.f32 %v5134_v33, %v5133_v3 }
0x1f4c   :  { %v5180_v32 = vadd.f32 %v5179_v54, %v5178_v48  ;;  %v5150_v63 = vrot.slane %v5149_v2, 2  ;;  %v5143_v30 = vrot.slane %v5142_v58, 1  ;;  %v5281_v48 = vld [vmem:[#allocation2 + $0x18] sm:$0xf] }
0x1f4d   :  { %v5187_v36 = vadd.f32 %v5186_v37, %v5185_v5 }
0x1f4e   :  { %8864 = vrcp.f32 %v5180_v32  ;;  %v5151_v46 = vadd.f32 %v5150_v63, %v5149_v2  ;;  %v5144_v24 = vadd.f32 %v5143_v30, %v5142_v58  ;;  %v10609_v2 = vld [vmem:[%s10879_s13] ss:$0 sm:$0xff]  ;;  %s9266_s13 = smov 96  }
0x1f4f   :  { %v8861_v15 = vpop.eup %8860  ;;  %v5188_v19 = vrot.slane %v5187_v36, 1 }
0x1f50   :  { %v5194_v38 = vmul.f32 %v8861_v15, %v5126_v1  ;;  %v5152_v40 = vrot.slane %v5151_v46, 1 }
0x1f51   :  { %v5189_v53 = vadd.f32 %v5188_v19, %v5187_v36 }
0x1f52   :  { %v5153_v49 = vadd.f32 %v5152_v40, %v5151_v46 }
0x1f53   :  { %v8863_v23 = vpop.eup %8862  ;;  %8866 = vrcp.f32 %v5189_v53 }
0x1f54   :  { %v5195_v52 = vmul.f32 %v8863_v23, %v5135_v10 }
0x1f56   :  { %v5202_v13 = vsel %vm922_vm3, %v5195_v52, %v5194_v38 }
0x1f58   :  { %v8865_v4 = vpop.eup %8864 }
0x1f59   :  { %v5196_v56 = vmul.f32 %v8865_v4, %v5144_v24  ;;  %v11126_v4 = vld [vmem:[#allocation30_spill] sm:$0xff] }
0x1f5b   :  { %v5203_v35 = vsel %vm924_vm4, %v5196_v56, %v5202_v13 }
0x1f5d   :  { %v8867_v31 = vpop.eup %8866 }
0x1f5e   :  { %v5197_v7 = vmul.f32 %v8867_v31, %v5153_v49 }
0x1f60   :  { %v5204_v47 = vsel %vm926_vm5, %v5197_v7, %v5203_v35  ;;  %v11127_v35 = vld [vmem:[#allocation31_spill] sm:$0xff] }
0x1f61   :  { %7906 = vmatmul.mubr.msk.f32.vlgmr.msra.gmra.mrb[56].mxu1 %vm247_vm0, %v5204_v47  ;;  %7936 = vmatmul.mubr.msk.f32.vlgmr.msra.gmra.mrb[56].mxu0 %vm247_vm0, %v5204_v47 }
0x1f62   :  { %8486 = vmatpush3.bf16.msra.mxu1 %v11013_v21  ;;  %7916 = vmatprep.mubr.msk.f32.mxu1 %vm9264_vm2, %v11002_v61 }
0x1f63   :  { %8487 = vmatprep.subr.bf16.mxu1 %v11003_v26  ;;  %8512 = vmatpush3.bf16.msra.mxu0 %v9747_v6 }
0x1f64   :  { %8513 = vmatprep.subr.bf16.mxu0 %v11003_v26  ;;  %7946 = vmatprep.mubr.msk.f32.mxu0 %vm9264_vm2, %v11002_v61 }
0x1f66   :  { %8489 = vmatpush3.bf16.msra.mxu1 %v11014_v16 }
0x1f67   :  { %8503 = vmatprep.subr.bf16.mxu1 %v11015_v14  ;;  %8515 = vmatpush3.bf16.msra.mxu0 %v9750_v34 }
0x1f68   :  { %8532 = vmatprep.subr.bf16.mxu0 %v11003_v26 }
0x1f69   :  { %7917 = vmatmul.mubr.msk.f32.vlgmr.msra.gmra.mrb[58].mxu1 %vm393_vm1, %v5281_v48  ;;  %v11128_v48 = vld [vmem:[#allocation29_spill] sm:$0xff] }
0x1f6a   :  { %8505 = vmatpush1.bf16.msra.mxu1 %v9487_v9  ;;  %5520 = vmatprep.mubr.f32.mxu1 %v11002_v61 }
0x1f6b   :  { %8507 = vmatprep.subr.bf16.mxu1 %v9490_v17 }
0x1f6e   :  { %8509 = vmatpush1.bf16.msra.mxu1 %v9493_v20 }
0x1f6f   :  { %8517 = vmatprep.subr.bf16.mxu1 %v9498_v29 }
0x2034   :  { %v5273_v5 = vpop.f32.mrb[56].mxu1  ;;  %v5421_v54 = vpop.f32.mrb[56].mxu0 }
0x2035   :  { %v8609_v11 = vadd.f32 %v5273_v5, %v9888_v57  ;;  %v5425_v3 = vadd.f32 %v5421_v54, %v4788_v55  ;;  %v7907_v37 = vpop.f32.mrb[57].mxu1  ;;  %v7937_v51 = vpop.f32.mrb[57].mxu0 }
0x2036   :  { %v11130_v37 = vld [vmem:[#allocation33_spill] sm:$0xff] }
0x2037   :  { %5279 = vst [vmem:[#allocation17 + $0x14] sm:$0xf] %v8609_v11  ;;  %v11129_v11 = vld [vmem:[#allocation32_spill] sm:$0xff] }
0x203c   :  { %v5351_v32 = vpop.f32.mrb[58].mxu1 }
0x203d   :  { %v5352_v36 = vadd.f32 %v10609_v2, %v5351_v32  ;;  %v7918_v1 = vpop.f32.mrb[59].mxu1  ;;  %v11131_v32 = vld [vmem:[#allocation35_spill] sm:$0xff] }
0x203f   :  { %v5426_v33 = vadd.f32 %v5425_v3, %v5352_v36 }
0x2041   :  { %8868 = vtanh.f32 %v5426_v33  ;;  %v6914_v15 = vmul.f32 -1.442695, %v5426_v33 }
0x2043   :  { %8870 = vpow2.f32 %v6914_v15  ;;  %v11133_v15 = vld [vmem:[#allocation34_spill] sm:$0xff] }
0x204b   :  { %v8869_v50 = vpop.eup %8868 }
0x204c   :  { %5436 = vrot.lane.b32.xlu1 %v8869_v50, %s9253_s10  ;;  %v11132_v50 = vld [vmem:[#allocation40_spill] sm:$0xff] }
0x204d   :  { %v8871_v19 = vpop.eup %8870 }
0x204e   :  { %v5430_v58 = vadd.f32 1.0, %v8871_v19 }
0x2050   :  { %8872 = vrcp.f32 %v5430_v58  ;;  %v11134_v58 = vld [vmem:[#allocation37_spill] sm:$0xff] }
0x205a   :  { %v8873_v63 = vpop.eup %8872 }
0x205b   :  { %v5434_v10 = vmul.f32 %v8873_v63, %v10463_v27 }
0x20be   :  { %v5437_v38 = vpop.permute.xlu1 %5436 }
0x20bf   :  { %v5439_v53 = vmul.f32 %v8873_v63, %v5437_v38 }
0x20c1   :  { %5441 = vrot.lane.b32.xlu0 %v5439_v53, %s9265_s24  ;;  %v11135_v53 = vld [vmem:[#allocation42_spill] sm:$0xff] }
0x2133   :  { %v5442_v23 = vpop.permute.xlu0 %5441 }
0x2134   :  { %v10615_v30 = vadd.f32 %v5442_v23, %v5434_v10  ;;  %v11136_v10 = vld [vmem:[#allocation36_spill] sm:$0xff] }
0x2136   :  { %8874 = vtanh.f32 %v10615_v30 }
0x2140   :  { %v8875_v46 = vpop.eup %8874 }
0x2141   :  { %5447 = vrot.lane.b32.xlu1 %v8875_v46, %s9253_s10  ;;  %v11137_v46 = vld [vmem:[#allocation39_spill] sm:$0xff] }
0x21b3   :  { %v5448_v52 = vpop.permute.xlu1 %5447 }
0x21b4   :  { %v5450_v13 = vmul.f32 %v8873_v63, %v5448_v52 }
0x21b6   :  { %5452 = vrot.lane.b32.xlu0 %v5450_v13, %s9265_s24  ;;  %v11138_v13 = vld [vmem:[#allocation44_spill] sm:$0xff] }
0x2228   :  { %v5453_v24 = vpop.permute.xlu0 %5452 }
0x2229   :  { %6915 = vmatmul.mubr.msk.f32.vlgmr.msra.gmra.mrb[60].mxu1 %vm393_vm1, %v5453_v24  ;;  %7947 = vmatmul.mubr.msk.f32.vlgmr.msra.gmra.mrb[58].mxu0 %vm393_vm1, %v5453_v24  ;;  %v11139_v24 = vld [vmem:[#allocation38_spill] sm:$0xff] }
0x222a   :  { %8519 = vmatpush3.bf16.msra.mxu1 %v9498_v29  ;;  %8534 = vmatpush3.bf16.msra.mxu0 %v9805_v0 }
0x222b   :  { %8521 = vmatprep.subr.bf16.mxu1 %v9510_v39  ;;  %8535 = vmatprep.subr.bf16.mxu0 %v11003_v26 }
0x222c   :  { %7993 = vmatprep.mubr.msk.f32.mxu0 %vm9264_vm2, %v11002_v61 }
0x222e   :  { %8523 = vmatpush3.bf16.msra.mxu1 %v9510_v39  ;;  %8537 = vmatpush3.bf16.msra.mxu0 %v9809_v62 }
0x222f   :  { %8525 = vmatprep.subr.bf16.mxu1 %v9514_v42  ;;  %8538 = vmatprep.subr.bf16.mxu0 %v11003_v26 }
0x2232   :  { %8527 = vmatpush3.bf16.msra.mxu1 %v9514_v42  ;;  %8540 = vmatpush3.bf16.msra.mxu0 %v9812_v41 }
0x2233   :  { %8529 = vmatprep.subr.bf16.mxu1 %v9518_v45  ;;  %8541 = vmatprep.subr.bf16.mxu0 %v11003_v26 }
0x2236   :  { %8531 = vmatpush3.bf16.msra.mxu1 %v9518_v45  ;;  %8543 = vmatpush3.bf16.msra.mxu0 %v11102_v22 }
0x2237   :  { %8550 = vmatprep.subr.bf16.mxu1 %v11003_v26  ;;  %8544 = vmatprep.subr.bf16.mxu0 %v11003_v26 }
0x22fc   :  { %v5522_v27 = vpop.f32.mrb[60].mxu1 }
0x22fd   :  { %v5523_v40 = vadd.f32 %v5522_v27, %v11126_v4  ;;  %v10641_v56 = vpop.f32.mrb[61].mxu1 }
0x22ff   :  { %v5604_v49 = vrot.slane %v5523_v40, %v11127_v35  ;;  %v11140_v40 = vld [vmem:[#allocation45_spill] sm:$0xff] }
0x2301   :  { %v5605_v31 = vcombine.high %v5604_v49, %v5604_v49  ;;  %v5612_v7 = vrot.slane %v5604_v49, %v11127_v35 }
0x2303   :  { %v5619_v47 = vrot.slane %v5605_v31, %v11127_v35  ;;  %v5625_v55 = vrot.slane %v5612_v7, %v11128_v48  ;;  %v5620_v5 = vcombine.high %v5612_v7, %v5612_v7  ;;  %v11141_v31 = vld [vmem:[#allocation51_spill] sm:$0xff] }
0x2305   :  { %v5629_v54 = vrot.slane %v5619_v47, %v11128_v48  ;;  %v5643_v3 = vmul.f32 %v5625_v55, %v11129_v11  ;;  %v5642_v51 = vmul.f32 %v5625_v55, %v11130_v37  ;;  %v5621_v1 = vcombine.high %v5619_v47, %v5619_v47  ;;  %v11142_v55 = vld [vmem:[#allocation41_spill] sm:$0xff] }
0x2306   :  { %v5633_v33 = vrot.slane %v5620_v5, %v11128_v48 }
0x2307   :  { %v5644_v36 = vmul.f32 %v5629_v54, %v11131_v32  ;;  %7965 = vmatprep.mubr.msk.f32.mxu1 %vm247_vm0, %v5642_v51  ;;  %v5645_v19 = vmul.f32 %v5629_v54, %v11133_v15  ;;  %v5637_v38 = vrot.slane %v5621_v1, %v11128_v48  ;;  %v11143_v1 = vld [vmem:[#allocation43_spill] sm:$0xff] }
0x2308   :  { %7966 = vmatmul.mubr.msk.f32.vlgmr.msra.gmra.mrb[62].mxu1 %vm247_vm0, %v5643_v3  ;;  %v5646_v63 = vmul.f32 %v5633_v33, %v11134_v58  ;;  %v5647_v23 = vmul.f32 %v5633_v33, %v11136_v10  ;;  %v11147_v10 = vld [vmem:[#allocation46_spill] sm:$0xff] }
0x2309   :  { %7968 = vmatprep.mubr.msk.f32.mxu1 %vm247_vm0, %v5644_v36  ;;  %8552 = vmatpush3.bf16.msra.mxu1 %v11132_v50  ;;  %v5648_v52 = vmul.f32 %v5637_v38, %v11137_v46  ;;  %v5649_v27 = vmul.f32 %v5637_v38, %v11139_v24 }
0x230a   :  { %8553 = vmatprep.subr.bf16.mxu1 %v11003_v26 }
0x230c   :  { %7969 = vmatmul.mubr.msk.f32.gmra.mrb[64].mxu1 %vm247_vm0, %v5645_v19  ;;  %v11144_v19 = vld [vmem:[#allocation28_spill] sm:$0xff] }
0x230d   :  { %7971 = vmatprep.mubr.msk.f32.mxu1 %vm247_vm0, %v5646_v63  ;;  %8555 = vmatpush3.bf16.msra.mxu1 %v11135_v53 }
0x230e   :  { %8556 = vmatprep.subr.bf16.mxu1 %v11003_v26 }
0x2310   :  { %7972 = vmatmul.mubr.msk.f32.gmra.mrb[66].mxu1 %vm247_vm0, %v5647_v23 }
0x2311   :  { %7974 = vmatprep.mubr.msk.f32.mxu1 %vm247_vm0, %v5648_v52  ;;  %8558 = vmatpush3.bf16.msra.mxu1 %v11138_v13 }
0x2312   :  { %8559 = vmatprep.subr.bf16.mxu1 %v11003_v26 }
0x2314   :  { %7975 = vmatmul.mubr.msk.f32.gmra.mrb[68].mxu1 %vm247_vm0, %v5649_v27 }
0x2315   :  { %8561 = vmatpush3.bf16.msra.mxu1 %v11140_v40  ;;  %8023 = vmatprep.mubr.msk.f32.mxu1 %vm9264_vm2, %v11002_v61  ;;  %v11145_v40 = vld [vmem:[#allocation52_spill] sm:$0xff] }
0x2316   :  { %8570 = vmatprep.subr.bf16.mxu1 %v11003_v26 }
0x23db   :  { %v7967_v49 = vpop.f32.mrb[62].mxu1 }
0x23dc   :  { %v5780_v7 = vadd.f32 %v11141_v31, %v7967_v49  ;;  %v5740_v47 = vpop.f32.mrb[63].mxu1 }
0x23dd   :  { %v5779_v5 = vadd.f32 %v11142_v55, %v5740_v47  ;;  %v11146_v47 = vld [vmem:[#allocation53_spill] sm:$0xff] }
0x23de   :  { %v5788_v54 = vsel %vm247_vm0, %v5780_v7, -inf }
0x23df   :  { %v5787_v3 = vsel %vm247_vm0, %v5779_v5, -inf  ;;  %v7970_v51 = vpop.f32.mrb[64].mxu1 }
0x23e0   :  { %v5789_v36 = vmax.f32 %v5787_v3, %v5788_v54  ;;  %v5782_v33 = vadd.f32 %v11143_v1, %v7970_v51  ;;  %v5750_v50 = vpop.f32.mrb[65].mxu1 }
0x23e1   :  { %v5781_v63 = vadd.f32 %v11144_v19, %v5750_v50 }
0x23e2   :  { %v5790_v38 = vrot.slane %v5789_v36, 4  ;;  %v5797_v53 = vsel %vm247_vm0, %v5782_v33, -inf }
0x23e3   :  { %v5796_v23 = vsel %vm247_vm0, %v5781_v63, -inf  ;;  %v7973_v52 = vpop.f32.mrb[66].mxu1 }
0x23e4   :  { %v5791_v13 = vmax.f32 %v5789_v36, %v5790_v38  ;;  %v5798_v27 = vmax.f32 %v5796_v23, %v5797_v53  ;;  %v5784_v49 = vadd.f32 %v11145_v40, %v7973_v52  ;;  %v5760_v31 = vpop.f32.mrb[67].mxu1  ;;  %v11148_v36 = vld [vmem:[#allocation47_spill] sm:$0xff] }
0x23e5   :  { %v5783_v55 = vadd.f32 %v11146_v47, %v5760_v31 }
0x23e6   :  { %v5792_v24 = vrot.slane %v5791_v13, 2  ;;  %v5799_v54 = vrot.slane %v5798_v27, 4  ;;  %v5806_v3 = vsel %vm247_vm0, %v5784_v49, -inf }
0x23e7   :  { %v5805_v51 = vsel %vm247_vm0, %v5783_v55, -inf  ;;  %v7976_v1 = vpop.f32.mrb[68].mxu1 }
0x23e8   :  { %v5793_v50 = vmax.f32 %v5791_v13, %v5792_v24  ;;  %v5800_v19 = vmax.f32 %v5798_v27, %v5799_v54  ;;  %v5807_v46 = vmax.f32 %v5805_v51, %v5806_v3  ;;  %v5786_v58 = vadd.f32 %v11147_v10, %v7976_v1  ;;  %v5770_v15 = vpop.f32.mrb[69].mxu1 }
0x23e9   :  { %v5785_v38 = vadd.f32 %v11148_v36, %v5770_v15 }
0x23ea   :  { %v5794_v53 = vrot.slane %v5793_v50, 1  ;;  %v5801_v23 = vrot.slane %v5800_v19, 2  ;;  %v5808_v52 = vrot.slane %v5807_v46, 4  ;;  %v5815_v40 = vsel %vm247_vm0, %v5786_v58, -inf }
0x23eb   :  { %v5814_v31 = vsel %vm247_vm0, %v5785_v38, -inf }
0x23ec   :  { %v5795_v47 = vmax.f32 %v5793_v50, %v5794_v53  ;;  %v5802_v32 = vmax.f32 %v5800_v19, %v5801_v23  ;;  %v5809_v37 = vmax.f32 %v5807_v46, %v5808_v52  ;;  %v5816_v11 = vmax.f32 %v5814_v31, %v5815_v40 }
0x23ee   :  { %v5823_v48 = vsub.f32 %v5779_v5, %v5795_v47  ;;  %v5824_v24 = vsub.f32 %v5780_v7, %v5795_v47  ;;  %v5803_v13 = vrot.slane %v5802_v32, 1  ;;  %v5810_v27 = vrot.slane %v5809_v37, 2 }
0x23ef   :  { %v5817_v54 = vrot.slane %v5816_v11, 4 }
0x23f0   :  { %v5831_v10 = vmul.f32 1.442695, %v5823_v48  ;;  %v5833_v3 = vmul.f32 1.442695, %v5824_v24  ;;  %v5804_v51 = vmax.f32 %v5802_v32, %v5803_v13  ;;  %v5811_v15 = vmax.f32 %v5809_v37, %v5810_v27 }
0x23f1   :  { %v5818_v1 = vmax.f32 %v5816_v11, %v5817_v54 }
0x23f2   :  { %8876 = vpow2.f32 %v5831_v10  ;;  %v5825_v36 = vsub.f32 %v5781_v63, %v5804_v51  ;;  %v5826_v35 = vsub.f32 %v5782_v33, %v5804_v51  ;;  %v5812_v4 = vrot.slane %v5811_v15, 1 }
0x23f3   :  { %8878 = vpow2.f32 %v5833_v3  ;;  %v5819_v22 = vrot.slane %v5818_v1, 2 }
0x23f4   :  { %v5835_v50 = vmul.f32 1.442695, %v5825_v36  ;;  %v5837_v19 = vmul.f32 1.442695, %v5826_v35  ;;  %v5813_v46 = vmax.f32 %v5811_v15, %v5812_v4 }
0x23f5   :  { %v5820_v53 = vmax.f32 %v5818_v1, %v5819_v22 }
0x23f6   :  { %8880 = vpow2.f32 %v5835_v50  ;;  %v5827_v7 = vsub.f32 %v5783_v55, %v5813_v46  ;;  %v5828_v5 = vsub.f32 %v5784_v49, %v5813_v46 }
0x23f7   :  { %8882 = vpow2.f32 %v5837_v19  ;;  %v5821_v23 = vrot.slane %v5820_v53, 1 }
0x23f8   :  { %v5839_v48 = vmul.f32 1.442695, %v5827_v7  ;;  %v5841_v52 = vmul.f32 1.442695, %v5828_v5 }
0x23f9   :  { %v5822_v32 = vmax.f32 %v5820_v53, %v5821_v23 }
0x23fa   :  { %8884 = vpow2.f32 %v5839_v48 }
0x23fb   :  { %8886 = vpow2.f32 %v5841_v52  ;;  %v5829_v11 = vsub.f32 %v5785_v38, %v5822_v32  ;;  %v5830_v37 = vsub.f32 %v5786_v58, %v5822_v32 }
0x23fc   :  { %v8877_v33 = vpop.eup %8876 }
0x23fd   :  { %v8879_v63 = vpop.eup %8878  ;;  %v5847_v40 = vmul.f32 %v8877_v33, %v9685_v60  ;;  %v5891_v35 = vsel %vm247_vm0, %v8877_v33, 0.0  ;;  %v5843_v4 = vmul.f32 1.442695, %v5829_v11  ;;  %v5845_v22 = vmul.f32 1.442695, %v5830_v37 }
0x23fe   :  { %v5848_v55 = vmul.f32 %v8879_v63, %v9681_v12  ;;  %v5892_v49 = vsel %vm247_vm0, %v8879_v63, 0.0 }
0x23ff   :  { %v5855_v31 = vsel %vm247_vm0, %v5847_v40, 0.0  ;;  %v5893_v47 = vadd.f32 %v5892_v49, %v5891_v35  ;;  %8888 = vpow2.f32 %v5843_v4 }
0x2400   :  { %v8881_v24 = vpop.eup %8880  ;;  %v5856_v38 = vsel %vm247_vm0, %v5848_v55, 0.0  ;;  %8890 = vpow2.f32 %v5845_v22 }
0x2401   :  { %v8883_v58 = vpop.eup %8882  ;;  %v5857_v13 = vadd.f32 %v5856_v38, %v5855_v31  ;;  %v5894_v27 = vrot.slane %v5893_v47, 4  ;;  %v5849_v54 = vmul.f32 %v8881_v24, %v9691_v43  ;;  %v5900_v10 = vsel %vm247_vm0, %v8881_v24, 0.0 }
0x2402   :  { %v5850_v3 = vmul.f32 %v8883_v58, %v11008_v18  ;;  %v5901_v51 = vsel %vm247_vm0, %v8883_v58, 0.0 }
0x2403   :  { %v5858_v15 = vrot.slane %v5857_v13, 4  ;;  %v5895_v1 = vadd.f32 %v5894_v27, %v5893_v47  ;;  %v5864_v36 = vsel %vm247_vm0, %v5849_v54, 0.0  ;;  %v5902_v50 = vadd.f32 %v5901_v51, %v5900_v10 }
0x2404   :  { %v8885_v19 = vpop.eup %8884  ;;  %v5865_v46 = vsel %vm247_vm0, %v5850_v3, 0.0 }
0x2405   :  { %v8887_v53 = vpop.eup %8886  ;;  %v5859_v7 = vadd.f32 %v5858_v15, %v5857_v13  ;;  %v5896_v5 = vrot.slane %v5895_v1, 2  ;;  %v5866_v23 = vadd.f32 %v5865_v46, %v5864_v36  ;;  %v5903_v48 = vrot.slane %v5902_v50, 4 }
0x2406   :  { %v5851_v52 = vmul.f32 %v8885_v19, %v11009_v28  ;;  %v5852_v32 = vmul.f32 %v8887_v53, %v11010_v59  ;;  %v5909_v11 = vsel %vm247_vm0, %v8885_v19, 0.0  ;;  %v5910_v37 = vsel %vm247_vm0, %v8887_v53, 0.0 }
0x2407   :  { %v5897_v33 = vadd.f32 %v5896_v5, %v5895_v1  ;;  %v5867_v63 = vrot.slane %v5866_v23, 4  ;;  %v5904_v40 = vadd.f32 %v5903_v48, %v5902_v50  ;;  %v5911_v35 = vadd.f32 %v5910_v37, %v5909_v11 }
0x2408   :  { %v5873_v4 = vsel %vm247_vm0, %v5851_v52, 0.0  ;;  %v5874_v22 = vsel %vm247_vm0, %v5852_v32, 0.0  ;;  %v5860_v24 = vrot.slane %v5859_v7, 2 }
0x2409   :  { %v8889_v55 = vpop.eup %8888  ;;  %v5898_v49 = vrot.slane %v5897_v33, 1  ;;  %v5905_v31 = vrot.slane %v5904_v40, 2  ;;  %v5875_v47 = vadd.f32 %v5874_v22, %v5873_v4  ;;  %v5868_v58 = vadd.f32 %v5867_v63, %v5866_v23 }
0x240a   :  { %v8891_v38 = vpop.eup %8890  ;;  %v5912_v13 = vrot.slane %v5911_v35, 4  ;;  %v5853_v27 = vmul.f32 %v8889_v55, %v11032_v25  ;;  %v5918_v54 = vsel %vm247_vm0, %v8889_v55, 0.0  ;;  %v5861_v48 = vadd.f32 %v5860_v24, %v5859_v7 }
0x240b   :  { %v5899_v10 = vadd.f32 %v5898_v49, %v5897_v33  ;;  %v5906_v3 = vadd.f32 %v5905_v31, %v5904_v40  ;;  %v5876_v51 = vrot.slane %v5875_v47, 4  ;;  %v5854_v15 = vmul.f32 %v8891_v38, %v11033_v44 }
0x240c   :  { %v5913_v1 = vadd.f32 %v5912_v13, %v5911_v35  ;;  %v5882_v36 = vsel %vm247_vm0, %v5853_v27, 0.0  ;;  %v5919_v50 = vsel %vm247_vm0, %v8891_v38, 0.0  ;;  %v5869_v52 = vrot.slane %v5868_v58, 2 }
0x240d   :  { %8892 = vrcp.f32 %v5899_v10  ;;  %v5907_v19 = vrot.slane %v5906_v3, 1  ;;  %v5883_v46 = vsel %vm247_vm0, %v5854_v15, 0.0  ;;  %v5920_v53 = vadd.f32 %v5919_v50, %v5918_v54 }
0x240e   :  { %v5914_v5 = vrot.slane %v5913_v1, 2  ;;  %v5884_v23 = vadd.f32 %v5883_v46, %v5882_v36  ;;  %v5877_v37 = vadd.f32 %v5876_v51, %v5875_v47  ;;  %v5862_v4 = vrot.slane %v5861_v48, 1 }
0x240f   :  { %v5908_v32 = vadd.f32 %v5907_v19, %v5906_v3  ;;  %v5921_v11 = vrot.slane %v5920_v53, 4  ;;  %v5870_v22 = vadd.f32 %v5869_v52, %v5868_v58 }
0x2410   :  { %v5915_v33 = vadd.f32 %v5914_v5, %v5913_v1  ;;  %v5885_v63 = vrot.slane %v5884_v23, 4  ;;  %v5878_v49 = vrot.slane %v5877_v37, 2  ;;  %v5863_v27 = vadd.f32 %v5862_v4, %v5861_v48 }
0x2411   :  { %8894 = vrcp.f32 %v5908_v32  ;;  %v5922_v40 = vadd.f32 %v5921_v11, %v5920_v53  ;;  %v5871_v54 = vrot.slane %v5870_v22, 1 }
0x2412   :  { %v5916_v35 = vrot.slane %v5915_v33, 1  ;;  %v5886_v38 = vadd.f32 %v5885_v63, %v5884_v23  ;;  %v5879_v10 = vadd.f32 %v5878_v49, %v5877_v37 }
0x2413   :  { %v5923_v55 = vrot.slane %v5922_v40, 2  ;;  %v5872_v15 = vadd.f32 %v5871_v54, %v5870_v22 }
0x2414   :  { %v5917_v31 = vadd.f32 %v5916_v35, %v5915_v33  ;;  %v5887_v3 = vrot.slane %v5886_v38, 2  ;;  %v5880_v36 = vrot.slane %v5879_v10, 1  ;;  %v6018_v33 = vld [vmem:[#allocation2 + $0x1c] sm:$0xf] }
0x2415   :  { %v5924_v13 = vadd.f32 %v5923_v55, %v5922_v40 }
0x2416   :  { %8896 = vrcp.f32 %v5917_v31  ;;  %v5888_v50 = vadd.f32 %v5887_v3, %v5886_v38  ;;  %v5881_v46 = vadd.f32 %v5880_v36, %v5879_v10  ;;  %v11153_v36 = vld [vmem:[#allocation32_spill] sm:$0xff] }
0x2417   :  { %v8893_v7 = vpop.eup %8892  ;;  %v5925_v24 = vrot.slane %v5924_v13, 1 }
0x2418   :  { %v5931_v47 = vmul.f32 %v8893_v7, %v5863_v27  ;;  %v5889_v5 = vrot.slane %v5888_v50, 1 }
0x2419   :  { %v5926_v51 = vadd.f32 %v5925_v24, %v5924_v13 }
0x241a   :  { %v5890_v52 = vadd.f32 %v5889_v5, %v5888_v50  ;;  %v11154_v50 = vld [vmem:[#allocation33_spill] sm:$0xff] }
0x241b   :  { %v8895_v1 = vpop.eup %8894  ;;  %8898 = vrcp.f32 %v5926_v51 }
0x241c   :  { %v5932_v58 = vmul.f32 %v8895_v1, %v5872_v15 }
0x241e   :  { %v5939_v19 = vsel %vm922_vm3, %v5932_v58, %v5931_v47 }
0x2420   :  { %v8897_v53 = vpop.eup %8896 }
0x2421   :  { %v5933_v23 = vmul.f32 %v8897_v53, %v5881_v46 }
0x2423   :  { %v5940_v48 = vsel %vm924_vm4, %v5933_v23, %v5939_v19  ;;  %v11155_v19 = vld [vmem:[#allocation35_spill] sm:$0xff]  ;;  %v11156_v23 = vld [vmem:[#allocation34_spill] sm:$0xff] }
0x2425   :  { %v8899_v32 = vpop.eup %8898 }
0x2426   :  { %v5934_v11 = vmul.f32 %v8899_v32, %v5890_v52  ;;  %v11157_v52 = vld [vmem:[#allocation37_spill] sm:$0xff] }
0x2428   :  { %v5941_v37 = vsel %vm926_vm5, %v5934_v11, %v5940_v48 }
0x2429   :  { %7994 = vmatmul.mubr.msk.f32.vlgmr.msra.gmra.mrb[58].mxu0 %vm247_vm0, %v5941_v37  ;;  %8024 = vmatmul.mubr.msk.f32.vlgmr.msra.gmra.mrb[70].mxu1 %vm247_vm0, %v5941_v37  ;;  %v11158_v37 = vld [vmem:[#allocation36_spill] sm:$0xff] }
0x242a   :  { %8546 = vmatpush3.bf16.msra.mxu0 %v11013_v21  ;;  %8004 = vmatprep.mubr.msk.f32.mxu0 %vm9264_vm2, %v11002_v61 }
0x242b   :  { %8547 = vmatprep.subr.bf16.mxu0 %v11003_v26  ;;  %8572 = vmatpush3.bf16.msra.mxu1 %v9747_v6  ;;  %v5525_v6 = vadd.f32 %v10641_v56, %v9732_v8 }
0x242c   :  { %8573 = vmatprep.subr.bf16.mxu1 %v11003_v26  ;;  %8034 = vmatprep.mubr.msk.f32.mxu1 %vm9264_vm2, %v11002_v61 }
0x242e   :  { %8549 = vmatpush3.bf16.msra.mxu0 %v11014_v16 }
0x242f   :  { %8563 = vmatprep.subr.bf16.mxu0 %v11015_v14  ;;  %8575 = vmatpush3.bf16.msra.mxu1 %v9750_v34 }
0x2430   :  { %8592 = vmatprep.subr.bf16.mxu1 %v11003_v26 }
0x2431   :  { %8005 = vmatmul.mubr.msk.f32.vlgmr.msra.gmra.mrb[60].mxu0 %vm393_vm1, %v6018_v33 }
0x2432   :  { %8565 = vmatpush1.bf16.msra.mxu0 %v9487_v9  ;;  %6257 = vmatprep.mubr.f32.mxu0 %v11002_v61 }
0x2433   :  { %8567 = vmatprep.subr.bf16.mxu0 %v9490_v17 }
0x2436   :  { %8569 = vmatpush1.bf16.msra.mxu0 %v9493_v20 }
0x2437   :  { %8577 = vmatprep.subr.bf16.mxu0 %v9498_v29 }
0x24fc   :  { %v6010_v21 = vpop.f32.mrb[58].mxu0  ;;  %v6158_v16 = vpop.f32.mrb[70].mxu1 }
0x24fd   :  { %v8610_v34 = vadd.f32 %v6010_v21, %v9888_v57  ;;  %v6162_v14 = vadd.f32 %v6158_v16, %v5525_v6  ;;  %v7995_v63 = vpop.f32.mrb[59].mxu0  ;;  %v8025_v40 = vpop.f32.mrb[71].mxu1  ;;  %v11159_v6 = vld [vmem:[#allocation39_spill] sm:$0xff]  ;;  %v11160_v16 = vld [vmem:[#allocation38_spill] sm:$0xff] }
0x24fe   :  { %v8960_v63 = vld [vmem:[#allocation8 + $0x8] sm:$0xff] }
0x24ff   :  { %6016 = vst [vmem:[#allocation17 + $0x18] sm:$0xf] %v8610_v34 }
0x2504   :  { %v6088_v9 = vpop.f32.mrb[60].mxu0 }
0x2505   :  { %v6089_v35 = vadd.f32 %v10609_v2, %v6088_v9  ;;  %v8006_v4 = vpop.f32.mrb[61].mxu0 }
0x2507   :  { %v6163_v17 = vadd.f32 %v6162_v14, %v6089_v35  ;;  %v8961_v35 = vld [vmem:[#allocation8] sm:$0xff] }
0x2509   :  { %8900 = vtanh.f32 %v6163_v17  ;;  %v6928_v22 = vmul.f32 -1.442695, %v6163_v17 }
0x250b   :  { %8902 = vpow2.f32 %v6928_v22 }
0x2513   :  { %v8901_v20 = vpop.eup %8900 }
0x2514   :  { %6173 = vrot.lane.b32.xlu1 %v8901_v20, %s9253_s10 }
0x2515   :  { %v8903_v8 = vpop.eup %8902 }
0x2516   :  { %v6167_v56 = vadd.f32 1.0, %v8903_v8 }
0x2518   :  { %8904 = vrcp.f32 %v6167_v56  ;;  %v8962_v56 = vld [vmem:[#allocation8 + $0x18] sm:$0xff] }
0x2522   :  { %v8905_v55 = vpop.eup %8904 }
0x2523   :  { %v6171_v38 = vmul.f32 %v8905_v55, %v10615_v30  ;;  %v11151_v30 = vld [vmem:[#allocation31_spill] sm:$0xff] }
0x2586   :  { %v6174_v49 = vpop.permute.xlu1 %6173 }
0x2587   :  { %v6176_v31 = vmul.f32 %v8905_v55, %v6174_v49 }
0x2589   :  { %6178 = vrot.lane.b32.xlu0 %v6176_v31, %s9265_s24  ;;  %v8963_v31 = vld [vmem:[#allocation8 + $0x10] sm:$0xff] }
0x25fb   :  { %v6179_v13 = vpop.permute.xlu0 %6178 }
0x25fc   :  { %v6181_v2 = vadd.f32 %v6179_v13, %v6171_v38 }
0x25fe   :  { %8906 = vtanh.f32 %v6181_v2 }
0x2608   :  { %v8907_v27 = vpop.eup %8906 }
0x2609   :  { %6184 = vrot.lane.b32.xlu1 %v8907_v27, %s9253_s10 }
0x260d   :  { %6757 = vrot.lane.b32.xlu1 %v6181_v2, %s9266_s13 }
0x267b   :  { %v6185_v54 = vpop.permute.xlu1 %6184 }
0x267c   :  { %v6187_v7 = vmul.f32 %v8905_v55, %v6185_v54 }
0x267e   :  { %6189 = vrot.lane.b32.xlu0 %v6187_v7, %s9265_s24 }
0x267f   :  { %v6758_v24 = vpop.permute.xlu1 %6757 }
0x2680   :  { %6760 = vst.msk [vmem:[#allocation20] sm:$0xf] %vm6754_vm6, %v6758_v24 }
0x26f0   :  { %v6190_v10 = vpop.permute.xlu0 %6189 }
0x26f1   :  { %6755 = vst.msk [vmem:[#allocation18] sm:$0xf] %vm6754_vm6, %v6190_v10  ;;  %6929 = vmatmul.mubr.msk.f32.vlgmr.msra.gmra.mrb[62].mxu0 %vm393_vm1, %v6190_v10  ;;  %8035 = vmatmul.mubr.msk.f32.vlgmr.msra.gmra.mrb[72].mxu1 %vm393_vm1, %v6190_v10  ;;  %v8964_v10 = vld [vmem:[#allocation8 + $0x28] sm:$0xff] }
0x26f2   :  { %8579 = vmatpush3.bf16.msra.mxu0 %v9498_v29  ;;  %8594 = vmatpush3.bf16.msra.mxu1 %v9805_v0  ;;  %v11149_v29 = vld [vmem:[#allocation54_spill] sm:$0xff] }
0x26f3   :  { %8581 = vmatprep.subr.bf16.mxu0 %v9510_v39  ;;  %8595 = vmatprep.subr.bf16.mxu1 %v11003_v26 }
0x26f4   :  { %8081 = vmatprep.mubr.msk.f32.mxu1 %vm9264_vm2, %v11002_v61 }
0x26f6   :  { %8583 = vmatpush3.bf16.msra.mxu0 %v9510_v39  ;;  %8597 = vmatpush3.bf16.msra.mxu1 %v9809_v62  ;;  %v11150_v39 = vld [vmem:[#allocation30_spill] sm:$0xff] }
0x26f7   :  { %8585 = vmatprep.subr.bf16.mxu0 %v9514_v42  ;;  %8598 = vmatprep.subr.bf16.mxu1 %v11003_v26 }
0x26fa   :  { %8587 = vmatpush3.bf16.msra.mxu0 %v9514_v42  ;;  %8600 = vmatpush3.bf16.msra.mxu1 %v9812_v41  ;;  %v11152_v41 = vld [vmem:[#allocation29_spill] sm:$0xff] }
0x26fb   :  { %8589 = vmatprep.subr.bf16.mxu0 %v9518_v45  ;;  %8601 = vmatprep.subr.bf16.mxu1 %v11003_v26 }
0x26fe   :  { %8591 = vmatpush3.bf16.msra.mxu0 %v9518_v45  ;;  %8603 = vmatpush3.bf16.msra.mxu1 %v11149_v29 }
0x27c4   :  { %v6259_v61 = vpop.f32.mrb[62].mxu0 }
0x27c5   :  { %v6260_v0 = vadd.f32 %v6259_v61, %v11150_v39  ;;  %v6261_v62 = vpop.f32.mrb[63].mxu0  ;;  %v8965_v39 = vld [vmem:[#allocation8 + $0x20] sm:$0xff] }
0x27c7   :  { %v6340_v3 = vrot.slane %v6260_v0, %v11151_v30 }
0x27c9   :  { %v6341_v47 = vcombine.high %v6340_v3, %v6340_v3  ;;  %v6348_v51 = vrot.slane %v6340_v3, %v11151_v30 }
0x27cb   :  { %v6355_v42 = vrot.slane %v6341_v47, %v11151_v30  ;;  %v6361_v15 = vrot.slane %v6348_v51, %v11152_v41  ;;  %v6356_v1 = vcombine.high %v6348_v51, %v6348_v51 }
0x27cd   :  { %v6365_v26 = vrot.slane %v6355_v42, %v11152_v41  ;;  %v6379_v45 = vmul.f32 %v6361_v15, %v11153_v36  ;;  %v6378_v58 = vmul.f32 %v6361_v15, %v11154_v50  ;;  %v6357_v53 = vcombine.high %v6355_v42, %v6355_v42 }
0x27ce   :  { %v6369_v5 = vrot.slane %v6356_v1, %v11152_v41  ;;  %v8966_v1 = vld [vmem:[#allocation8 + $0x38] sm:$0xff] }
0x27cf   :  { %v6380_v46 = vmul.f32 %v6365_v26, %v11155_v19  ;;  %8053 = vmatprep.mubr.msk.f32.mxu0 %vm247_vm0, %v6378_v58  ;;  %v6381_v48 = vmul.f32 %v6365_v26, %v11156_v23  ;;  %v6373_v11 = vrot.slane %v6357_v53, %v11152_v41 }
0x27d0   :  { %8054 = vmatmul.mubr.msk.f32.vlgmr.msra.gmra.mrb[64].mxu0 %vm247_vm0, %v6379_v45  ;;  %v6382_v32 = vmul.f32 %v6369_v5, %v11157_v52  ;;  %v6383_v33 = vmul.f32 %v6369_v5, %v11158_v37  ;;  %v8967_v45 = vld [vmem:[#allocation8 + $0x30] sm:$0xff] }
0x27d1   :  { %8056 = vmatprep.mubr.msk.f32.mxu0 %vm247_vm0, %v6380_v46  ;;  %v6384_v21 = vmul.f32 %v6373_v11, %v11159_v6  ;;  %v6385_v34 = vmul.f32 %v6373_v11, %v11160_v16 }
0x27d4   :  { %8057 = vmatmul.mubr.msk.f32.gmra.mrb[66].mxu0 %vm247_vm0, %v6381_v48 }
0x27d5   :  { %8059 = vmatprep.mubr.msk.f32.mxu0 %vm247_vm0, %v6382_v32 }
0x27d8   :  { %8060 = vmatmul.mubr.msk.f32.gmra.mrb[68].mxu0 %vm247_vm0, %v6383_v33 }
0x27d9   :  { %8062 = vmatprep.mubr.msk.f32.mxu0 %vm247_vm0, %v6384_v21 }
0x27dc   :  { %8063 = vmatmul.mubr.msk.f32.gmra.mrb[70].mxu0 %vm247_vm0, %v6385_v34 }
0x28a3   :  { %v8055_v14 = vpop.f32.mrb[64].mxu0 }
0x28a4   :  { %v6516_v40 = vadd.f32 %v8960_v63, %v8055_v14  ;;  %v6476_v9 = vpop.f32.mrb[65].mxu0 }
0x28a5   :  { %v6515_v4 = vadd.f32 %v8961_v35, %v6476_v9 }
0x28a6   :  { %v6524_v17 = vsel %vm247_vm0, %v6516_v40, -inf }
0x28a7   :  { %v6523_v20 = vsel %vm247_vm0, %v6515_v4, -inf  ;;  %v8058_v22 = vpop.f32.mrb[66].mxu0 }
0x28a8   :  { %v6525_v8 = vmax.f32 %v6523_v20, %v6524_v17  ;;  %v6518_v55 = vadd.f32 %v8962_v56, %v8058_v22  ;;  %v6486_v49 = vpop.f32.mrb[67].mxu0 }
0x28a9   :  { %v6517_v38 = vadd.f32 %v8963_v31, %v6486_v49 }
0x28aa   :  { %v6526_v13 = vrot.slane %v6525_v8, 4  ;;  %v6533_v2 = vsel %vm247_vm0, %v6518_v55, -inf }
0x28ab   :  { %v6532_v27 = vsel %vm247_vm0, %v6517_v38, -inf  ;;  %v8061_v54 = vpop.f32.mrb[68].mxu0 }
0x28ac   :  { %v6527_v7 = vmax.f32 %v6525_v8, %v6526_v13  ;;  %v6534_v24 = vmax.f32 %v6532_v27, %v6533_v2  ;;  %v6520_v29 = vadd.f32 %v8964_v10, %v8061_v54  ;;  %v6496_v61 = vpop.f32.mrb[69].mxu0 }
0x28ad   :  { %v6519_v0 = vadd.f32 %v8965_v39, %v6496_v61 }
0x28ae   :  { %v6528_v62 = vrot.slane %v6527_v7, 2  ;;  %v6535_v30 = vrot.slane %v6534_v24, 4  ;;  %v6542_v3 = vsel %vm247_vm0, %v6520_v29, -inf }
0x28af   :  { %v6541_v47 = vsel %vm247_vm0, %v6519_v0, -inf  ;;  %v8064_v51 = vpop.f32.mrb[70].mxu0 }
0x28b0   :  { %v6529_v42 = vmax.f32 %v6527_v7, %v6528_v62  ;;  %v6536_v41 = vmax.f32 %v6534_v24, %v6535_v30  ;;  %v6543_v15 = vmax.f32 %v6541_v47, %v6542_v3  ;;  %v6522_v26 = vadd.f32 %v8966_v1, %v8064_v51  ;;  %v6506_v36 = vpop.f32.mrb[71].mxu0 }
0x28b1   :  { %v6521_v50 = vadd.f32 %v8967_v45, %v6506_v36 }
0x28b2   :  { %v6530_v58 = vrot.slane %v6529_v42, 1  ;;  %v6537_v19 = vrot.slane %v6536_v41, 2  ;;  %v6544_v46 = vrot.slane %v6543_v15, 4  ;;  %v6551_v53 = vsel %vm247_vm0, %v6522_v26, -inf }
0x28b3   :  { %v6550_v5 = vsel %vm247_vm0, %v6521_v50, -inf }
0x28b4   :  { %v6531_v23 = vmax.f32 %v6529_v42, %v6530_v58  ;;  %v6538_v48 = vmax.f32 %v6536_v41, %v6537_v19  ;;  %v6545_v52 = vmax.f32 %v6543_v15, %v6544_v46  ;;  %v6552_v32 = vmax.f32 %v6550_v5, %v6551_v53 }
0x28b6   :  { %v6559_v11 = vsub.f32 %v6515_v4, %v6531_v23  ;;  %v6560_v37 = vsub.f32 %v6516_v40, %v6531_v23  ;;  %v6539_v33 = vrot.slane %v6538_v48, 1  ;;  %v6546_v6 = vrot.slane %v6545_v52, 2 }
0x28b7   :  { %v6553_v21 = vrot.slane %v6552_v32, 4 }
0x28b8   :  { %v6567_v16 = vmul.f32 1.442695, %v6559_v11  ;;  %v6569_v34 = vmul.f32 1.442695, %v6560_v37  ;;  %v6540_v14 = vmax.f32 %v6538_v48, %v6539_v33  ;;  %v6547_v63 = vmax.f32 %v6545_v52, %v6546_v6 }
0x28b9   :  { %v6554_v9 = vmax.f32 %v6552_v32, %v6553_v21 }
0x28ba   :  { %8908 = vpow2.f32 %v6567_v16  ;;  %v6561_v35 = vsub.f32 %v6517_v38, %v6540_v14  ;;  %v6562_v17 = vsub.f32 %v6518_v55, %v6540_v14  ;;  %v6548_v20 = vrot.slane %v6547_v63, 1 }
0x28bb   :  { %8910 = vpow2.f32 %v6569_v34  ;;  %v6555_v22 = vrot.slane %v6554_v9, 2 }
0x28bc   :  { %v6571_v8 = vmul.f32 1.442695, %v6561_v35  ;;  %v6573_v56 = vmul.f32 1.442695, %v6562_v17  ;;  %v6549_v49 = vmax.f32 %v6547_v63, %v6548_v20 }
0x28bd   :  { %v6556_v31 = vmax.f32 %v6554_v9, %v6555_v22 }
0x28be   :  { %8912 = vpow2.f32 %v6571_v8  ;;  %v6563_v40 = vsub.f32 %v6519_v0, %v6549_v49  ;;  %v6564_v4 = vsub.f32 %v6520_v29, %v6549_v49 }
0x28bf   :  { %8914 = vpow2.f32 %v6573_v56  ;;  %v6557_v13 = vrot.slane %v6556_v31, 1 }
0x28c0   :  { %v6575_v2 = vmul.f32 1.442695, %v6563_v40  ;;  %v6577_v27 = vmul.f32 1.442695, %v6564_v4 }
0x28c1   :  { %v6558_v54 = vmax.f32 %v6556_v31, %v6557_v13 }
0x28c2   :  { %8916 = vpow2.f32 %v6575_v2 }
0x28c3   :  { %8918 = vpow2.f32 %v6577_v27  ;;  %v6565_v7 = vsub.f32 %v6521_v50, %v6558_v54  ;;  %v6566_v38 = vsub.f32 %v6522_v26, %v6558_v54 }
0x28c4   :  { %v8909_v55 = vpop.eup %8908 }
0x28c5   :  { %v8911_v24 = vpop.eup %8910  ;;  %v6583_v10 = vmul.f32 %v8909_v55, %v9685_v60  ;;  %v6627_v61 = vsel %vm247_vm0, %v8909_v55, 0.0  ;;  %v6579_v39 = vmul.f32 1.442695, %v6565_v7  ;;  %v6581_v62 = vmul.f32 1.442695, %v6566_v38 }
0x28c6   :  { %v6584_v0 = vmul.f32 %v8911_v24, %v9681_v12  ;;  %v6628_v29 = vsel %vm247_vm0, %v8911_v24, 0.0 }
0x28c7   :  { %v6591_v30 = vsel %vm247_vm0, %v6583_v10, 0.0  ;;  %v6629_v3 = vadd.f32 %v6628_v29, %v6627_v61  ;;  %8920 = vpow2.f32 %v6579_v39 }
0x28c8   :  { %v8913_v47 = vpop.eup %8912  ;;  %v6592_v51 = vsel %vm247_vm0, %v6584_v0, 0.0  ;;  %8922 = vpow2.f32 %v6581_v62 }
0x28c9   :  { %v8915_v42 = vpop.eup %8914  ;;  %v6593_v41 = vadd.f32 %v6592_v51, %v6591_v30  ;;  %v6630_v15 = vrot.slane %v6629_v3, 4  ;;  %v6585_v60 = vmul.f32 %v8913_v47, %v9691_v43  ;;  %v6636_v1 = vsel %vm247_vm0, %v8913_v47, 0.0 }
0x28ca   :  { %v6586_v26 = vmul.f32 %v8915_v42, %v11008_v18  ;;  %v6637_v12 = vsel %vm247_vm0, %v8915_v42, 0.0 }
0x28cb   :  { %v6594_v36 = vrot.slane %v6593_v41, 4  ;;  %v6631_v45 = vadd.f32 %v6630_v15, %v6629_v3  ;;  %v6600_v50 = vsel %vm247_vm0, %v6585_v60, 0.0  ;;  %v6638_v58 = vadd.f32 %v6637_v12, %v6636_v1 }
0x28cc   :  { %v8917_v19 = vpop.eup %8916  ;;  %v6601_v46 = vsel %vm247_vm0, %v6586_v26, 0.0 }
0x28cd   :  { %v8919_v53 = vpop.eup %8918  ;;  %v6595_v5 = vadd.f32 %v6594_v36, %v6593_v41  ;;  %v6632_v23 = vrot.slane %v6631_v45, 2  ;;  %v6602_v48 = vadd.f32 %v6601_v46, %v6600_v50  ;;  %v6639_v52 = vrot.slane %v6638_v58, 4 }
0x28ce   :  { %v6587_v43 = vmul.f32 %v8917_v19, %v11009_v28  ;;  %v6588_v32 = vmul.f32 %v8919_v53, %v11010_v59  ;;  %v6645_v18 = vsel %vm247_vm0, %v8917_v19, 0.0  ;;  %v6646_v11 = vsel %vm247_vm0, %v8919_v53, 0.0 }
0x28cf   :  { %v6633_v37 = vadd.f32 %v6632_v23, %v6631_v45  ;;  %v6603_v33 = vrot.slane %v6602_v48, 4  ;;  %v6640_v6 = vadd.f32 %v6639_v52, %v6638_v58  ;;  %v6647_v21 = vadd.f32 %v6646_v11, %v6645_v18 }
0x28d0   :  { %v6609_v16 = vsel %vm247_vm0, %v6587_v43, 0.0  ;;  %v6610_v34 = vsel %vm247_vm0, %v6588_v32, 0.0  ;;  %v6596_v17 = vrot.slane %v6595_v5, 2 }
0x28d1   :  { %v8921_v14 = vpop.eup %8920  ;;  %v6634_v63 = vrot.slane %v6633_v37, 1  ;;  %v6641_v9 = vrot.slane %v6640_v6, 2  ;;  %v6611_v35 = vadd.f32 %v6610_v34, %v6609_v16  ;;  %v6604_v20 = vadd.f32 %v6603_v33, %v6602_v48 }
0x28d2   :  { %v8923_v28 = vpop.eup %8922  ;;  %v6648_v59 = vrot.slane %v6647_v21, 4  ;;  %v6589_v22 = vmul.f32 %v8921_v14, %v11032_v25  ;;  %v6654_v8 = vsel %vm247_vm0, %v8921_v14, 0.0  ;;  %v6597_v25 = vadd.f32 %v6596_v17, %v6595_v5 }
0x28d3   :  { %v6635_v56 = vadd.f32 %v6634_v63, %v6633_v37  ;;  %v6642_v49 = vadd.f32 %v6641_v9, %v6640_v6  ;;  %v6612_v31 = vrot.slane %v6611_v35, 4  ;;  %v6590_v40 = vmul.f32 %v8923_v28, %v11033_v44 }
0x28d4   :  { %v6649_v4 = vadd.f32 %v6648_v59, %v6647_v21  ;;  %v6618_v13 = vsel %vm247_vm0, %v6589_v22, 0.0  ;;  %v6655_v2 = vsel %vm247_vm0, %v8923_v28, 0.0  ;;  %v6605_v24 = vrot.slane %v6604_v20, 2 }
0x28d5   :  { %8924 = vrcp.f32 %v6635_v56  ;;  %v6643_v27 = vrot.slane %v6642_v49, 1  ;;  %v6619_v54 = vsel %vm247_vm0, %v6590_v40, 0.0  ;;  %v6656_v7 = vadd.f32 %v6655_v2, %v6654_v8 }
0x28d6   :  { %v6650_v38 = vrot.slane %v6649_v4, 2  ;;  %v6620_v55 = vadd.f32 %v6619_v54, %v6618_v13  ;;  %v6613_v39 = vadd.f32 %v6612_v31, %v6611_v35  ;;  %v6598_v30 = vrot.slane %v6597_v25, 1 }
0x28d7   :  { %v6644_v10 = vadd.f32 %v6643_v27, %v6642_v49  ;;  %v6657_v61 = vrot.slane %v6656_v7, 4  ;;  %v6606_v3 = vadd.f32 %v6605_v24, %v6604_v20 }
0x28d8   :  { %v6651_v62 = vadd.f32 %v6650_v38, %v6649_v4  ;;  %v6621_v0 = vrot.slane %v6620_v55, 4  ;;  %v6614_v51 = vrot.slane %v6613_v39, 2  ;;  %v6599_v60 = vadd.f32 %v6598_v30, %v6597_v25 }
0x28d9   :  { %8926 = vrcp.f32 %v6644_v10  ;;  %v6658_v44 = vadd.f32 %v6657_v61, %v6656_v7  ;;  %v6607_v1 = vrot.slane %v6606_v3, 1 }
0x28da   :  { %v6652_v29 = vrot.slane %v6651_v62, 1  ;;  %v6622_v41 = vadd.f32 %v6621_v0, %v6620_v55  ;;  %v6615_v36 = vadd.f32 %v6614_v51, %v6613_v39 }
0x28db   :  { %v6659_v47 = vrot.slane %v6658_v44, 2  ;;  %v6608_v19 = vadd.f32 %v6607_v1, %v6606_v3 }
0x28dc   :  { %v6653_v42 = vadd.f32 %v6652_v29, %v6651_v62  ;;  %v6623_v45 = vrot.slane %v6622_v41, 2  ;;  %v6616_v53 = vrot.slane %v6615_v36, 1 }
0x28dd   :  { %v6660_v15 = vadd.f32 %v6659_v47, %v6658_v44 }
0x28de   :  { %8928 = vrcp.f32 %v6653_v42  ;;  %v6624_v5 = vadd.f32 %v6623_v45, %v6622_v41  ;;  %v6617_v52 = vadd.f32 %v6616_v53, %v6615_v36 }
0x28df   :  { %v8925_v26 = vpop.eup %8924  ;;  %v6661_v12 = vrot.slane %v6660_v15, 1 }
0x28e0   :  { %v6667_v50 = vmul.f32 %v8925_v26, %v6599_v60  ;;  %v6625_v32 = vrot.slane %v6624_v5, 1 }
0x28e1   :  { %v6662_v58 = vadd.f32 %v6661_v12, %v6660_v15 }
0x28e2   :  { %v6626_v37 = vadd.f32 %v6625_v32, %v6624_v5 }
0x28e3   :  { %v8927_v46 = vpop.eup %8926  ;;  %8930 = vrcp.f32 %v6662_v58 }
0x28e4   :  { %v6668_v23 = vmul.f32 %v8927_v46, %v6608_v19 }
0x28e6   :  { %v6675_v48 = vsel %vm922_vm3, %v6668_v23, %v6667_v50 }
0x28e8   :  { %v8929_v43 = vpop.eup %8928 }
0x28e9   :  { %v6669_v18 = vmul.f32 %v8929_v43, %v6617_v52 }
0x28eb   :  { %v6676_v11 = vsel %vm924_vm4, %v6669_v18, %v6675_v48 }
0x28ed   :  { %v8931_v33 = vpop.eup %8930 }
0x28ee   :  { %v6670_v6 = vmul.f32 %v8931_v33, %v6626_v37 }
0x28f0   :  { %v6677_v21 = vsel %vm926_vm5, %v6670_v6, %v6676_v11 }
0x28f1   :  { %8082 = vmatmul.mubr.msk.f32.vlgmr.msra.gmra.mrb[72].mxu1 %vm247_vm0, %v6677_v21 }
0x28f2   :  { %9177 = shalt.err (!%p9174_p6)
}
0x28f3   :  { %s9178_s0 = scalar_lea.hbm %s10881_s15, 64 }
0x28f4   :  { %p9179_p7 = scmp.ne.s32.totalorder %s10881_s15, %s9178_s0  ;;  %p9182_p8 = scmp.lt.u32.totalorder %s9178_s0, %s10881_s15 }
0x28f6   :  { %p9184_p9 = pnand %p9182_p8, %p9179_p7 }
0x28f8   :  { %9187 = shalt.err (!%p9184_p9)
}
0x28f9   :  { %6782 = dma.vmem_to_hbm [thread:$0]  %s6780_s22, 64, %s10881_s15, [#allocation19]  }
0x28fa   :  { %s9268_s12 = smov [#allocation20]  }
0x28fb   :  { %s6789_s21 = sshll.u32 %s9268_s12, 4  ;;  %s6790_s21 = int_to_ptr.vmem [resolvable:$true] %s6789_s21 }
0x28fc   :  { %s9188_s24 = scalar_lea.vmem %s6790_s21, 64  ;;  %p9193_p11 = scmp.lt.s32.totalorder %s6790_s21, %s6790_s21 }
0x28fd   :  { %p9189_p10 = scmp.ne.s32.totalorder %s6790_s21, %s9188_s24  ;;  %p9194_p12 = scmp.lt.s32.totalorder %s9188_s24, %s9188_s24 }
0x28ff   :  { %p9195_p13 = por %p9194_p12, %p9193_p11 }
0x2901   :  { %p9196_p0 = pnand %p9195_p13, %p9189_p10 }
0x2903   :  { %9199 = shalt.err (!%p9196_p0)
}
0x2904   :  { %s9200_s17 = scalar_lea.hbm %s10882_s16, 64 }
0x2905   :  { %p9201_p1 = scmp.ne.s32.totalorder %s10882_s16, %s9200_s17  ;;  %p9204_p2 = scmp.lt.u32.totalorder %s9200_s17, %s10882_s16 }
0x2907   :  { %p9206_p3 = pnand %p9204_p2, %p9201_p1 }
0x2909   :  { %9209 = shalt.err (!%p9206_p3)
}
0x290a   :  { %6792 = dma.vmem_to_hbm [thread:$0]  %s6790_s21, 64, %s10882_s16, [#allocation19]  }
0x290b   :  { %s9269_s9 = smov [#allocation17]  }
0x290c   :  { %s6766_s29 = sshll.u32 %s9269_s9, 4  ;;  %s6767_s29 = int_to_ptr.vmem [resolvable:$true] %s6766_s29 }
0x290d   :  { %s9210_s13 = scalar_lea.vmem %s6767_s29, 512  ;;  %p9215_p5 = scmp.lt.s32.totalorder %s6767_s29, %s6767_s29 }
0x290e   :  { %p9211_p4 = scmp.ne.s32.totalorder %s6767_s29, %s9210_s13  ;;  %p9216_p6 = scmp.lt.s32.totalorder %s9210_s13, %s9210_s13 }
0x2910   :  { %p9217_p7 = por %p9216_p6, %p9215_p5 }
0x2912   :  { %p9218_p8 = pnand %p9217_p7, %p9211_p4 }
0x29c4   :  { %v6746_v16 = vpop.f32.mrb[72].mxu1 }
0x29c5   :  { %v8611_v34 = vadd.f32 %v6746_v16, %v9888_v57  ;;  %v8083_v14 = vpop.f32.mrb[73].mxu1 }
0x29c7   :  { %6752 = vst [vmem:[#allocation17 + $0x1c] sm:$0xf] %v8611_v34 }
0x29c8   :  { %9221 = shalt.err (!%p9218_p8)
}
0x29c9   :  { %s9222_s30 = scalar_lea.hbm %s10880_s14, 512 }
0x29ca   :  { %p9223_p9 = scmp.ne.s32.totalorder %s10880_s14, %s9222_s30  ;;  %p9226_p10 = scmp.lt.u32.totalorder %s9222_s30, %s10880_s14 }
0x29cc   :  { %p9228_p11 = pnand %p9226_p10, %p9223_p9 }
0x29ce   :  { %9231 = shalt.err (!%p9228_p11)
}
0x29cf   :  { %6772 = dma.vmem_to_hbm [thread:$0]  %s6767_s29, 512, %s10880_s14, [#allocation4], %s9253_s10, %s9253_s10, %s9254_s1  }
0x29d0   :  { %9242 = dma.done.wait [#allocation4], 512  }
0x29d1   :  { %9243 = vsyncadd [#allocation4], 4294966784 }
0x29d2   :  { %9244 = dma.done.wait [#allocation19], 128  }
0x29d3   :  { %9245 = vsyncadd [#allocation19], 4294967168 }
0x29d4   :  { %6802 = vsyncpa [#allocation3], 1 }
0x29d5   :  { %6803 = vsyncpa [#allocation6], 1 }
0x29d6   :  { %6804 = vsyncpa [#allocation9], 1 }
0x29d7   :  { %6805 = vsyncpa [#allocation12], 1 }
0x29d8   :  { %6806 = vsyncpa [#allocation15], 1 }
0x29d9   :  { %6807 = vsyncpa [#allocation4], 1 }
0x29da   :  { %6808 = vsyncpa [#allocation19], 1 }

</bundles_post_ra>
